<compile_context>
chip_gen: v6e
topology: v6e:2x2x1
jax: 0.10.0
libtpu: 0.0.40
codegen_flags: <defaults>
</compile_context>

<pallas_src>
import numpy as np

import jax
import jax.numpy as jnp
from jax import lax
from jax.experimental import pallas as pl
from jax.experimental.pallas import tpu as pltpu


def _round_up(x, m):
    return ((x + m - 1) // m) * m


# ---------------------------------------------------------------------------
# VMEM budgeting / tile selection
# ---------------------------------------------------------------------------
def _vmem_capacity_bytes():
    try:
        return int(pltpu.get_tpu_info().vmem_capacity_bytes)
    except Exception:
        return 64 << 20          # conservative fallback: v7x has 64 MiB / TC


def _layer1_vmem_bytes(td, n_pad, hc, out_ch):
    stream = 2 * (3 * td * n_pad * 4 + 3 * td * 2 * 4)          # double-buffered tiles
    resident = 2 * (3 * 2 * n_pad * 4 + 3 * 2 * n_pad * hc * 4
                    + 3 * hc * 4 + hc * out_ch * 4 + hc * 128 * 4)
    outs = 2 * (td * out_ch * 2 + td * 128 * 4)
    return stream + resident + outs


def _layer2_vmem_bytes(td, n_pad, out_ch):
    stream = 2 * (td * n_pad * 4 + td * 4)
    resident = 2 * (n_pad * 4 + n_pad * out_ch * 2 + out_ch * 4)
    outs = 2 * td * out_ch * 4
    return stream + resident + outs


def _choose_block_dst(n_pad, hc, requested, out_ch):
    """Largest dst tile that (a) divides n_pad, (b) fits half of physical VMEM,
    (c) leaves >=2 grid steps so both v7x TensorCores get work."""
    target = max(_vmem_capacity_bytes() // 2, 16 << 20)
    cands = [t for t in range(16, min(n_pad, max(16, requested)) + 1, 16)
             if n_pad % t == 0]
    if not cands:
        cands = [16]
    ok = [t for t in cands
          if max(_layer1_vmem_bytes(t, n_pad, hc, out_ch),
                 _layer2_vmem_bytes(t, n_pad, out_ch)) <= target] or [cands[0]]
    td = max(ok)
    if n_pad // td < 2:
        smaller = [t for t in ok if n_pad // t >= 2]
        if smaller:
            td = max(smaller)
    return td


def _compiler_params(vmem_need):
    cap = _vmem_capacity_bytes()
    limit = int(min(max(vmem_need * 5 // 4 + (4 << 20), 32 << 20), cap - (8 << 20)))
    return pltpu.CompilerParams(dimension_semantics=("parallel",),
                                vmem_limit_bytes=limit)


def _full_spec(shape):
    return pl.BlockSpec(shape, lambda i, _n=len(shape): (0,) * _n)


# ---------------------------------------------------------------------------
# Kernels
# ---------------------------------------------------------------------------
def _make_layer1_kernel(heads):
    """Three edge-typed GATConvs (heads=2) summed + ReLU, fused with the
    layer-2 node projection (h1 @ W2) and its attention scalars."""

    def kernel(n_ref, v_ref, flags_ref,                  # SMEM scalars
               eat_ref, asrc_ref, adst_ref, xpm_ref, b1_ref, w2_ref, a2_ref,
               xp2_ref, attn2_ref):
        f32 = jnp.float32
        td = xp2_ref.shape[0]
        hc = b1_ref.shape[-1]
        row = pl.program_id(0) * td + lax.broadcasted_iota(jnp.int32, (td, 1), 0)
        valid = (row < n_ref[0]).astype(f32)                       # [TD, 1]

        acc = jnp.zeros((td, hc), f32)
        for t in range(3):                # activation / inhibition / undefined
            ch = eat_ref[t]                                        # [TD, N_pad] f32
            is_edge = ch > jnp.float32(-1e29)                      # sentinel = non-edge
            mask_bias = jnp.where(is_edge, 0.0, -1e30).astype(f32)  # hoisted out of heads
            e_val = jnp.where(is_edge, ch, 0.0)
            asrc_t = asrc_ref[t]                                   # [H, N_pad]
            adst_t = adst_ref[t]                                   # [TD, H]
            o_t = jnp.zeros((td, hc), f32)
            for h in range(heads):
                lg = adst_t[:, h:h + 1] + asrc_t[h:h + 1, :]       # [TD, N_pad]
                lg = lg + v_ref[t, h] * e_val                      # edge-attr bias
                lg = jnp.where(lg > 0, lg, 0.2 * lg)               # LeakyReLU(0.2)
                lg = lg + mask_bias                                # mask non-edges
                m = jnp.max(lg, axis=-1, keepdims=True)
                p = jnp.exp(lg - m)
                alpha = p / jnp.sum(p, axis=-1, keepdims=True)
                o_t = o_t + jnp.dot(alpha, xpm_ref[t, h],
                                    preferred_element_type=f32)
            acc = acc + flags_ref[t] * (o_t + b1_ref[t])           # skip absent types
        # ReLU; TODO(synk): training-mode F.dropout(p=0.2) not implemented (eval: id).
        h1 = jnp.maximum(acc, 0.0) * valid                          # zero padded rows
        # Fused conv2 projection + attention scalars (lane-dense outputs).
        xp2_ref[...] = jnp.dot(h1, w2_ref[...],
                               preferred_element_type=f32).astype(xp2_ref.dtype)
        attn2_ref[...] = jnp.dot(h1, a2_ref[...], preferred_element_type=f32)

    return kernel


def _layer2_kernel(n_ref, bias_ref, asrc_ref, adst_ref, xp2_ref, b2_ref, out_ref):
    """Full-graph GATConv (heads=1) using the pre-projected xp2 and a single
    masked, edge-attr-folded logit-bias channel."""
    f32 = jnp.float32
    td = out_ref.shape[0]
    row = pl.program_id(0) * td + lax.broadcasted_iota(jnp.int32, (td, 1), 0)
    valid = (row < n_ref[0]).astype(f32)
    lg = adst_ref[...] + asrc_ref[...] + bias_ref[...]     # bias holds edge term / -1e30
    lg = jnp.where(lg > 0, lg, 0.2 * lg)                   # LeakyReLU(0.2)
    m = jnp.max(lg, axis=-1, keepdims=True)
    p = jnp.exp(lg - m)
    alpha = (p / jnp.sum(p, axis=-1, keepdims=True)).astype(jnp.bfloat16)
    out = jnp.dot(alpha, xp2_ref[...], preferred_element_type=f32)  # bf16 x bf16 -> f32
    out_ref[...] = (out + b2_ref[...]) * valid


# ---------------------------------------------------------------------------
# pallas_call wrappers
# ---------------------------------------------------------------------------
def _gat_layer1(n_arr, v1, flags, eat1, asrc1, adst1, xpm1, b1, w2, a2, *, td):
    _, n_pad, _ = eat1.shape
    heads = asrc1.shape[1]
    hc = xpm1.shape[-1]
    out_ch = w2.shape[1]
    smem = pl.BlockSpec(memory_space=pltpu.MemorySpace.SMEM)
    vmem_need = _layer1_vmem_bytes(td, n_pad, hc, out_ch)
    return pl.pallas_call(
        _make_layer1_kernel(heads),
        out_shape=(jax.ShapeDtypeStruct((n_pad, out_ch), jnp.bfloat16),
                   jax.ShapeDtypeStruct((n_pad, 128), jnp.float32)),
        grid=(n_pad // td,),
        in_specs=[
            smem,                                                   # n (int32[1])
            smem,                                                   # edge-att coeffs [3,2]
            smem,                                                   # per-type flags [3]
            pl.BlockSpec((3, td, n_pad), lambda i: (0, i, 0)),      # masked edge channels
            _full_spec(asrc1.shape),                                # [3, H, N_pad]
            pl.BlockSpec((3, td, heads), lambda i: (0, i, 0)),      # per-dst att scalars
            _full_spec(xpm1.shape),                                 # [3, H, N_pad, hc]
            _full_spec(b1.shape),                                   # [3, 1, hc]
            _full_spec(w2.shape),                                   # [hc, 256]
            _full_spec(a2.shape),                                   # [hc, 128]
        ],
        out_specs=(pl.BlockSpec((td, out_ch), lambda i: (i, 0)),
                   pl.BlockSpec((td, 128), lambda i: (i, 0))),
        compiler_params=_compiler_params(vmem_need),
    )(n_arr, v1, flags, eat1, asrc1, adst1, xpm1, b1, w2, a2)


def _gat_layer2(n_arr, bias2, asrc2, adst2, xp2, b2, *, td):
    n_pad = bias2.shape[0]
    out_ch = xp2.shape[1]
    smem = pl.BlockSpec(memory_space=pltpu.MemorySpace.SMEM)
    vmem_need = _layer2_vmem_bytes(td, n_pad, out_ch)
    return pl.pallas_call(
        _layer2_kernel,
        out_shape=jax.ShapeDtypeStruct((n_pad, out_ch), jnp.float32),
        grid=(n_pad // td,),
        in_specs=[
            smem,                                                   # n
            pl.BlockSpec((td, n_pad), lambda i: (i, 0)),            # folded masked bias
            _full_spec(asrc2.shape),                                # [1, N_pad]
            pl.BlockSpec((td, 1), lambda i: (i, 0)),                # per-dst att scalar
            _full_spec(xp2.shape),                                  # [N_pad, 256] bf16
            _full_spec(b2.shape),                                   # [1, 256]
        ],
        out_specs=pl.BlockSpec((td, out_ch), lambda i: (i, 0)),
        compiler_params=_compiler_params(vmem_need),
    )(n_arr, bias2, asrc2, adst2, xp2, b2)


# ---------------------------------------------------------------------------
# Host-side graph densification & parameter folding (pure JAX, outside Pallas)
# ---------------------------------------------------------------------------
def _dense_masked_channel(edge_index, vals, sel, n, n_pad, neg=-1e30):
    """[n_pad, n_pad] f32: per-edge scalar value for (dst, src) edges (including
    PyG's mean-filled self loops), `neg` sentinel elsewhere. Assumes at most one
    edge per (src, dst) within the selection (duplicates would be summed)."""
    src, dst = edge_index[0], edge_index[1]
    keep = (sel & (src != dst)).astype(jnp.float32)              # remove_self_loops
    dense = jnp.zeros((n_pad, n_pad), jnp.float32).at[dst, src].add(vals * keep)
    cnt = jnp.zeros((n_pad, n_pad), jnp.float32).at[dst, src].add(keep)
    deg = jnp.zeros((n_pad,), jnp.float32).at[dst].add(keep)
    vsum = jnp.zeros((n_pad,), jnp.float32).at[dst].add(vals * keep)
    vmean = jnp.where(deg > 0, vsum / jnp.maximum(deg, 1.0), 0.0)
    ids = jnp.arange(n_pad)
    valid = ids < n
    has_edge = cnt > 0
    has_edge = has_edge.at[ids, ids].set(valid)                   # add_self_loops
    dense = dense.at[ids, ids].set(jnp.where(valid, vmean, 0.0))  # fill_value='mean'
    return jnp.where(has_edge, dense, jnp.float32(neg))


def _fold_gat_params(lin_w, att_src, att_dst, att_edge, lin_edge_w, bias, *,
                     heads, head_dim):
    """Algebraically fold PyG GATConv attention params."""
    fin = lin_w.shape[1]
    w = jnp.asarray(lin_w, jnp.float32).T                            # [Fin, H*C]
    wr = w.reshape(fin, heads, head_dim)
    a_src_t = jnp.einsum('fhc,hc->hf', wr, jnp.asarray(att_src)[0])  # [H, Fin]
    a_dst = jnp.einsum('fhc,hc->fh', wr, jnp.asarray(att_dst)[0])    # [Fin, H]
    we = jnp.asarray(lin_edge_w, jnp.float32).reshape(heads, head_dim, -1)
    v = jnp.einsum('hcd,hc->dh', we, jnp.asarray(att_edge)[0])       # [edge_dim, H]
    return w, a_src_t, a_dst, v, jnp.asarray(bias, jnp.float32)


def pathway_gnn_forward(x, edge_index, edge_attr, params, *, hidden_channels=16,
                        out_channels=256, block_dst=512, return_node_features=False):
    """Eval-mode PathwayGNN forward for a single graph (data.batch = None)."""
    x = jnp.asarray(x, jnp.float32)
    edge_index = jnp.asarray(edge_index, jnp.int32)
    edge_attr = jnp.asarray(edge_attr, jnp.float32)
    n, fin = x.shape
    heads1 = 2
    hc = heads1 * hidden_channels                           # 32
    n_pad = max(128, _round_up(n, 128))                     # lane-dense src axis
    x_pad = jnp.zeros((n_pad, fin), jnp.float32).at[:n].set(x)

    col0 = edge_attr[:, 0]
    masks = [col0 > 0.5, col0 < -0.5, (~(col0 > 0.5)) & (~(col0 < -0.5))]
    flags = jnp.stack([jnp.any(m) for m in masks]).astype(jnp.float32)

    # --- layer 1: fold params, precompute per-node projections, densify ------
    col_head = jnp.arange(hc) // hidden_channels
    e1 = edge_attr[:, 1]                                    # edge_dim - 1 == 1 channel
    eat_l, xpm_l, asrc_l, adst_l, v1_l, b1_l = [], [], [], [], [], []
    for p, m in zip(params['conv1'], masks):
        w, a_src_t, a_dst, v, b = _fold_gat_params(*p, heads=heads1,
                                                   head_dim=hidden_channels)
        xp = jnp.dot(x_pad, w)                                          # [N_pad, 32]
        xpm_l.append(jnp.stack([xp * (col_head == h) for h in range(heads1)]))
        asrc_l.append(jnp.dot(a_src_t, x_pad.T))                        # [2, N_pad]
        adst_l.append(jnp.dot(x_pad, a_dst))                            # [N_pad, 2]
        v1_l.append(v[0])                                               # [2]
        b1_l.append(b.reshape(1, hc))
        eat_l.append(_dense_masked_channel(edge_index, e1, m, n, n_pad))
    eat1 = jnp.stack(eat_l)          # [3, N_pad, N_pad]  (the only big layer-1 stream)
    xpm1 = jnp.stack(xpm_l)          # [3, 2, N_pad, 32]
    asrc1 = jnp.stack(asrc_l)        # [3, 2, N_pad]
    adst1 = jnp.stack(adst_l)        # [3, N_pad, 2]
    v1 = jnp.stack(v1_l)             # [3, 2]  (SMEM)
    b1 = jnp.stack(b1_l)             # [3, 1, 32]

    # --- layer 2: fold params; projection is fused into the layer-1 kernel ---
    w2, a_src2, a_dst2, v2, b2 = _fold_gat_params(*params['conv2'], heads=1,
                                                  head_dim=out_channels)
    a2 = jnp.zeros((hc, 128), jnp.float32)
    a2 = a2.at[:, 0].set(a_src2[0]).at[:, 1].set(a_dst2[:, 0])
    e2 = jnp.dot(edge_attr, v2[:, 0])                       # folded per-edge scalar bias
    bias2 = _dense_masked_channel(edge_index, e2,
                                  jnp.ones((edge_attr.shape[0],), bool), n, n_pad)

    n_arr = jnp.array([n], jnp.int32)
    td = _choose_block_dst(n_pad, hc, block_dst, out_channels)

    xp2, attn2 = _gat_layer1(n_arr, v1, flags, eat1, asrc1, adst1, xpm1, b1,
                             w2, a2, td=td)
    h2 = _gat_layer2(n_arr, bias2, attn2[:, 0:1].T, attn2[:, 1:2], xp2,
                     b2.reshape(1, out_channels), td=td)

    nodes = h2[:n]
    if return_node_features:
        return nodes
    # TODO(synk): batched graphs via data.batch not supported; single-graph mean pool.
    return jnp.mean(nodes, axis=0, keepdims=True)


# ---------------------------------------------------------------------------
# Parameter construction + independent NumPy reference (PyG GATConv semantics)
# ---------------------------------------------------------------------------
def _make_params(key, in_ch, hid, out_ch, edge_dim):
    keys = iter(jax.random.split(key, 32))

    def gat(fin, c, heads, ed):
        lin_w = jax.random.normal(next(keys), (heads * c, fin), jnp.float32) / np.sqrt(fin)
        att_src = jax.random.normal(next(keys), (1, heads, c), jnp.float32) * 0.2
        att_dst = jax.random.normal(next(keys), (1, heads, c), jnp.float32) * 0.2
        att_edge = jax.random.normal(next(keys), (1, heads, c), jnp.float32) * 0.2
        lin_edge_w = jax.random.normal(next(keys), (heads * c, ed), jnp.float32) / np.sqrt(ed)
        bias = jax.random.normal(next(keys), (heads * c,), jnp.float32) * 0.1
        return (lin_w, att_src, att_dst, att_edge, lin_edge_w, bias)

    return {'conv1': [gat(in_ch, hid, 2, edge_dim - 1) for _ in range(3)],
            'conv2': gat(2 * hid, out_ch, 1, edge_dim)}


def _gatconv_ref(x, edge_index, edge_attr, p, heads, out_ch):
    lin_w, att_src, att_dst, att_edge, lin_edge_w, bias = [
        np.asarray(t, np.float64) for t in p]
    x = np.asarray(x, np.float64)
    n = x.shape[0]
    ei = np.asarray(edge_index)
    ea = np.asarray(edge_attr, np.float64)
    keep = ei[0] != ei[1]                                   # remove_self_loops
    ei, ea = ei[:, keep], ea[keep]
    d = ea.shape[1]
    loop = np.zeros((n, d)); cnt = np.zeros(n)
    for e in range(ei.shape[1]):                            # add_self_loops(fill='mean')
        loop[ei[1, e]] += ea[e]; cnt[ei[1, e]] += 1
    loop = loop / np.maximum(cnt, 1.0)[:, None]
    ei = np.concatenate([ei, np.stack([np.arange(n), np.arange(n)])], axis=1)
    ea = np.concatenate([ea, loop], axis=0)
    xp = (x @ lin_w.T).reshape(n, heads, out_ch)
    a_src = (xp * att_src[0]).sum(-1)
    a_dst = (xp * att_dst[0]).sum(-1)
    ef = (ea @ lin_edge_w.T).reshape(-1, heads, out_ch)
    a_edge = (ef * att_edge[0]).sum(-1)
    src, dst = ei[0], ei[1]
    lg = a_src[src] + a_dst[dst] + a_edge
    lg = np.where(lg > 0, lg, 0.2 * lg)
    out = np.zeros((n, heads, out_ch))
    for i in range(n):
        sel = np.nonzero(dst == i)[0]
        if sel.size == 0:
            continue
        l = lg[sel] - lg[sel].max(axis=0, keepdims=True)
        pr = np.exp(l); pr = pr / pr.sum(axis=0, keepdims=True)
        out[i] = np.einsum('kh,khc->hc', pr, xp[src[sel]])
    return out.reshape(n, heads * out_ch) + bias


def _pathway_gnn_ref(x, edge_index, edge_attr, params):
    x = np.asarray(x); ei = np.asarray(edge_index); ea = np.asarray(edge_attr)
    act, inh = ea[:, 0] > 0.5, ea[:, 0] < -0.5
    und = (~act) & (~inh)
    x_agg = None
    for p, m in zip(params['conv1'], [act, inh, und]):
        if m.any():
            o = _gatconv_ref(x, ei[:, m], ea[m, 1:], p, heads=2, out_ch=16)
            x_agg = o if x_agg is None else x_agg + o
    if x_agg is None:
        x_agg = np.zeros((x.shape[0], 32))
    h = np.maximum(x_agg, 0.0)                              # ReLU; eval dropout = id
    nodes = _gatconv_ref(h, ei, ea, params['conv2'], heads=1, out_ch=256)
    return nodes, nodes.mean(axis=0, keepdims=True)


# ---------------------------------------------------------------------------
if __name__ == "__main__":
    N, E = 19, 40
    IN_CH, HID, OUT_CH, EDGE_DIM = 4, 16, 256, 2

    key = jax.random.PRNGKey(0)
    kp, kg = jax.random.split(key)
    params = _make_params(kp, IN_CH, HID, OUT_CH, EDGE_DIM)

    kg = jax.random.split(kg, 4)
    # Unique directed edges without self loops.
    pair = jax.random.choice(kg[0], N * (N - 1), (E,), replace=False)
    s = pair // (N - 1)
    r = pair % (N - 1)
    d = r + (r >= s)
    edge_index = jnp.stack([s, d]).astype(jnp.int32)
    etype = jax.random.randint(kg[1], (E,), 0, 3)
    col0 = jnp.take(jnp.array([1.0, -1.0, 0.0], jnp.float32), etype)  # act / inh / undef
    col1 = jax.random.uniform(kg[2], (E,), minval=-1.0, maxval=1.0)
    edge_attr = jnp.stack([col0, col1], axis=1)
    x = jax.random.normal(kg[3], (N, IN_CH), jnp.float32)

    # The dense formulation assumes at most one edge per (src, dst) pair.
    ei_np = np.asarray(edge_index)
    assert len(set(map(tuple, ei_np.T.tolist()))) == E, "duplicate (src,dst) edges"

    pooled = pathway_gnn_forward(x, edge_index, edge_attr, params)
    nodes = pathway_gnn_forward(x, edge_index, edge_attr, params,
                                return_node_features=True)
    pooled, nodes = jax.block_until_ready((pooled, nodes))

    ref_nodes, ref_pooled = _pathway_gnn_ref(x, edge_index, edge_attr, params)
    assert pooled.shape == (1, OUT_CH)
    assert nodes.shape == (N, OUT_CH)
    # Tolerance reflects the deliberate bf16 MXU path (xp2 storage + alpha@xp2
    # aggregation); all attention-logit math stays in f32.
    np.testing.assert_allclose(np.asarray(nodes), ref_nodes, rtol=1e-2, atol=2e-2)
    np.testing.assert_allclose(np.asarray(pooled), ref_pooled, rtol=1e-2, atol=2e-2)

    print("KERNEL_OK")
</pallas_src>

<mosaic_0001>
module attributes {stable_mosaic.version = 11 : i64} {
  func.func @kernel(%arg0: i32, %arg1: memref<1xi32, #tpu.memory_space<smem>>, %arg2: memref<3x2xf32, #tpu.memory_space<smem>>, %arg3: memref<3xf32, #tpu.memory_space<smem>>, %arg4: memref<3x64x128xf32, #tpu.memory_space<vmem>>, %arg5: memref<3x2x128xf32, #tpu.memory_space<vmem>>, %arg6: memref<3x64x2xf32, #tpu.memory_space<vmem>>, %arg7: memref<3x2x128x32xf32, #tpu.memory_space<vmem>>, %arg8: memref<3x1x32xf32, #tpu.memory_space<vmem>>, %arg9: memref<32x256xf32, #tpu.memory_space<vmem>>, %arg10: memref<32x128xf32, #tpu.memory_space<vmem>>, %arg11: memref<64x256xbf16, #tpu.memory_space<vmem>>, %arg12: memref<64x128xf32, #tpu.memory_space<vmem>>) attributes {dimension_semantics = [#tpu.dimension_semantics<parallel>], iteration_bounds = array<i64: 2>, scalar_prefetch = 0 : i64, scratch_operands = 0 : i64, tpu.core_type = #tpu.core_type<tc>, window_params = [{transform_indices = @transform_0, window_bounds = array<i64: 1>}, {transform_indices = @transform_1, window_bounds = array<i64: 3, 2>}, {transform_indices = @transform_2, window_bounds = array<i64: 3>}, {transform_indices = @transform_3, window_bounds = array<i64: 3, 64, 128>}, {pipeline_mode = #tpu.pipeline_mode<synchronous>, transform_indices = @transform_4, window_bounds = array<i64: 3, 2, 128>}, {transform_indices = @transform_5, window_bounds = array<i64: 3, 64, 2>}, {pipeline_mode = #tpu.pipeline_mode<synchronous>, transform_indices = @transform_6, window_bounds = array<i64: 3, 2, 128, 32>}, {pipeline_mode = #tpu.pipeline_mode<synchronous>, transform_indices = @transform_7, window_bounds = array<i64: 3, 1, 32>}, {pipeline_mode = #tpu.pipeline_mode<synchronous>, transform_indices = @transform_8, window_bounds = array<i64: 32, 256>}, {pipeline_mode = #tpu.pipeline_mode<synchronous>, transform_indices = @transform_9, window_bounds = array<i64: 32, 128>}, {transform_indices = @transform_10, window_bounds = array<i64: 64, 256>}, {transform_indices = @transform_11, window_bounds = array<i64: 64, 128>}]} {
    %c64_i32 = arith.constant 64 : i32
    %0 = arith.muli %arg0, %c64_i32 : i32
    %1 = tpu.iota {dimensions = array<i32: 0>} : vector<64x1xi32>
    %2 = vector.broadcast %0 : i32 to vector<64x1xi32>
    %3 = arith.addi %2, %1 : vector<64x1xi32>
    %c0 = arith.constant 0 : index
    %4 = memref.load %arg1[%c0] : memref<1xi32, #tpu.memory_space<smem>>
    %5 = vector.broadcast %4 : i32 to vector<64x1xi32>
    %6 = arith.cmpi slt, %3, %5 : vector<64x1xi32>
    %7 = arith.extui %6 : vector<64x1xi1> to vector<64x1xi32>
    %8 = arith.sitofp %7 : vector<64x1xi32> to vector<64x1xf32>
    %cst = arith.constant 0.000000e+00 : f32
    %9 = vector.broadcast %cst : f32 to vector<64x32xf32>
    %c0_0 = arith.constant 0 : index
    %c0_1 = arith.constant 0 : index
    %c0_2 = arith.constant 0 : index
    %10 = vector.load %arg4[%c0_0, %c0_1, %c0_2] : memref<3x64x128xf32, #tpu.memory_space<vmem>>, vector<1x64x128xf32>
    %11 = vector.shape_cast %10 : vector<1x64x128xf32> to vector<64x128xf32>
    %cst_3 = arith.constant -1.000000e+29 : f32
    %12 = vector.broadcast %cst_3 : f32 to vector<64x128xf32>
    %13 = arith.cmpf ogt, %11, %12 : vector<64x128xf32>
    %cst_4 = arith.constant 0.000000e+00 : f32
    %cst_5 = arith.constant -1.000000e+30 : f32
    %14 = vector.broadcast %cst_4 : f32 to vector<64x128xf32>
    %15 = vector.broadcast %cst_5 : f32 to vector<64x128xf32>
    %16 = arith.select %13, %14, %15 : vector<64x128xi1>, vector<64x128xf32>
    %cst_6 = arith.constant 0.000000e+00 : f32
    %17 = vector.broadcast %cst_6 : f32 to vector<64x128xf32>
    %18 = arith.select %13, %11, %17 : vector<64x128xi1>, vector<64x128xf32>
    %c0_7 = arith.constant 0 : index
    %c0_8 = arith.constant 0 : index
    %c0_9 = arith.constant 0 : index
    %19 = vector.load %arg5[%c0_7, %c0_8, %c0_9] : memref<3x2x128xf32, #tpu.memory_space<vmem>>, vector<1x2x128xf32>
    %20 = vector.shape_cast %19 : vector<1x2x128xf32> to vector<2x128xf32>
    %c0_10 = arith.constant 0 : index
    %c0_11 = arith.constant 0 : index
    %c0_12 = arith.constant 0 : index
    %21 = vector.load %arg6[%c0_10, %c0_11, %c0_12] : memref<3x64x2xf32, #tpu.memory_space<vmem>>, vector<1x64x2xf32>
    %22 = vector.shape_cast %21 : vector<1x64x2xf32> to vector<64x2xf32>
    %cst_13 = arith.constant 0.000000e+00 : f32
    %23 = vector.broadcast %cst_13 : f32 to vector<64x32xf32>
    %24 = vector.extract_strided_slice %22 {offsets = [0, 0], sizes = [64, 1], strides = [1, 1]} : vector<64x2xf32> to vector<64x1xf32>
    %25 = vector.extract_strided_slice %20 {offsets = [0, 0], sizes = [1, 128], strides = [1, 1]} : vector<2x128xf32> to vector<1x128xf32>
    %26 = vector.broadcast %24 : vector<64x1xf32> to vector<64x128xf32>
    %27 = vector.broadcast %25 : vector<1x128xf32> to vector<64x128xf32>
    %28 = arith.addf %26, %27 : vector<64x128xf32>
    %c0_14 = arith.constant 0 : index
    %c0_15 = arith.constant 0 : index
    %29 = memref.load %arg2[%c0_14, %c0_15] : memref<3x2xf32, #tpu.memory_space<smem>>
    %30 = vector.broadcast %29 : f32 to vector<64x128xf32>
    %31 = arith.mulf %30, %18 : vector<64x128xf32>
    %32 = arith.addf %28, %31 : vector<64x128xf32>
    %cst_16 = arith.constant 0.000000e+00 : f32
    %33 = vector.broadcast %cst_16 : f32 to vector<64x128xf32>
    %34 = arith.cmpf ogt, %32, %33 : vector<64x128xf32>
    %cst_17 = arith.constant 2.000000e-01 : f32
    %35 = vector.broadcast %cst_17 : f32 to vector<64x128xf32>
    %36 = arith.mulf %35, %32 : vector<64x128xf32>
    %37 = arith.select %34, %32, %36 : vector<64x128xi1>, vector<64x128xf32>
    %38 = arith.addf %37, %16 : vector<64x128xf32>
    %cst_18 = arith.constant dense<0xFF800000> : vector<64xf32>
    %39 = vector.multi_reduction <maximumf>, %38, %cst_18 [1] : vector<64x128xf32> to vector<64xf32>
    %40 = vector.shape_cast %39 : vector<64xf32> to vector<64x1xf32>
    %41 = vector.broadcast %40 : vector<64x1xf32> to vector<64x128xf32>
    %42 = arith.subf %38, %41 : vector<64x128xf32>
    %43 = math.exp %42 : vector<64x128xf32>
    %cst_19 = arith.constant dense<0.000000e+00> : vector<64xf32>
    %44 = vector.multi_reduction <add>, %43, %cst_19 [1] : vector<64x128xf32> to vector<64xf32>
    %45 = vector.shape_cast %44 : vector<64xf32> to vector<64x1xf32>
    %46 = vector.broadcast %45 : vector<64x1xf32> to vector<64x128xf32>
    %47 = arith.divf %43, %46 : vector<64x128xf32>
    %c0_20 = arith.constant 0 : index
    %c0_21 = arith.constant 0 : index
    %c0_22 = arith.constant 0 : index
    %c0_23 = arith.constant 0 : index
    %48 = vector.load %arg7[%c0_20, %c0_21, %c0_22, %c0_23] : memref<3x2x128x32xf32, #tpu.memory_space<vmem>>, vector<1x1x128x32xf32>
    %49 = vector.shape_cast %48 : vector<1x1x128x32xf32> to vector<128x32xf32>
    %cst_24 = arith.constant dense<0.000000e+00> : vector<64x32xf32>
    %50 = tpu.matmul %47, %49, %cst_24 {dimension_numbers = #tpu.dot_dimension_numbers<[1], [0], [0], [1], [0, 0, 1, 1], [], []>} : vector<64x128xf32>, vector<128x32xf32>, vector<64x32xf32> -> vector<64x32xf32>
    %51 = arith.addf %23, %50 : vector<64x32xf32>
    %52 = vector.extract_strided_slice %22 {offsets = [0, 1], sizes = [64, 1], strides = [1, 1]} : vector<64x2xf32> to vector<64x1xf32>
    %53 = vector.extract_strided_slice %20 {offsets = [1, 0], sizes = [1, 128], strides = [1, 1]} : vector<2x128xf32> to vector<1x128xf32>
    %54 = vector.broadcast %52 : vector<64x1xf32> to vector<64x128xf32>
    %55 = vector.broadcast %53 : vector<1x128xf32> to vector<64x128xf32>
    %56 = arith.addf %54, %55 : vector<64x128xf32>
    %c0_25 = arith.constant 0 : index
    %c1 = arith.constant 1 : index
    %57 = memref.load %arg2[%c0_25, %c1] : memref<3x2xf32, #tpu.memory_space<smem>>
    %58 = vector.broadcast %57 : f32 to vector<64x128xf32>
    %59 = arith.mulf %58, %18 : vector<64x128xf32>
    %60 = arith.addf %56, %59 : vector<64x128xf32>
    %cst_26 = arith.constant 0.000000e+00 : f32
    %61 = vector.broadcast %cst_26 : f32 to vector<64x128xf32>
    %62 = arith.cmpf ogt, %60, %61 : vector<64x128xf32>
    %cst_27 = arith.constant 2.000000e-01 : f32
    %63 = vector.broadcast %cst_27 : f32 to vector<64x128xf32>
    %64 = arith.mulf %63, %60 : vector<64x128xf32>
    %65 = arith.select %62, %60, %64 : vector<64x128xi1>, vector<64x128xf32>
    %66 = arith.addf %65, %16 : vector<64x128xf32>
    %cst_28 = arith.constant dense<0xFF800000> : vector<64xf32>
    %67 = vector.multi_reduction <maximumf>, %66, %cst_28 [1] : vector<64x128xf32> to vector<64xf32>
    %68 = vector.shape_cast %67 : vector<64xf32> to vector<64x1xf32>
    %69 = vector.broadcast %68 : vector<64x1xf32> to vector<64x128xf32>
    %70 = arith.subf %66, %69 : vector<64x128xf32>
    %71 = math.exp %70 : vector<64x128xf32>
    %cst_29 = arith.constant dense<0.000000e+00> : vector<64xf32>
    %72 = vector.multi_reduction <add>, %71, %cst_29 [1] : vector<64x128xf32> to vector<64xf32>
    %73 = vector.shape_cast %72 : vector<64xf32> to vector<64x1xf32>
    %74 = vector.broadcast %73 : vector<64x1xf32> to vector<64x128xf32>
    %75 = arith.divf %71, %74 : vector<64x128xf32>
    %c0_30 = arith.constant 0 : index
    %c1_31 = arith.constant 1 : index
    %c0_32 = arith.constant 0 : index
    %c0_33 = arith.constant 0 : index
    %76 = vector.load %arg7[%c0_30, %c1_31, %c0_32, %c0_33] : memref<3x2x128x32xf32, #tpu.memory_space<vmem>>, vector<1x1x128x32xf32>
    %77 = vector.shape_cast %76 : vector<1x1x128x32xf32> to vector<128x32xf32>
    %cst_34 = arith.constant dense<0.000000e+00> : vector<64x32xf32>
    %78 = tpu.matmul %75, %77, %cst_34 {dimension_numbers = #tpu.dot_dimension_numbers<[1], [0], [0], [1], [0, 0, 1, 1], [], []>} : vector<64x128xf32>, vector<128x32xf32>, vector<64x32xf32> -> vector<64x32xf32>
    %79 = arith.addf %51, %78 : vector<64x32xf32>
    %c0_35 = arith.constant 0 : index
    %80 = memref.load %arg3[%c0_35] : memref<3xf32, #tpu.memory_space<smem>>
    %c0_36 = arith.constant 0 : index
    %c0_37 = arith.constant 0 : index
    %c0_38 = arith.constant 0 : index
    %81 = vector.load %arg8[%c0_36, %c0_37, %c0_38] : memref<3x1x32xf32, #tpu.memory_space<vmem>>, vector<1x1x32xf32>
    %82 = vector.shape_cast %81 : vector<1x1x32xf32> to vector<1x32xf32>
    %83 = vector.broadcast %82 : vector<1x32xf32> to vector<64x32xf32>
    %84 = arith.addf %79, %83 : vector<64x32xf32>
    %85 = vector.broadcast %80 : f32 to vector<64x32xf32>
    %86 = arith.mulf %85, %84 : vector<64x32xf32>
    %87 = arith.addf %9, %86 : vector<64x32xf32>
    %c1_39 = arith.constant 1 : index
    %c0_40 = arith.constant 0 : index
    %c0_41 = arith.constant 0 : index
    %88 = vector.load %arg4[%c1_39, %c0_40, %c0_41] : memref<3x64x128xf32, #tpu.memory_space<vmem>>, vector<1x64x128xf32>
    %89 = vector.shape_cast %88 : vector<1x64x128xf32> to vector<64x128xf32>
    %cst_42 = arith.constant -1.000000e+29 : f32
    %90 = vector.broadcast %cst_42 : f32 to vector<64x128xf32>
    %91 = arith.cmpf ogt, %89, %90 : vector<64x128xf32>
    %cst_43 = arith.constant 0.000000e+00 : f32
    %cst_44 = arith.constant -1.000000e+30 : f32
    %92 = vector.broadcast %cst_43 : f32 to vector<64x128xf32>
    %93 = vector.broadcast %cst_44 : f32 to vector<64x128xf32>
    %94 = arith.select %91, %92, %93 : vector<64x128xi1>, vector<64x128xf32>
    %cst_45 = arith.constant 0.000000e+00 : f32
    %95 = vector.broadcast %cst_45 : f32 to vector<64x128xf32>
    %96 = arith.select %91, %89, %95 : vector<64x128xi1>, vector<64x128xf32>
    %c1_46 = arith.constant 1 : index
    %c0_47 = arith.constant 0 : index
    %c0_48 = arith.constant 0 : index
    %97 = vector.load %arg5[%c1_46, %c0_47, %c0_48] : memref<3x2x128xf32, #tpu.memory_space<vmem>>, vector<1x2x128xf32>
    %98 = vector.shape_cast %97 : vector<1x2x128xf32> to vector<2x128xf32>
    %c1_49 = arith.constant 1 : index
    %c0_50 = arith.constant 0 : index
    %c0_51 = arith.constant 0 : index
    %99 = vector.load %arg6[%c1_49, %c0_50, %c0_51] : memref<3x64x2xf32, #tpu.memory_space<vmem>>, vector<1x64x2xf32>
    %100 = vector.shape_cast %99 : vector<1x64x2xf32> to vector<64x2xf32>
    %cst_52 = arith.constant 0.000000e+00 : f32
    %101 = vector.broadcast %cst_52 : f32 to vector<64x32xf32>
    %102 = vector.extract_strided_slice %100 {offsets = [0, 0], sizes = [64, 1], strides = [1, 1]} : vector<64x2xf32> to vector<64x1xf32>
    %103 = vector.extract_strided_slice %98 {offsets = [0, 0], sizes = [1, 128], strides = [1, 1]} : vector<2x128xf32> to vector<1x128xf32>
    %104 = vector.broadcast %102 : vector<64x1xf32> to vector<64x128xf32>
    %105 = vector.broadcast %103 : vector<1x128xf32> to vector<64x128xf32>
    %106 = arith.addf %104, %105 : vector<64x128xf32>
    %c1_53 = arith.constant 1 : index
    %c0_54 = arith.constant 0 : index
    %107 = memref.load %arg2[%c1_53, %c0_54] : memref<3x2xf32, #tpu.memory_space<smem>>
    %108 = vector.broadcast %107 : f32 to vector<64x128xf32>
    %109 = arith.mulf %108, %96 : vector<64x128xf32>
    %110 = arith.addf %106, %109 : vector<64x128xf32>
    %cst_55 = arith.constant 0.000000e+00 : f32
    %111 = vector.broadcast %cst_55 : f32 to vector<64x128xf32>
    %112 = arith.cmpf ogt, %110, %111 : vector<64x128xf32>
    %cst_56 = arith.constant 2.000000e-01 : f32
    %113 = vector.broadcast %cst_56 : f32 to vector<64x128xf32>
    %114 = arith.mulf %113, %110 : vector<64x128xf32>
    %115 = arith.select %112, %110, %114 : vector<64x128xi1>, vector<64x128xf32>
    %116 = arith.addf %115, %94 : vector<64x128xf32>
    %cst_57 = arith.constant dense<0xFF800000> : vector<64xf32>
    %117 = vector.multi_reduction <maximumf>, %116, %cst_57 [1] : vector<64x128xf32> to vector<64xf32>
    %118 = vector.shape_cast %117 : vector<64xf32> to vector<64x1xf32>
    %119 = vector.broadcast %118 : vector<64x1xf32> to vector<64x128xf32>
    %120 = arith.subf %116, %119 : vector<64x128xf32>
    %121 = math.exp %120 : vector<64x128xf32>
    %cst_58 = arith.constant dense<0.000000e+00> : vector<64xf32>
    %122 = vector.multi_reduction <add>, %121, %cst_58 [1] : vector<64x128xf32> to vector<64xf32>
    %123 = vector.shape_cast %122 : vector<64xf32> to vector<64x1xf32>
    %124 = vector.broadcast %123 : vector<64x1xf32> to vector<64x128xf32>
    %125 = arith.divf %121, %124 : vector<64x128xf32>
    %c1_59 = arith.constant 1 : index
    %c0_60 = arith.constant 0 : index
    %c0_61 = arith.constant 0 : index
    %c0_62 = arith.constant 0 : index
    %126 = vector.load %arg7[%c1_59, %c0_60, %c0_61, %c0_62] : memref<3x2x128x32xf32, #tpu.memory_space<vmem>>, vector<1x1x128x32xf32>
    %127 = vector.shape_cast %126 : vector<1x1x128x32xf32> to vector<128x32xf32>
    %cst_63 = arith.constant dense<0.000000e+00> : vector<64x32xf32>
    %128 = tpu.matmul %125, %127, %cst_63 {dimension_numbers = #tpu.dot_dimension_numbers<[1], [0], [0], [1], [0, 0, 1, 1], [], []>} : vector<64x128xf32>, vector<128x32xf32>, vector<64x32xf32> -> vector<64x32xf32>
    %129 = arith.addf %101, %128 : vector<64x32xf32>
    %130 = vector.extract_strided_slice %100 {offsets = [0, 1], sizes = [64, 1], strides = [1, 1]} : vector<64x2xf32> to vector<64x1xf32>
    %131 = vector.extract_strided_slice %98 {offsets = [1, 0], sizes = [1, 128], strides = [1, 1]} : vector<2x128xf32> to vector<1x128xf32>
    %132 = vector.broadcast %130 : vector<64x1xf32> to vector<64x128xf32>
    %133 = vector.broadcast %131 : vector<1x128xf32> to vector<64x128xf32>
    %134 = arith.addf %132, %133 : vector<64x128xf32>
    %c1_64 = arith.constant 1 : index
    %c1_65 = arith.constant 1 : index
    %135 = memref.load %arg2[%c1_64, %c1_65] : memref<3x2xf32, #tpu.memory_space<smem>>
    %136 = vector.broadcast %135 : f32 to vector<64x128xf32>
    %137 = arith.mulf %136, %96 : vector<64x128xf32>
    %138 = arith.addf %134, %137 : vector<64x128xf32>
    %cst_66 = arith.constant 0.000000e+00 : f32
    %139 = vector.broadcast %cst_66 : f32 to vector<64x128xf32>
    %140 = arith.cmpf ogt, %138, %139 : vector<64x128xf32>
    %cst_67 = arith.constant 2.000000e-01 : f32
    %141 = vector.broadcast %cst_67 : f32 to vector<64x128xf32>
    %142 = arith.mulf %141, %138 : vector<64x128xf32>
    %143 = arith.select %140, %138, %142 : vector<64x128xi1>, vector<64x128xf32>
    %144 = arith.addf %143, %94 : vector<64x128xf32>
    %cst_68 = arith.constant dense<0xFF800000> : vector<64xf32>
    %145 = vector.multi_reduction <maximumf>, %144, %cst_68 [1] : vector<64x128xf32> to vector<64xf32>
    %146 = vector.shape_cast %145 : vector<64xf32> to vector<64x1xf32>
    %147 = vector.broadcast %146 : vector<64x1xf32> to vector<64x128xf32>
    %148 = arith.subf %144, %147 : vector<64x128xf32>
    %149 = math.exp %148 : vector<64x128xf32>
    %cst_69 = arith.constant dense<0.000000e+00> : vector<64xf32>
    %150 = vector.multi_reduction <add>, %149, %cst_69 [1] : vector<64x128xf32> to vector<64xf32>
    %151 = vector.shape_cast %150 : vector<64xf32> to vector<64x1xf32>
    %152 = vector.broadcast %151 : vector<64x1xf32> to vector<64x128xf32>
    %153 = arith.divf %149, %152 : vector<64x128xf32>
    %c1_70 = arith.constant 1 : index
    %c1_71 = arith.constant 1 : index
    %c0_72 = arith.constant 0 : index
    %c0_73 = arith.constant 0 : index
    %154 = vector.load %arg7[%c1_70, %c1_71, %c0_72, %c0_73] : memref<3x2x128x32xf32, #tpu.memory_space<vmem>>, vector<1x1x128x32xf32>
    %155 = vector.shape_cast %154 : vector<1x1x128x32xf32> to vector<128x32xf32>
    %cst_74 = arith.constant dense<0.000000e+00> : vector<64x32xf32>
    %156 = tpu.matmul %153, %155, %cst_74 {dimension_numbers = #tpu.dot_dimension_numbers<[1], [0], [0], [1], [0, 0, 1, 1], [], []>} : vector<64x128xf32>, vector<128x32xf32>, vector<64x32xf32> -> vector<64x32xf32>
    %157 = arith.addf %129, %156 : vector<64x32xf32>
    %c1_75 = arith.constant 1 : index
    %158 = memref.load %arg3[%c1_75] : memref<3xf32, #tpu.memory_space<smem>>
    %c1_76 = arith.constant 1 : index
    %c0_77 = arith.constant 0 : index
    %c0_78 = arith.constant 0 : index
    %159 = vector.load %arg8[%c1_76, %c0_77, %c0_78] : memref<3x1x32xf32, #tpu.memory_space<vmem>>, vector<1x1x32xf32>
    %160 = vector.shape_cast %159 : vector<1x1x32xf32> to vector<1x32xf32>
    %161 = vector.broadcast %160 : vector<1x32xf32> to vector<64x32xf32>
    %162 = arith.addf %157, %161 : vector<64x32xf32>
    %163 = vector.broadcast %158 : f32 to vector<64x32xf32>
    %164 = arith.mulf %163, %162 : vector<64x32xf32>
    %165 = arith.addf %87, %164 : vector<64x32xf32>
    %c2 = arith.constant 2 : index
    %c0_79 = arith.constant 0 : index
    %c0_80 = arith.constant 0 : index
    %166 = vector.load %arg4[%c2, %c0_79, %c0_80] : memref<3x64x128xf32, #tpu.memory_space<vmem>>, vector<1x64x128xf32>
    %167 = vector.shape_cast %166 : vector<1x64x128xf32> to vector<64x128xf32>
    %cst_81 = arith.constant -1.000000e+29 : f32
    %168 = vector.broadcast %cst_81 : f32 to vector<64x128xf32>
    %169 = arith.cmpf ogt, %167, %168 : vector<64x128xf32>
    %cst_82 = arith.constant 0.000000e+00 : f32
    %cst_83 = arith.constant -1.000000e+30 : f32
    %170 = vector.broadcast %cst_82 : f32 to vector<64x128xf32>
    %171 = vector.broadcast %cst_83 : f32 to vector<64x128xf32>
    %172 = arith.select %169, %170, %171 : vector<64x128xi1>, vector<64x128xf32>
    %cst_84 = arith.constant 0.000000e+00 : f32
    %173 = vector.broadcast %cst_84 : f32 to vector<64x128xf32>
    %174 = arith.select %169, %167, %173 : vector<64x128xi1>, vector<64x128xf32>
    %c2_85 = arith.constant 2 : index
    %c0_86 = arith.constant 0 : index
    %c0_87 = arith.constant 0 : index
    %175 = vector.load %arg5[%c2_85, %c0_86, %c0_87] : memref<3x2x128xf32, #tpu.memory_space<vmem>>, vector<1x2x128xf32>
    %176 = vector.shape_cast %175 : vector<1x2x128xf32> to vector<2x128xf32>
    %c2_88 = arith.constant 2 : index
    %c0_89 = arith.constant 0 : index
    %c0_90 = arith.constant 0 : index
    %177 = vector.load %arg6[%c2_88, %c0_89, %c0_90] : memref<3x64x2xf32, #tpu.memory_space<vmem>>, vector<1x64x2xf32>
    %178 = vector.shape_cast %177 : vector<1x64x2xf32> to vector<64x2xf32>
    %cst_91 = arith.constant 0.000000e+00 : f32
    %179 = vector.broadcast %cst_91 : f32 to vector<64x32xf32>
    %180 = vector.extract_strided_slice %178 {offsets = [0, 0], sizes = [64, 1], strides = [1, 1]} : vector<64x2xf32> to vector<64x1xf32>
    %181 = vector.extract_strided_slice %176 {offsets = [0, 0], sizes = [1, 128], strides = [1, 1]} : vector<2x128xf32> to vector<1x128xf32>
    %182 = vector.broadcast %180 : vector<64x1xf32> to vector<64x128xf32>
    %183 = vector.broadcast %181 : vector<1x128xf32> to vector<64x128xf32>
    %184 = arith.addf %182, %183 : vector<64x128xf32>
    %c2_92 = arith.constant 2 : index
    %c0_93 = arith.constant 0 : index
    %185 = memref.load %arg2[%c2_92, %c0_93] : memref<3x2xf32, #tpu.memory_space<smem>>
    %186 = vector.broadcast %185 : f32 to vector<64x128xf32>
    %187 = arith.mulf %186, %174 : vector<64x128xf32>
    %188 = arith.addf %184, %187 : vector<64x128xf32>
    %cst_94 = arith.constant 0.000000e+00 : f32
    %189 = vector.broadcast %cst_94 : f32 to vector<64x128xf32>
    %190 = arith.cmpf ogt, %188, %189 : vector<64x128xf32>
    %cst_95 = arith.constant 2.000000e-01 : f32
    %191 = vector.broadcast %cst_95 : f32 to vector<64x128xf32>
    %192 = arith.mulf %191, %188 : vector<64x128xf32>
    %193 = arith.select %190, %188, %192 : vector<64x128xi1>, vector<64x128xf32>
    %194 = arith.addf %193, %172 : vector<64x128xf32>
    %cst_96 = arith.constant dense<0xFF800000> : vector<64xf32>
    %195 = vector.multi_reduction <maximumf>, %194, %cst_96 [1] : vector<64x128xf32> to vector<64xf32>
    %196 = vector.shape_cast %195 : vector<64xf32> to vector<64x1xf32>
    %197 = vector.broadcast %196 : vector<64x1xf32> to vector<64x128xf32>
    %198 = arith.subf %194, %197 : vector<64x128xf32>
    %199 = math.exp %198 : vector<64x128xf32>
    %cst_97 = arith.constant dense<0.000000e+00> : vector<64xf32>
    %200 = vector.multi_reduction <add>, %199, %cst_97 [1] : vector<64x128xf32> to vector<64xf32>
    %201 = vector.shape_cast %200 : vector<64xf32> to vector<64x1xf32>
    %202 = vector.broadcast %201 : vector<64x1xf32> to vector<64x128xf32>
    %203 = arith.divf %199, %202 : vector<64x128xf32>
    %c2_98 = arith.constant 2 : index
    %c0_99 = arith.constant 0 : index
    %c0_100 = arith.constant 0 : index
    %c0_101 = arith.constant 0 : index
    %204 = vector.load %arg7[%c2_98, %c0_99, %c0_100, %c0_101] : memref<3x2x128x32xf32, #tpu.memory_space<vmem>>, vector<1x1x128x32xf32>
    %205 = vector.shape_cast %204 : vector<1x1x128x32xf32> to vector<128x32xf32>
    %cst_102 = arith.constant dense<0.000000e+00> : vector<64x32xf32>
    %206 = tpu.matmul %203, %205, %cst_102 {dimension_numbers = #tpu.dot_dimension_numbers<[1], [0], [0], [1], [0, 0, 1, 1], [], []>} : vector<64x128xf32>, vector<128x32xf32>, vector<64x32xf32> -> vector<64x32xf32>
    %207 = arith.addf %179, %206 : vector<64x32xf32>
    %208 = vector.extract_strided_slice %178 {offsets = [0, 1], sizes = [64, 1], strides = [1, 1]} : vector<64x2xf32> to vector<64x1xf32>
    %209 = vector.extract_strided_slice %176 {offsets = [1, 0], sizes = [1, 128], strides = [1, 1]} : vector<2x128xf32> to vector<1x128xf32>
    %210 = vector.broadcast %208 : vector<64x1xf32> to vector<64x128xf32>
    %211 = vector.broadcast %209 : vector<1x128xf32> to vector<64x128xf32>
    %212 = arith.addf %210, %211 : vector<64x128xf32>
    %c2_103 = arith.constant 2 : index
    %c1_104 = arith.constant 1 : index
    %213 = memref.load %arg2[%c2_103, %c1_104] : memref<3x2xf32, #tpu.memory_space<smem>>
    %214 = vector.broadcast %213 : f32 to vector<64x128xf32>
    %215 = arith.mulf %214, %174 : vector<64x128xf32>
    %216 = arith.addf %212, %215 : vector<64x128xf32>
    %cst_105 = arith.constant 0.000000e+00 : f32
    %217 = vector.broadcast %cst_105 : f32 to vector<64x128xf32>
    %218 = arith.cmpf ogt, %216, %217 : vector<64x128xf32>
    %cst_106 = arith.constant 2.000000e-01 : f32
    %219 = vector.broadcast %cst_106 : f32 to vector<64x128xf32>
    %220 = arith.mulf %219, %216 : vector<64x128xf32>
    %221 = arith.select %218, %216, %220 : vector<64x128xi1>, vector<64x128xf32>
    %222 = arith.addf %221, %172 : vector<64x128xf32>
    %cst_107 = arith.constant dense<0xFF800000> : vector<64xf32>
    %223 = vector.multi_reduction <maximumf>, %222, %cst_107 [1] : vector<64x128xf32> to vector<64xf32>
    %224 = vector.shape_cast %223 : vector<64xf32> to vector<64x1xf32>
    %225 = vector.broadcast %224 : vector<64x1xf32> to vector<64x128xf32>
    %226 = arith.subf %222, %225 : vector<64x128xf32>
    %227 = math.exp %226 : vector<64x128xf32>
    %cst_108 = arith.constant dense<0.000000e+00> : vector<64xf32>
    %228 = vector.multi_reduction <add>, %227, %cst_108 [1] : vector<64x128xf32> to vector<64xf32>
    %229 = vector.shape_cast %228 : vector<64xf32> to vector<64x1xf32>
    %230 = vector.broadcast %229 : vector<64x1xf32> to vector<64x128xf32>
    %231 = arith.divf %227, %230 : vector<64x128xf32>
    %c2_109 = arith.constant 2 : index
    %c1_110 = arith.constant 1 : index
    %c0_111 = arith.constant 0 : index
    %c0_112 = arith.constant 0 : index
    %232 = vector.load %arg7[%c2_109, %c1_110, %c0_111, %c0_112] : memref<3x2x128x32xf32, #tpu.memory_space<vmem>>, vector<1x1x128x32xf32>
    %233 = vector.shape_cast %232 : vector<1x1x128x32xf32> to vector<128x32xf32>
    %cst_113 = arith.constant dense<0.000000e+00> : vector<64x32xf32>
    %234 = tpu.matmul %231, %233, %cst_113 {dimension_numbers = #tpu.dot_dimension_numbers<[1], [0], [0], [1], [0, 0, 1, 1], [], []>} : vector<64x128xf32>, vector<128x32xf32>, vector<64x32xf32> -> vector<64x32xf32>
    %235 = arith.addf %207, %234 : vector<64x32xf32>
    %c2_114 = arith.constant 2 : index
    %236 = memref.load %arg3[%c2_114] : memref<3xf32, #tpu.memory_space<smem>>
    %c2_115 = arith.constant 2 : index
    %c0_116 = arith.constant 0 : index
    %c0_117 = arith.constant 0 : index
    %237 = vector.load %arg8[%c2_115, %c0_116, %c0_117] : memref<3x1x32xf32, #tpu.memory_space<vmem>>, vector<1x1x32xf32>
    %238 = vector.shape_cast %237 : vector<1x1x32xf32> to vector<1x32xf32>
    %239 = vector.broadcast %238 : vector<1x32xf32> to vector<64x32xf32>
    %240 = arith.addf %235, %239 : vector<64x32xf32>
    %241 = vector.broadcast %236 : f32 to vector<64x32xf32>
    %242 = arith.mulf %241, %240 : vector<64x32xf32>
    %243 = arith.addf %165, %242 : vector<64x32xf32>
    %cst_118 = arith.constant 0.000000e+00 : f32
    %244 = vector.broadcast %cst_118 : f32 to vector<64x32xf32>
    %245 = arith.maximumf %243, %244 : vector<64x32xf32>
    %246 = vector.broadcast %8 : vector<64x1xf32> to vector<64x32xf32>
    %247 = arith.mulf %245, %246 : vector<64x32xf32>
    %c0_119 = arith.constant 0 : index
    %c0_120 = arith.constant 0 : index
    %248 = vector.load %arg9[%c0_119, %c0_120] : memref<32x256xf32, #tpu.memory_space<vmem>>, vector<32x256xf32>
    %cst_121 = arith.constant dense<0.000000e+00> : vector<64x256xf32>
    %249 = tpu.matmul %247, %248, %cst_121 {dimension_numbers = #tpu.dot_dimension_numbers<[1], [0], [0], [1], [0, 0, 1, 1], [], []>} : vector<64x32xf32>, vector<32x256xf32>, vector<64x256xf32> -> vector<64x256xf32>
    %250 = arith.truncf %249 : vector<64x256xf32> to vector<64x256xbf16>
    %c0_122 = arith.constant 0 : index
    %c0_123 = arith.constant 0 : index
    %251 = vector.load %arg11[%c0_122, %c0_123] : memref<64x256xbf16, #tpu.memory_space<vmem>>, vector<64x256xbf16>
    tpu.vector_store %arg11[%c0_122, %c0_123], %250 {strides = array<i32>} : memref<64x256xbf16, #tpu.memory_space<vmem>>, vector<64x256xbf16>,
    %c0_124 = arith.constant 0 : index
    %c0_125 = arith.constant 0 : index
    %252 = vector.load %arg10[%c0_124, %c0_125] : memref<32x128xf32, #tpu.memory_space<vmem>>, vector<32x128xf32>
    %cst_126 = arith.constant dense<0.000000e+00> : vector<64x128xf32>
    %253 = tpu.matmul %247, %252, %cst_126 {dimension_numbers = #tpu.dot_dimension_numbers<[1], [0], [0], [1], [0, 0, 1, 1], [], []>} : vector<64x32xf32>, vector<32x128xf32>, vector<64x128xf32> -> vector<64x128xf32>
    %c0_127 = arith.constant 0 : index
    %c0_128 = arith.constant 0 : index
    %254 = vector.load %arg12[%c0_127, %c0_128] : memref<64x128xf32, #tpu.memory_space<vmem>>, vector<64x128xf32>
    tpu.vector_store %arg12[%c0_127, %c0_128], %253 {strides = array<i32>} : memref<64x128xf32, #tpu.memory_space<vmem>>, vector<64x128xf32>,
    return
  }
  func.func @transform_0(%arg0: i32) -> i32 {
    %c0_i32 = arith.constant 0 : i32
    %c0_i32_0 = arith.constant 0 : i32
    return %c0_i32 : i32
  }
  func.func @transform_1(%arg0: i32) -> (i32, i32) {
    %c0_i32 = arith.constant 0 : i32
    %c0_i32_0 = arith.constant 0 : i32
    %c0_i32_1 = arith.constant 0 : i32
    return %c0_i32, %c0_i32_0 : i32, i32
  }
  func.func @transform_2(%arg0: i32) -> i32 {
    %c0_i32 = arith.constant 0 : i32
    %c0_i32_0 = arith.constant 0 : i32
    return %c0_i32 : i32
  }
  func.func @transform_3(%arg0: i32) -> (i32, i32, i32) {
    %c0_i32 = arith.constant 0 : i32
    %c0_i32_0 = arith.constant 0 : i32
    %c0_i32_1 = arith.constant 0 : i32
    return %c0_i32, %arg0, %c0_i32_0 : i32, i32, i32
  }
  func.func @transform_4(%arg0: i32) -> (i32, i32, i32) {
    %c0_i32 = arith.constant 0 : i32
    %c0_i32_0 = arith.constant 0 : i32
    %c0_i32_1 = arith.constant 0 : i32
    %c0_i32_2 = arith.constant 0 : i32
    return %c0_i32, %c0_i32_0, %c0_i32_1 : i32, i32, i32
  }
  func.func @transform_5(%arg0: i32) -> (i32, i32, i32) {
    %c0_i32 = arith.constant 0 : i32
    %c0_i32_0 = arith.constant 0 : i32
    %c0_i32_1 = arith.constant 0 : i32
    return %c0_i32, %arg0, %c0_i32_0 : i32, i32, i32
  }
  func.func @transform_6(%arg0: i32) -> (i32, i32, i32, i32) {
    %c0_i32 = arith.constant 0 : i32
    %c0_i32_0 = arith.constant 0 : i32
    %c0_i32_1 = arith.constant 0 : i32
    %c0_i32_2 = arith.constant 0 : i32
    %c0_i32_3 = arith.constant 0 : i32
    return %c0_i32, %c0_i32_0, %c0_i32_1, %c0_i32_2 : i32, i32, i32, i32
  }
  func.func @transform_7(%arg0: i32) -> (i32, i32, i32) {
    %c0_i32 = arith.constant 0 : i32
    %c0_i32_0 = arith.constant 0 : i32
    %c0_i32_1 = arith.constant 0 : i32
    %c0_i32_2 = arith.constant 0 : i32
    return %c0_i32, %c0_i32_0, %c0_i32_1 : i32, i32, i32
  }
  func.func @transform_8(%arg0: i32) -> (i32, i32) {
    %c0_i32 = arith.constant 0 : i32
    %c0_i32_0 = arith.constant 0 : i32
    %c0_i32_1 = arith.constant 0 : i32
    return %c0_i32, %c0_i32_0 : i32, i32
  }
  func.func @transform_9(%arg0: i32) -> (i32, i32) {
    %c0_i32 = arith.constant 0 : i32
    %c0_i32_0 = arith.constant 0 : i32
    %c0_i32_1 = arith.constant 0 : i32
    return %c0_i32, %c0_i32_0 : i32, i32
  }
  func.func @transform_10(%arg0: i32) -> (i32, i32) {
    %c0_i32 = arith.constant 0 : i32
    %c0_i32_0 = arith.constant 0 : i32
    return %arg0, %c0_i32 : i32, i32
  }
  func.func @transform_11(%arg0: i32) -> (i32, i32) {
    %c0_i32 = arith.constant 0 : i32
    %c0_i32_0 = arith.constant 0 : i32
    return %arg0, %c0_i32 : i32, i32
  }
}

</mosaic_0001>

<bundles_post_ra>
// kernel: tpu_custom_call.1
= control target key start
LH: loop header
LB: loop body
LE: loop exit
PB: predicated region body
PF: predicated region fallthrough
CT: control target
= control target key end

     0   :  { %s6230_s0 = inlined_call_operand.<no memory space> [shape: s32[1], index: 0, kind: input, shape index: {}]   ;;  %s6231_s1 = inlined_call_operand.vmem [shape: f32[3,2], index: 1, kind: input, shape index: {}]   ;;  %s6232_s2 = inlined_call_operand.vmem [shape: f32[3], index: 2, kind: input, shape index: {}]   ;;  %s6233_s3 = inlined_call_operand.vmem [shape: f32[3,128,128], index: 3, kind: input, shape index: {}]   ;;  %s6234_s4 = inlined_call_operand.vmem [shape: f32[3,2,128], index: 4, kind: input, shape index: {}]   ;;  %s6235_s5 = inlined_call_operand.vmem [shape: f32[3,128,2], index: 5, kind: input, shape index: {}]   ;;  %s6236_s6 = inlined_call_operand.vmem [shape: f32[3,2,128,32], index: 6, kind: input, shape index: {}]   ;;  %s6237_s7 = inlined_call_operand.vmem [shape: f32[3,1,32], index: 7, kind: input, shape index: {}]   ;;  %s6238_s8 = inlined_call_operand.vmem [shape: f32[32,256], index: 8, kind: input, shape index: {}]   ;;  %s6239_s9 = inlined_call_operand.vmem [shape: f32[32,128], index: 9, kind: input, shape index: {}]   ;;  %s6240_s10 = inlined_call_operand.hbm [shape: bf16[128,256], index: 10, kind: output, shape index: {0}]   ;;  %s6241_s11 = inlined_call_operand.hbm [shape: f32[128,128], index: 11, kind: output, shape index: {1}]  }
   0x1   :  { %6271 = sst [smem:[#allocation36_spill]] %s6231_s1 }
   0x2   :  { %6272 = sst [smem:[#allocation37_spill]] %s6232_s2 }
   0x3   :  { %17 = sst [smem:[#allocation2]] %s6230_s0 }
   0x4   :  { %18 = vsyncpa [#allocation5], 0 }
   0x5   :  { %19 = vsyncpa [#allocation7], 0 }
   0x6   :  { %20 = vsyncpa [#allocation4], 0 }
   0x7   :  { %22 = vsyncpa [#allocation4 + $0x1], 0 }
   0x8   :  { %23 = vsyncpa [#allocation12], 0 }
   0x9   :  { %25 = vsyncpa [#allocation12 + $0x1], 0  ;;  %s4362_s19 = smov 0   ;;  %s4364_s20 = smov 0  }
   0xa   :  { %s4366_s21 = smov 0   ;;  %s4368_s22 = smov 0  }
   0xb LB: > { %s4383_s0 = sadd.s32 4294967295, %s4287_s22   ;;  %s3241_s23 = sadd.s32 4294967294, %s4287_s22   ;;  %s4287_s22 = sphi %s4368_s22, %s6345_s22   ;;  %s4283_s21 = sphi %s4366_s21, %s6344_s21   ;;  %s4279_s20 = sphi %s4364_s20, %s6343_s20   ;;  %s4275_s19 = sphi %s4362_s19, %s6342_s19  }
   0xc   : > { %s4387_s24 = sadd.s32 1, %s4287_s22   ;;  %s101_s25 = sadd.s32 1, %s4283_s21 }
   0xd   : > { %s98_s26 = ssub.s32 %s4287_s22, %s4387_s24  ;;  %p108_p0 = scmp.ne.s32.totalorder %s4283_s21, %s4279_s20 }
   0xe   : > { %p99_p1 = scmp.eq.s32.totalorder %s98_s26, 0  ;;  %p109_p2 = scmp.eq.s32.totalorder %s4287_s22, 0 }
   0xf   : > { %p269_p3 = scmp.eq.s32.totalorder %s4383_s0, 1  ;;  %p274_p4 = scmp.ne.s32.totalorder %s4279_s20, %s4275_s19 }
  0x10   : > { %s4399_s27 = scalar_select %p99_p1, %s4283_s21, %s101_s25  }
  0x11   : > { %p4401_p5 = por %p109_p2, %p108_p0  ;;  %p4405_p6 = por %p269_p3, %p108_p0 }
  0x12   : > { %p275_p7 = scmp.eq.s32.totalorder %s3241_s23, 1  ;;  %p3242_p8 = scmp.ge.s32.totalorder %s4287_s22, 1 }
  0x13   : > { %s6273_s28 = scalar_select %p4401_p5, 1, 0 }
  0x14   : > { %s6274_s29 = scalar_select %p4405_p6, 1, 0 }
  0x15   : > { %p308_p9 = scmp.lt.s32.totalorder %s4287_s22, 3  ;;  %p4411_p10 = por %p275_p7, %p274_p4 }
  0x16   : > { %p6242_p11 = scmp.eq.s32.totalorder %s4383_s0, 0  ;;  %s6277_s1 = sld [smem:[#allocation36_spill]] }
  0x17   : > { %s6275_s30 = scalar_select %p4411_p10, 1, 0 }
  0x18   : > { %p4416_p12 = pnand %p3242_p8, %p308_p9  ;;  %s6278_s2 = sld [smem:[#allocation37_spill]] }
  0x1a   : > { %s6276_s12 = scalar_select %p4416_p12, 1, 0 }
  0x1b   : > { %p3899_p13 = pneg %p4416_p12 }
  0x1c   : > { %s324_s15 = sshll.u32 %s6277_s1, 4  ;;  %s325_s15 = int_to_ptr.vmem [resolvable:$true] %s324_s15 }
  0x1d   : > { %p4430_p0 = pnand %p6242_p11, %p3899_p13  ;;  %s4159_s25 = scalar_lea.vmem %s325_s15, 64 }
  0x1e   : > { %s335_s18 = sshll.u32 %s6278_s2, 4  ;;  %p4160_p1 = scmp.ne.s32.totalorder %s325_s15, %s4159_s25  ;;  %s336_s18 = int_to_ptr.vmem [resolvable:$true] %s335_s18 }
  0x1f   : > { %p4161_p2 = pneg %p4430_p0  ;;  %p4167_p7 = scmp.lt.s32.totalorder %s325_s15, %s325_s15 }
  0x20   : > { %p4168_p8 = scmp.lt.s32.totalorder %s4159_s25, %s4159_s25 }
  0x21   : > { %p4162_p3 = pnand %p4161_p2, %p4160_p1 }
  0x22   : > { %p4169_p9 = por %p4168_p8, %p4167_p7 }
  0x23   : > { %p4163_p4 = pneg %p4162_p3 }
  0x25   : > { %p4170_p10 = pnand %p4169_p9, %p4163_p4 }
  0x27   : > { %4173 = shalt.err (!%p4170_p10)
}
  0x28   : > { %s4289_s26 = smov [#allocation3]   ;;  %s4174_s13 = scalar_lea.vmem %s336_s18, 16 }
  0x29   : > { %3902 = dma.vmem_to_smem (!%p4430_p0), %s325_s15, 64, %s4289_s26, [#allocation5]  }
  0x2a   : > { %p4175_p13 = scmp.ne.s32.totalorder %s336_s18, %s4174_s13  ;;  %p4182_p12 = scmp.lt.s32.totalorder %s336_s18, %s336_s18 }
  0x2b   : > { %p4183_p5 = scmp.lt.s32.totalorder %s4174_s13, %s4174_s13 }
  0x2c   : > { %p4177_p11 = pnand %p4175_p13, %p4161_p2 }
  0x2d   : > { %p4184_p1 = por %p4183_p5, %p4182_p12 }
  0x2e   : > { %p4178_p6 = pneg %p4177_p11 }
  0x30   : > { %p4185_p3 = pnand %p4184_p1, %p4178_p6 }
  0x32   : > { %4188 = shalt.err (!%p4185_p3)
}
  0x33   : > { %s4290_s14 = smov [#allocation6]   ;;  %p3245_p10 = scmp.ge.s32.totalorder %s4287_s22, 2 }
  0x34   : > { %3905 = dma.vmem_to_smem (!%p4430_p0), %s336_s18, 16, %s4290_s14, [#allocation7]  }
  0x35   : > { %357 = sbr.rel (%p3245_p10) target bundleno = 93 (0x5d), region = 48  ;;  %p6280_p4 = scmp.ne.s32.totalorder (!%p3245_p10), %s6273_s28, 0 }
  0x3a   : > { %360 = sbr.rel (!%p6280_p4) target bundleno = 75 (0x4b), region = 52  ;;  %s362_s15 = sand.u32 (%p6280_p4), 1, %s4283_s21  }
  0x3b   : > { %s3423_s16 = sshll.u32 (%p6280_p4), %s4287_s22, 6  ;;  %s3884_s17 = smul.u32 (%p6280_p4), 192, %s362_s15 }
  0x3c   : > { %s4450_s13 = scalar_lea.vmem (%p6280_p4), %s6233_s3, %s3423_s16 }
  0x3d   : > { %v442_v0 = vld [vmem:[%s4450_s13] sm:$0xff] (%p6280_p4)  ;;  %v444_v1 = vld [vmem:[%s4450_s13 + $0x8] sm:$0xff] (%p6280_p4)  ;;  %v446_v2 = vld [vmem:[%s4450_s13 + $0x10] sm:$0xff] (%p6280_p4)  ;;  %s4458_s18 = scalar_lea.vmem (%p6280_p4), [#allocation8], %s3884_s17 }
  0x3e   : > { %v448_v3 = vld [vmem:[%s4450_s13 + $0x18] sm:$0xff] (%p6280_p4)  ;;  %v450_v4 = vld [vmem:[%s4450_s13 + $0x20] sm:$0xff] (%p6280_p4)  ;;  %v452_v5 = vld [vmem:[%s4450_s13 + $0x28] sm:$0xff] (%p6280_p4)  ;;  %443 = vst [vmem:[%s4458_s18] sm:$0xff] (%p6280_p4), %v442_v0 }
  0x3f   : > { %445 = vst [vmem:[%s4458_s18 + $0x8] sm:$0xff] %v444_v1  ;;  %447 = vst [vmem:[%s4458_s18 + $0x10] sm:$0xff] %v446_v2  ;;  %v454_v6 = vld [vmem:[%s4450_s13 + $0x30] sm:$0xff]  ;;  %v456_v7 = vld [vmem:[%s4450_s13 + $0x38] sm:$0xff] }
  0x40   : > { %449 = vst [vmem:[%s4458_s18 + $0x18] sm:$0xff] %v448_v3  ;;  %451 = vst [vmem:[%s4458_s18 + $0x20] sm:$0xff] %v450_v4  ;;  %v458_v8 = vld [vmem:[%s4450_s13 + $0x80] sm:$0xff]  ;;  %v460_v9 = vld [vmem:[%s4450_s13 + $0x88] sm:$0xff] }
  0x41   : > { %453 = vst [vmem:[%s4458_s18 + $0x28] sm:$0xff] %v452_v5  ;;  %455 = vst [vmem:[%s4458_s18 + $0x30] sm:$0xff] %v454_v6  ;;  %v462_v10 = vld [vmem:[%s4450_s13 + $0x90] sm:$0xff]  ;;  %v464_v11 = vld [vmem:[%s4450_s13 + $0x98] sm:$0xff] }
  0x42   : > { %457 = vst [vmem:[%s4458_s18 + $0x38] sm:$0xff] %v456_v7  ;;  %459 = vst [vmem:[%s4458_s18 + $0x40] sm:$0xff] %v458_v8  ;;  %v466_v12 = vld [vmem:[%s4450_s13 + $0xa0] sm:$0xff]  ;;  %v468_v13 = vld [vmem:[%s4450_s13 + $0xa8] sm:$0xff] }
  0x43   : > { %461 = vst [vmem:[%s4458_s18 + $0x48] sm:$0xff] %v460_v9  ;;  %463 = vst [vmem:[%s4458_s18 + $0x50] sm:$0xff] %v462_v10  ;;  %v470_v14 = vld [vmem:[%s4450_s13 + $0xb0] sm:$0xff]  ;;  %v472_v15 = vld [vmem:[%s4450_s13 + $0xb8] sm:$0xff] }
  0x44   : > { %465 = vst [vmem:[%s4458_s18 + $0x58] sm:$0xff] %v464_v11  ;;  %467 = vst [vmem:[%s4458_s18 + $0x60] sm:$0xff] %v466_v12  ;;  %v474_v16 = vld [vmem:[%s4450_s13 + $0x100] sm:$0xff]  ;;  %v476_v17 = vld [vmem:[%s4450_s13 + $0x108] sm:$0xff] }
  0x45   : > { %469 = vst [vmem:[%s4458_s18 + $0x68] sm:$0xff] %v468_v13  ;;  %471 = vst [vmem:[%s4458_s18 + $0x70] sm:$0xff] %v470_v14  ;;  %v478_v18 = vld [vmem:[%s4450_s13 + $0x110] sm:$0xff]  ;;  %v480_v19 = vld [vmem:[%s4450_s13 + $0x118] sm:$0xff] }
  0x46   : > { %473 = vst [vmem:[%s4458_s18 + $0x78] sm:$0xff] %v472_v15  ;;  %475 = vst [vmem:[%s4458_s18 + $0x80] sm:$0xff] %v474_v16  ;;  %v482_v20 = vld [vmem:[%s4450_s13 + $0x120] sm:$0xff]  ;;  %v484_v21 = vld [vmem:[%s4450_s13 + $0x128] sm:$0xff] }
  0x47   : > { %477 = vst [vmem:[%s4458_s18 + $0x88] sm:$0xff] %v476_v17  ;;  %479 = vst [vmem:[%s4458_s18 + $0x90] sm:$0xff] %v478_v18  ;;  %v486_v22 = vld [vmem:[%s4450_s13 + $0x130] sm:$0xff]  ;;  %v488_v23 = vld [vmem:[%s4450_s13 + $0x138] sm:$0xff] }
  0x48   : > { %481 = vst [vmem:[%s4458_s18 + $0x98] sm:$0xff] %v480_v19  ;;  %483 = vst [vmem:[%s4458_s18 + $0xa0] sm:$0xff] %v482_v20 }
  0x49   : > { %485 = vst [vmem:[%s4458_s18 + $0xa8] sm:$0xff] %v484_v21  ;;  %487 = vst [vmem:[%s4458_s18 + $0xb0] sm:$0xff] %v486_v22 }
  0x4a   : > { %489 = vst [vmem:[%s4458_s18 + $0xb8] sm:$0xff] %v488_v23 }
  0x4b PF: > { %p6281_p5 = scmp.ne.s32.totalorder %s6273_s28, 0 }
  0x4c   : > { %s497_s23 = sand.u32 (%p6281_p5), 1, %s4283_s21   ;;  %s3424_s14 = sshll.u32 (%p6281_p5), %s4287_s22, 6 }
  0x4d   : > { %495 = sbr.rel (!%p6281_p5) target bundleno = 93 (0x5d), region = 90  ;;  %s4509_s25 = scalar_lea.vmem (%p6281_p5), %s6235_s5, %s3424_s14 }
  0x4e   : > { %s3885_s15 = smul.u32 (%p6281_p5), 192, %s497_s23  ;;  %v577_v24 = vld [vmem:[%s4509_s25] sm:$0xff] (%p6281_p5)  ;;  %v579_v25 = vld [vmem:[%s4509_s25 + $0x8] sm:$0xff] (%p6281_p5)  ;;  %v581_v26 = vld [vmem:[%s4509_s25 + $0x10] sm:$0xff] (%p6281_p5) }
  0x4f   : > { %v583_v27 = vld [vmem:[%s4509_s25 + $0x18] sm:$0xff] (%p6281_p5)  ;;  %v585_v28 = vld [vmem:[%s4509_s25 + $0x20] sm:$0xff] (%p6281_p5)  ;;  %v587_v29 = vld [vmem:[%s4509_s25 + $0x28] sm:$0xff] (%p6281_p5) }
  0x50   : > { %s4517_s28 = scalar_lea.vmem (%p6281_p5), [#allocation9], %s3885_s15  ;;  %v589_v30 = vld [vmem:[%s4509_s25 + $0x30] sm:$0xff] (%p6281_p5)  ;;  %v591_v31 = vld [vmem:[%s4509_s25 + $0x38] sm:$0xff] (%p6281_p5)  ;;  %v593_v32 = vld [vmem:[%s4509_s25 + $0x80] sm:$0xff] (%p6281_p5) }
  0x51   : > { %578 = vst [vmem:[%s4517_s28] sm:$0xff] (%p6281_p5), %v577_v24  ;;  %580 = vst [vmem:[%s4517_s28 + $0x8] sm:$0xff] (%p6281_p5), %v579_v25  ;;  %v595_v33 = vld [vmem:[%s4509_s25 + $0x88] sm:$0xff] (%p6281_p5)  ;;  %v597_v34 = vld [vmem:[%s4509_s25 + $0x90] sm:$0xff] (%p6281_p5) }
  0x52   : > { %582 = vst [vmem:[%s4517_s28 + $0x10] sm:$0xff] %v581_v26  ;;  %584 = vst [vmem:[%s4517_s28 + $0x18] sm:$0xff] %v583_v27  ;;  %v599_v35 = vld [vmem:[%s4509_s25 + $0x98] sm:$0xff]  ;;  %v601_v36 = vld [vmem:[%s4509_s25 + $0xa0] sm:$0xff] }
  0x53   : > { %586 = vst [vmem:[%s4517_s28 + $0x20] sm:$0xff] %v585_v28  ;;  %588 = vst [vmem:[%s4517_s28 + $0x28] sm:$0xff] %v587_v29  ;;  %v603_v37 = vld [vmem:[%s4509_s25 + $0xa8] sm:$0xff]  ;;  %v605_v38 = vld [vmem:[%s4509_s25 + $0xb0] sm:$0xff] }
  0x54   : > { %590 = vst [vmem:[%s4517_s28 + $0x30] sm:$0xff] %v589_v30  ;;  %592 = vst [vmem:[%s4517_s28 + $0x38] sm:$0xff] %v591_v31  ;;  %v607_v39 = vld [vmem:[%s4509_s25 + $0xb8] sm:$0xff]  ;;  %v609_v40 = vld [vmem:[%s4509_s25 + $0x100] sm:$0xff] }
  0x55   : > { %594 = vst [vmem:[%s4517_s28 + $0x40] sm:$0xff] %v593_v32  ;;  %596 = vst [vmem:[%s4517_s28 + $0x48] sm:$0xff] %v595_v33  ;;  %v611_v41 = vld [vmem:[%s4509_s25 + $0x108] sm:$0xff]  ;;  %v613_v42 = vld [vmem:[%s4509_s25 + $0x110] sm:$0xff] }
  0x56   : > { %598 = vst [vmem:[%s4517_s28 + $0x50] sm:$0xff] %v597_v34  ;;  %600 = vst [vmem:[%s4517_s28 + $0x58] sm:$0xff] %v599_v35  ;;  %v615_v43 = vld [vmem:[%s4509_s25 + $0x118] sm:$0xff]  ;;  %v617_v44 = vld [vmem:[%s4509_s25 + $0x120] sm:$0xff] }
  0x57   : > { %602 = vst [vmem:[%s4517_s28 + $0x60] sm:$0xff] %v601_v36  ;;  %604 = vst [vmem:[%s4517_s28 + $0x68] sm:$0xff] %v603_v37  ;;  %v619_v45 = vld [vmem:[%s4509_s25 + $0x128] sm:$0xff]  ;;  %v621_v46 = vld [vmem:[%s4509_s25 + $0x130] sm:$0xff] }
  0x58   : > { %606 = vst [vmem:[%s4517_s28 + $0x70] sm:$0xff] %v605_v38  ;;  %608 = vst [vmem:[%s4517_s28 + $0x78] sm:$0xff] %v607_v39  ;;  %v623_v47 = vld [vmem:[%s4509_s25 + $0x138] sm:$0xff] }
  0x59   : > { %610 = vst [vmem:[%s4517_s28 + $0x80] sm:$0xff] %v609_v40  ;;  %612 = vst [vmem:[%s4517_s28 + $0x88] sm:$0xff] %v611_v41 }
  0x5a   : > { %614 = vst [vmem:[%s4517_s28 + $0x90] sm:$0xff] %v613_v42  ;;  %616 = vst [vmem:[%s4517_s28 + $0x98] sm:$0xff] %v615_v43 }
  0x5b   : > { %618 = vst [vmem:[%s4517_s28 + $0xa0] sm:$0xff] %v617_v44  ;;  %620 = vst [vmem:[%s4517_s28 + $0xa8] sm:$0xff] %v619_v45 }
  0x5c   : > { %622 = vst [vmem:[%s4517_s28 + $0xb0] sm:$0xff] %v621_v46  ;;  %624 = vst [vmem:[%s4517_s28 + $0xb8] sm:$0xff] %v623_v47 }
  0x5d PF: > { %p6282_p6 = scmp.ne.s32.totalorder %s6276_s12, 0 }
  0x5f   : > { %633 = sbr.rel (%p6282_p6) target bundleno = 1285 (0x505), region = 128 }
  0x64   : > { %p6283_p11 = scmp.eq.s32.totalorder %s4383_s0, 0 }
  0x66   : > { %4258 = dma.done.wait (%p6283_p11), [#allocation5], 64   ;;  %p6284_p12 = pmov %p6283_p11 }
  0x67   : > { %p6285_p0 = pmov %p6283_p11 }
  0x68   : > { %4260 = vsyncadd (%p6284_p12), [#allocation5], 4294967232 }
  0x69   : > { %4262 = dma.done.wait (%p6285_p0), [#allocation7], 16   ;;  %p6286_p2 = pmov %p6285_p0 }
  0x6a   : > { %s4572_s26 = sand.u32 1, %s4279_s20  }
  0x6b   : > { %4264 = vsyncadd (%p6286_p2), [#allocation7], 4294967280  ;;  %s3886_s13 = smul.u32 192, %s4572_s26 }
  0x6d   : > { %s4575_s18 = scalar_lea.vmem [#allocation8], %s3886_s13  ;;  %s4577_s12 = scalar_lea.vmem [#allocation9], %s3886_s13 }
  0x6e   : > { %657 = sfence }
  0x6f   : > { %v783_v48 = vld [vmem:[%s4577_s12 + $0x8] sm:$0xff]  ;;  %v4581_v49 = vld [vmem:[%s4577_s12] sm:$0xff]  ;;  %v6245_v50 = vmov 1   ;;  %v4292_v51 = vmov 0   ;;  %v784_v52 = vld [vmem:[%s4577_s12 + $0x10] sm:$0xff]  ;;  %s3264_s23 = sld [smem:[#allocation3 + $0x1]]  ;;  %v705_v58 = vlaneseq }
  0x70   : > { %3958 = vset.pattern.permute.xlu0 %v6245_v50  ;;  %3959 = vset.pattern.permute.xlu1 %v4292_v51  ;;  %v785_v53 = vld [vmem:[%s4577_s12 + $0x18] sm:$0xff]  ;;  %v786_v54 = vld [vmem:[%s4577_s12 + $0x20] sm:$0xff]  ;;  %v4592_v55 = vld [vmem:[%s4575_s18 + $0x28] sm:$0xff]  ;;  %s842_s16 = sld [smem:[#allocation3]]  ;;  %v6257_v44 = vmov -1e+30  }
  0x71   : > { %797 = vperm.xlu1 %3959, %v783_v48   ;;  %981 = vperm.xlu0 %3958, %v4581_v49   ;;  %vm762_vm0 = vcmp.gt.f32.partialorder %v4592_v55, -1e+29  ;;  %v787_v60 = vld [vmem:[%s4577_s12 + $0x28] sm:$0xff]  ;;  %v4608_v61 = vld [vmem:[%s4575_s18 + $0x30] sm:$0xff]  ;;  %v4616_v63 = vshrl.u32 %v705_v58, 7  ;;  %v4624_v2 = vld [vmem:[%s4575_s18 + $0x38] sm:$0xff] }
  0x72   : > { %v4600_v57 = vsel %vm762_vm0, %v4592_v55, 0.0  ;;  %vm763_vm1 = vcmp.gt.f32.partialorder %v4608_v61, -1e+29  ;;  %v788_v1 = vld [vmem:[%s4577_s12 + $0x30] sm:$0xff]  ;;  %vm764_vm2 = vcmp.gt.f32.partialorder %v4624_v2, -1e+29 }
  0x73   : > { %v4614_v62 = vsel %vm763_vm1, %v4608_v61, 0.0  ;;  %6287 = vst [vmem:[#allocation17_spill] sm:$0xff] %v4616_v63  ;;  %v4630_v3 = vsel %vm764_vm2, %v4624_v2, 0.0  ;;  %v4633_v4 = vsub.s32 1, %v4616_v63  ;;  %v4638_v5 = vld [vmem:[%s6234_s4 + $0x2] sm:$0x3] }
  0x74   : > { %v789_v7 = vld [vmem:[%s4577_s12 + $0x38] sm:$0xff]  ;;  %v3291_v9 = vld [vmem:[%s4577_s12 + $0x40] sm:$0xff]  ;;  %v3292_v10 = vld [vmem:[%s4577_s12 + $0x48] sm:$0xff]  ;;  %v4703_v26 = vsub.s32 0, %v4616_v63  ;;  %s3316_s28 = sld [smem:[#allocation3 + $0x81]]  ;;  %s3255_s25 = sshll.u32 %s4383_s0, 6 }
  0x75   : > { %3960 = vset.pattern.permute.xlu1 %v6245_v50  ;;  %989 = vperm.xlu0 %3958, %v784_v52   ;;  %v4595_v56 = vstv %s3264_s23  ;;  %6288 = vst [vmem:[#allocation18_spill] sm:$0xff] %v4633_v4  ;;  %v4647_v8 = vrot.slane %v4638_v5, %v4633_v4  ;;  %v3293_v11 = vld [vmem:[%s4577_s12 + $0x50] sm:$0xff]  ;;  %v3294_v12 = vld [vmem:[%s4577_s12 + $0x58] sm:$0xff]  ;;  %v4654_v13 = vld [vmem:[%s4577_s12 + $0x60] sm:$0xff]  ;;  %s3299_s13 = sld [smem:[#allocation3 + $0x80]]  ;;  %s3253_s23 = sshll.u32 %s4572_s26, 6 }
  0x76   : > { %985 = vperm.xlu1 %3960, %v783_v48   ;;  %v4604_v59 = vmul.f32 %v4595_v56, %v4600_v57  ;;  %v4620_v0 = vmul.f32 %v4595_v56, %v4614_v62  ;;  %v4642_v6 = vmul.f32 %v4595_v56, %v4630_v3  ;;  %v4658_v14 = vld [vmem:[%s4577_s12 + $0x68] sm:$0xff]  ;;  %v4662_v15 = vld [vmem:[%s4577_s12 + $0x70] sm:$0xff]  ;;  %v4671_v17 = vld [vmem:[%s4577_s12 + $0x78] sm:$0xff]  ;;  %6289 = vst [vmem:[#allocation19_spill] sm:$0xff] %v4703_v26  ;;  %v4712_v30 = vstv %s842_s16  ;;  %s5116_s15 = sld [smem:[#allocation3 + $0x100]]  ;;  %s6119_s14 = scalar_lea.vmem [#allocation10], %s3253_s23 }
  0x77   : > { %v4665_v16 = vld [vmem:[%s4577_s12 + $0xa8] sm:$0xff]  ;;  %v4676_v18 = vld [vmem:[%s4577_s12 + $0x80] sm:$0xff]  ;;  %v4684_v20 = vld [vmem:[%s4577_s12 + $0x90] sm:$0xff]  ;;  %s723_s16 = sld [smem:[#allocation2]]  ;;  %p6337_p8 = scmp.ne.s32.totalorder %s6274_s29, 0 }
  0x78   : > { %v4680_v19 = vld [vmem:[%s4577_s12 + $0x88] sm:$0xff]  ;;  %v4688_v21 = vld [vmem:[%s4577_s12 + $0x98] sm:$0xff]  ;;  %v4692_v22 = vld [vmem:[%s4577_s12 + $0xa0] sm:$0xff]  ;;  %s3333_s17 = sld [smem:[#allocation6 + $0x1]] }
  0x79   : > { %993 = vperm.xlu0 %3958, %v785_v53   ;;  %v749_v23 = vld [vmem:[%s4575_s18] sm:$0xff]  ;;  %v750_v24 = vld [vmem:[%s4575_s18 + $0x8] sm:$0xff]  ;;  %v4715_v31 = vld [vmem:[%s4575_s18 + $0x18] sm:$0xff] }
  0x7a   : > { %3961 = vset.pattern.permute.xlu1 %v4292_v51  ;;  %vm757_vm3 = vcmp.gt.f32.partialorder %v749_v23, -1e+29  ;;  %v781_v25 = vld [vmem:[%s6234_s4] sm:$0x3]  ;;  %vm758_vm4 = vcmp.gt.f32.partialorder %v750_v24, -1e+29 }
  0x7b   : > { %802 = vperm.xlu1 %3961, %v784_v52   ;;  %v4706_v27 = vsel %vm757_vm3, %v749_v23, 0.0  ;;  %v4709_v28 = vrot.slane %v781_v25, %v4633_v4  ;;  %v774_v29 = vsel %vm758_vm4, %v750_v24, 0.0  ;;  %v4718_v32 = vrot.slane %v781_v25, %v4703_v26  ;;  %v751_v39 = vld [vmem:[%s4575_s18 + $0x10] sm:$0xff]  ;;  %v4728_v40 = vld [vmem:[%s4575_s18 + $0x20] sm:$0xff] }
  0x7c   : > { %v1026_v33 = vmul.f32 %v4595_v56, %v4706_v27  ;;  %v845_v34 = vmul.f32 %v4712_v30, %v774_v29  ;;  %vm760_vm5 = vcmp.gt.f32.partialorder %v4715_v31, -1e+29  ;;  %v4734_v45 = vsel %vm757_vm3, 0.0, %v6257_v44 }
  0x7d   : > { %997 = vperm.xlu0 %3958, %v786_v54   ;;  %v1027_v46 = vmul.f32 %v4595_v56, %v774_v29  ;;  %vm759_vm6 = vcmp.gt.f32.partialorder %v751_v39, -1e+29  ;;  %v4740_v47 = vsel %vm760_vm5, %v4715_v31, 0.0  ;;  %vm761_vm9 = vcmp.gt.f32.partialorder %v4728_v40, -1e+29 }
  0x7e   : > { %v4747_v58 = vsel %vm759_vm6, %v751_v39, 0.0 }
  0x7f   : > { %807 = vperm.xlu1 %3961, %v785_v53   ;;  %v846_v23 = vmul.f32 %v4712_v30, %v4747_v58 }
  0x81   : > { %1001 = vperm.xlu0 %3958, %v787_v60  }
  0x83   : > { %812 = vperm.xlu1 %3961, %v786_v54   ;;  %v766_v54 = vsel %vm758_vm4, 0.0, %v6257_v44 }
  0x85   : > { %1005 = vperm.xlu0 %3958, %v788_v1  }
  0x87   : > { %817 = vperm.xlu1 %3961, %v787_v60   ;;  %v1029_v60 = vmul.f32 %v4595_v56, %v4740_v47 }
  0x89   : > { %1009 = vperm.xlu0 %3958, %v789_v7  }
  0x8b   : > { %822 = vperm.xlu1 %3961, %v788_v1  }
  0x8d   : > { %1642 = vperm.xlu0 %3958, %v3291_v9  }
  0x8f   : > { %827 = vperm.xlu1 %3961, %v789_v7  }
  0x91   : > { %1646 = vperm.xlu0 %3958, %v3292_v10  }
  0x93   : > { %1452 = vperm.xlu1 %3961, %v3291_v9  }
  0x95   : > { %1650 = vperm.xlu0 %3958, %v3293_v11  }
  0x97   : > { %1457 = vperm.xlu1 %3961, %v3292_v10  }
  0x99   : > { %1654 = vperm.xlu0 %3958, %v3294_v12  }
  0x9b   : > { %1462 = vperm.xlu1 %3961, %v3293_v11   ;;  %v4757_v11 = vsel %vm761_vm9, %v4728_v40, 0.0 }
  0x9d   : > { %1658 = vperm.xlu0 %3958, %v4654_v13  }
  0x9f   : > { %1467 = vperm.xlu1 %3961, %v3294_v12  }
  0xa1   : > { %1662 = vperm.xlu0 %3958, %v4658_v14  }
  0xa3   : > { %3963 = vset.pattern.permute.xlu1 %v6245_v50 }
  0xa4   : > { %2324 = vperm.xlu1 %3963, %v4665_v16  }
  0xa5   : > { %1666 = vperm.xlu0 %3958, %v4662_v15  }
  0xa8   : > { %3964 = vset.pattern.permute.xlu1 %v4292_v51 }
  0xa9   : > { %1670 = vperm.xlu0 %3958, %v4671_v17  }
  0xad   : > { %2304 = vperm.xlu0 %3958, %v4676_v18  }
  0xb1   : > { %2308 = vperm.xlu0 %3958, %v4680_v19  }
  0xb5   : > { %2312 = vperm.xlu0 %3958, %v4684_v20  }
  0xb9   : > { %2316 = vperm.xlu0 %3958, %v4688_v21  }
  0xbd   : > { %2320 = vperm.xlu0 %3958, %v4692_v22  }
  0xc1   : > { %3962 = vset.pattern.permute.xlu0 %v4292_v51 }
  0xc2   : > { %792 = vperm.xlu0 %3962, %v4581_v49  }
  0xec   : > { %v982_v35 = vpop.permute.xlu0 %981  ;;  %v798_v36 = vpop.permute.xlu1 %797 }
  0xed   : > { %v1016_v37 = vadd.f32 %v4709_v28, %v982_v35  ;;  %v835_v38 = vadd.f32 %v4718_v32, %v798_v36  ;;  %v1030_v35 = vmul.f32 %v4595_v56, %v4757_v11 }
  0xef   : > { %v1034_v41 = vadd.f32 %v1026_v33, %v1016_v37  ;;  %v853_v42 = vadd.f32 %v845_v34, %v835_v38 }
  0xf0   : > { %v4730_v43 = vpop.permute.xlu0 %989 }
  0xf1   : > { %v986_v48 = vpop.permute.xlu1 %985  ;;  %vm1042_vm7 = vcmp.gt.f32.partialorder %v1034_v41, 0.0  ;;  %v1050_v49 = vmul.f32 0.2, %v1034_v41  ;;  %vm861_vm8 = vcmp.gt.f32.partialorder %v853_v42, 0.0  ;;  %v869_v52 = vmul.f32 0.2, %v853_v42 }
  0xf2   : > { %v1017_v51 = vadd.f32 %v4709_v28, %v986_v48 }
  0xf3   : > { %v1058_v53 = vsel %vm1042_vm7, %v1034_v41, %v1050_v49  ;;  %v877_v10 = vsel %vm861_vm8, %v853_v42, %v869_v52  ;;  %v4779_v52 = vsel %vm759_vm6, 0.0, %v6257_v44 }
  0xf4   : > { %v994_v1 = vpop.permute.xlu0 %993  ;;  %v4752_v7 = vadd.f32 %v1058_v53, %v4734_v45  ;;  %v1035_v9 = vadd.f32 %v1027_v46, %v1017_v51  ;;  %v4762_v24 = vadd.f32 %v877_v10, %v766_v54 }
  0xf5   : > { %v1019_v12 = vadd.f32 %v4709_v28, %v994_v1 }
  0xf6   : > { %6290 = vst [vmem:[#allocation20_spill] sm:$0xff] %v4752_v7  ;;  %1074 = vmax.xlane.f32.xlu0 %v4752_v7  ;;  %vm1043_vm10 = vcmp.gt.f32.partialorder %v1035_v9, 0.0  ;;  %v1051_v25 = vmul.f32 0.2, %v1035_v9  ;;  %v803_v29 = vpop.permute.xlu1 %802 }
  0xf7   : > { %v836_v33 = vadd.f32 %v4718_v32, %v803_v29  ;;  %v4766_v34 = vadd.f32 %v1029_v60, %v1019_v12  ;;  %v3282_v60 = vld [vmem:[%s4575_s18 + $0x40] sm:$0xff]  ;;  %v4790_v12 = vsel %vm762_vm0, 0.0, %v6257_v44 }
  0xf8   : > { %v998_v36 = vpop.permute.xlu0 %997  ;;  %v1059_v37 = vsel %vm1043_vm10, %v1035_v9, %v1051_v25  ;;  %vm1415_vm12 = vcmp.gt.f32.partialorder %v3282_v60, -1e+29 }
  0xf9   : > { %v1020_v38 = vadd.f32 %v4709_v28, %v998_v36  ;;  %v4771_v41 = vadd.f32 %v1059_v37, %v766_v54  ;;  %v854_v42 = vadd.f32 %v846_v23, %v836_v33  ;;  %v3283_v23 = vld [vmem:[%s4575_s18 + $0x48] sm:$0xff]  ;;  %v4798_v36 = vstv %s3316_s28  ;;  %s3387_s28 = sld [smem:[#allocation6 + $0x2]] }
  0xfa   : > { %6292 = vst [vmem:[#allocation22_spill] sm:$0xff] %v4798_v36  ;;  %v4806_v37 = vsel %vm763_vm1, 0.0, %v6257_v44  ;;  %vm1416_vm14 = vcmp.gt.f32.partialorder %v3283_v23, -1e+29  ;;  %v4838_v50 = vsel %vm1415_vm12, 0.0, %v6257_v44 }
  0xfb   : > { %6291 = vst [vmem:[#allocation21_spill] sm:$0xff] %v4771_v41  ;;  %1076 = vmax.xlane.f32.xlu0 %v4771_v41  ;;  %vm862_vm11 = vcmp.gt.f32.partialorder %v854_v42, 0.0  ;;  %v870_v46 = vmul.f32 0.2, %v854_v42  ;;  %v4774_v48 = vadd.f32 %v1030_v35, %v1020_v38  ;;  %v3284_v38 = vld [vmem:[%s4575_s18 + $0x50] sm:$0xff] }
  0xfc   : > { %v1002_v49 = vpop.permute.xlu0 %1001  ;;  %vm1417_vm0 = vcmp.gt.f32.partialorder %v3284_v38, -1e+29 }
  0xfd   : > { %v1021_v51 = vadd.f32 %v4709_v28, %v1002_v49  ;;  %v878_v53 = vsel %vm862_vm11, %v854_v42, %v870_v46 }
  0xfe   : > { %v4782_v54 = vadd.f32 %v878_v53, %v4779_v52 }
  0xff   : > { %v1039_v1 = vadd.f32 %v4604_v59, %v1021_v51  ;;  %v4796_v59 = vsel %vm1415_vm12, %v3282_v60, 0.0  ;;  %v4854_v60 = vsel %vm1416_vm14, 0.0, %v6257_v44 }
 0x100   : > { %v1006_v9 = vpop.permute.xlu0 %1005  ;;  %v1687_v49 = vmul.f32 %v4798_v36, %v4796_v59 }
 0x101   : > { %v1022_v10 = vadd.f32 %v4709_v28, %v1006_v9  ;;  %vm1047_vm13 = vcmp.gt.f32.partialorder %v1039_v1, 0.0  ;;  %v1055_v39 = vmul.f32 0.2, %v1039_v1  ;;  %v4819_v9 = vpop.permute.xlu1 %807 }
 0x103   : > { %v1040_v25 = vadd.f32 %v4620_v0, %v1022_v10  ;;  %v1063_v33 = vsel %vm1047_vm13, %v1039_v1, %v1055_v39  ;;  %v4814_v1 = vsel %vm1416_vm14, %v3283_v23, 0.0  ;;  %v3285_v10 = vld [vmem:[%s4575_s18 + $0x58] sm:$0xff] }
 0x104   : > { %v1010_v29 = vpop.permute.xlu0 %1009  ;;  %v4801_v55 = vadd.f32 %v1063_v33, %v4790_v12  ;;  %vm1418_vm3 = vcmp.gt.f32.partialorder %v3285_v10, -1e+29 }
 0x105   : > { %v1023_v35 = vadd.f32 %v4709_v28, %v1010_v29  ;;  %vm1048_vm15 = vcmp.gt.f32.partialorder %v1040_v25, 0.0  ;;  %v1056_v0 = vmul.f32 0.2, %v1040_v25  ;;  %v1688_v29 = vmul.f32 %v4798_v36, %v4814_v1  ;;  %v4840_v41 = vpop.permute.xlu1 %812 }
 0x107   : > { %v1041_v42 = vadd.f32 %v4642_v6, %v1023_v35  ;;  %v1064_v51 = vsel %vm1048_vm15, %v1040_v25, %v1056_v0  ;;  %v4825_v6 = vsel %vm764_vm2, 0.0, %v6257_v44 }
 0x108   : > { %v1643_v46 = vpop.permute.xlu0 %1642  ;;  %v4817_v61 = vadd.f32 %v1064_v51, %v4806_v37 }
 0x109   : > { %v1677_v53 = vadd.f32 %v4647_v8, %v1643_v46  ;;  %vm1049_vm1 = vcmp.gt.f32.partialorder %v1041_v42, 0.0  ;;  %v1057_v39 = vmul.f32 0.2, %v1041_v42  ;;  %v4831_v46 = vsel %vm1417_vm0, %v3284_v38, 0.0  ;;  %v818_v23 = vpop.permute.xlu1 %817 }
 0x10a   : > { %6293 = vst [vmem:[#allocation23_spill] sm:$0xff] %v4817_v61 }
 0x10b   : > { %v1065_v33 = vsel %vm1049_vm1, %v1041_v42, %v1057_v39  ;;  %v1695_v35 = vadd.f32 %v1687_v49, %v1677_v53  ;;  %v1689_v42 = vmul.f32 %v4798_v36, %v4831_v46  ;;  %v4845_v49 = vsel %vm1418_vm3, %v3285_v10, 0.0 }
 0x10c   : > { %v1647_v25 = vpop.permute.xlu0 %1646  ;;  %v4834_v51 = vadd.f32 %v1065_v33, %v4825_v6  ;;  %v4850_v33 = vld [vmem:[%s4577_s12 + $0xb8] sm:$0xff]  ;;  %v1028_v10 = vmul.f32 %v4595_v56, %v4747_v58  ;;  %v4905_v58 = vrot.slane %v4638_v5, %v4703_v26 }
 0x10d   : > { %v1678_v0 = vadd.f32 %v4647_v8, %v1647_v25  ;;  %vm1703_vm4 = vcmp.gt.f32.partialorder %v1695_v35, 0.0  ;;  %v1711_v2 = vmul.f32 0.2, %v1695_v35 }
 0x10e   : > { %6294 = vst [vmem:[#allocation24_spill] sm:$0xff] %v4834_v51  ;;  %v1690_v51 = vmul.f32 %v4798_v36, %v4845_v49 }
 0x10f   : > { %v1719_v53 = vsel %vm1703_vm4, %v1695_v35, %v1711_v2  ;;  %v1696_v39 = vadd.f32 %v1688_v29, %v1678_v0  ;;  %v4868_v2 = vsel %vm1417_vm0, 0.0, %v6257_v44  ;;  %vm1045_vm4 = vcmp.gt.f32.partialorder %v4766_v34, 0.0 }
 0x110   : > { %v1651_v63 = vpop.permute.xlu0 %1650  ;;  %v4857_v7 = vadd.f32 %v1719_v53, %v4838_v50 }
 0x111   : > { %v1679_v25 = vadd.f32 %v4647_v8, %v1651_v63  ;;  %2139 = vperm.xlu0 %3962, %v4665_v16   ;;  %vm1704_vm2 = vcmp.gt.f32.partialorder %v1696_v39, 0.0  ;;  %v1712_v4 = vmul.f32 0.2, %v1696_v39 }
 0x112   : > { %6295 = vst [vmem:[#allocation25_spill] sm:$0xff] %v4857_v7 }
 0x113   : > { %v1720_v29 = vsel %vm1704_vm2, %v1696_v39, %v1712_v4  ;;  %v1697_v0 = vadd.f32 %v1689_v42, %v1679_v25  ;;  %v6298_v42 = vmov 1   ;;  %v4878_v39 = vsel %vm1418_vm3, 0.0, %v6257_v44 }
 0x114   : > { %v1655_v35 = vpop.permute.xlu0 %1654  ;;  %v4864_v16 = vadd.f32 %v1720_v29, %v4854_v60  ;;  %v839_v44 = vadd.f32 %v4718_v32, %v818_v23 }
 0x115   : > { %v1680_v63 = vadd.f32 %v4647_v8, %v1655_v35  ;;  %2149 = vperm.xlu0 %3962, %v4850_v33   ;;  %vm1705_vm6 = vcmp.gt.f32.partialorder %v1697_v0, 0.0  ;;  %v1713_v53 = vmul.f32 0.2, %v1697_v0  ;;  %v823_v35 = vpop.permute.xlu1 %822  ;;  %v6309_v40 = vld [vmem:[#allocation24_spill] sm:$0xff] }
 0x116   : > { %6296 = vst [vmem:[#allocation26_spill] sm:$0xff] %v4864_v16 }
 0x117   : > { %v1698_v7 = vadd.f32 %v1690_v51, %v1680_v63  ;;  %v1721_v36 = vsel %vm1705_vm6, %v1697_v0, %v1713_v53 }
 0x118   : > { %v4870_v61 = vpop.permute.xlu0 %1658  ;;  %v4873_v4 = vadd.f32 %v1721_v36, %v4868_v2  ;;  %v1018_v36 = vadd.f32 %v4709_v28, %v4730_v43  ;;  %v850_v28 = vmul.f32 %v4712_v30, %v4614_v62 }
 0x119   : > { %3966 = vset.pattern.permute.xlu0 %v6298_v42  ;;  %vm1706_vm7 = vcmp.gt.f32.partialorder %v1698_v7, 0.0  ;;  %v1714_v25 = vmul.f32 0.2, %v1698_v7  ;;  %v828_v0 = vpop.permute.xlu1 %827 }
 0x11a   : > { %6297 = vst [vmem:[#allocation27_spill] sm:$0xff] %v4873_v4  ;;  %v849_v4 = vmul.f32 %v4712_v30, %v4600_v57  ;;  %v851_v57 = vmul.f32 %v4712_v30, %v4630_v3  ;;  %v841_v23 = vadd.f32 %v4718_v32, %v828_v0 }
 0x11b   : > { %v1722_v29 = vsel %vm1706_vm7, %v1698_v7, %v1714_v25  ;;  %v1036_v7 = vadd.f32 %v1028_v10, %v1018_v36 }
 0x11c   : > { %v4880_v38 = vpop.permute.xlu0 %1662  ;;  %v4883_v51 = vadd.f32 %v1722_v29, %v4878_v39 }
 0x11d   : > { %v1453_v29 = vpop.permute.xlu1 %1452  ;;  %v1052_v43 = vmul.f32 0.2, %v1036_v7  ;;  %vm1044_vm8 = vcmp.gt.f32.partialorder %v1036_v7, 0.0 }
 0x11e   : > { %6299 = vst [vmem:[#allocation28_spill] sm:$0xff] %v4883_v51  ;;  %v840_v51 = vadd.f32 %v4718_v32, %v823_v35  ;;  %v4910_v35 = vstv %s3299_s13  ;;  %v1494_v5 = vadd.f32 %v4905_v58, %v1453_v29 }
 0x11f   : > { %v1060_v62 = vsel %vm1044_vm8, %v1036_v7, %v1052_v43 }
 0x120   : > { %v4885_v63 = vpop.permute.xlu0 %1666  ;;  %v858_v10 = vadd.f32 %v850_v28, %v840_v51  ;;  %v4918_v3 = vadd.f32 %v1060_v62, %v4779_v52 }
 0x121   : > { %6300 = vst [vmem:[#allocation29_spill] sm:$0xff] %v4885_v63  ;;  %v857_v63 = vadd.f32 %v849_v4, %v839_v44  ;;  %v1458_v44 = vpop.permute.xlu1 %1457 }
 0x122   : > { %v874_v26 = vmul.f32 0.2, %v858_v10  ;;  %vm866_vm11 = vcmp.gt.f32.partialorder %v858_v10, 0.0  ;;  %v1495_v29 = vadd.f32 %v4905_v58, %v1458_v44 }
 0x123   : > { %v873_v36 = vmul.f32 0.2, %v857_v63  ;;  %vm865_vm10 = vcmp.gt.f32.partialorder %v857_v63, 0.0 }
 0x124   : > { %v4891_v53 = vpop.permute.xlu0 %1670 }
 0x125   : > { %6301 = vst [vmem:[#allocation30_spill] sm:$0xff] %v4891_v53  ;;  %v859_v53 = vadd.f32 %v851_v57, %v841_v23  ;;  %v1463_v7 = vpop.permute.xlu1 %1462 }
 0x126   : > { %v1496_v23 = vadd.f32 %v4905_v58, %v1463_v7 }
 0x127   : > { %v875_v28 = vmul.f32 0.2, %v859_v53  ;;  %vm867_vm12 = vcmp.gt.f32.partialorder %v859_v53, 0.0 }
 0x128   : > { %v4896_v25 = vpop.permute.xlu0 %2304 }
 0x129   : > { %6302 = vst [vmem:[#allocation31_spill] sm:$0xff] %v4896_v25  ;;  %v881_v25 = vsel %vm865_vm10, %v857_v63, %v873_v36  ;;  %v882_v63 = vsel %vm866_vm11, %v858_v10, %v874_v26  ;;  %v1468_v36 = vpop.permute.xlu1 %1467 }
 0x12a   : > { %v4924_v0 = vadd.f32 %v881_v25, %v4790_v12  ;;  %v4933_v57 = vadd.f32 %v882_v63, %v4806_v37  ;;  %v1506_v12 = vmul.f32 %v4910_v35, %v4831_v46  ;;  %v883_v25 = vsel %vm867_vm12, %v859_v53, %v875_v28 }
 0x12b   : > { %v4942_v10 = vadd.f32 %v883_v25, %v4825_v6  ;;  %v1507_v37 = vmul.f32 %v4910_v35, %v4845_v49  ;;  %v1497_v53 = vadd.f32 %v4905_v58, %v1468_v36  ;;  %v6308_v36 = vld [vmem:[#allocation23_spill] sm:$0xff] }
 0x12c   : > { %v4901_v56 = vpop.permute.xlu0 %2308 }
 0x12d   : > { %6303 = vst [vmem:[#allocation32_spill] sm:$0xff] %v4901_v56  ;;  %v1504_v56 = vmul.f32 %v4910_v35, %v4796_v59  ;;  %v1505_v59 = vmul.f32 %v4910_v35, %v4814_v1 }
 0x12f   : > { %v1512_v43 = vadd.f32 %v1504_v56, %v1494_v5  ;;  %v1513_v26 = vadd.f32 %v1505_v59, %v1495_v29  ;;  %v844_v56 = vmul.f32 %v4712_v30, %v4706_v27  ;;  %v1514_v5 = vadd.f32 %v1506_v12, %v1496_v23 }
 0x130   : > { %v4912_v4 = vpop.permute.xlu0 %2312  ;;  %v1515_v29 = vadd.f32 %v1507_v37, %v1497_v53  ;;  %v3288_v37 = vld [vmem:[%s4575_s18 + $0x70] sm:$0xff]  ;;  %v5025_v53 = vpop.permute.xlu1 %2324 }
 0x131   : > { %v1528_v1 = vmul.f32 0.2, %v1512_v43  ;;  %vm1520_vm13 = vcmp.gt.f32.partialorder %v1512_v43, 0.0  ;;  %v1529_v62 = vmul.f32 0.2, %v1513_v26  ;;  %vm1521_vm14 = vcmp.gt.f32.partialorder %v1513_v26, 0.0 }
 0x132   : > { %v1530_v63 = vmul.f32 0.2, %v1514_v5  ;;  %vm1522_vm0 = vcmp.gt.f32.partialorder %v1514_v5, 0.0  ;;  %v1531_v23 = vmul.f32 0.2, %v1515_v29  ;;  %vm1523_vm1 = vcmp.gt.f32.partialorder %v1515_v29, 0.0 }
 0x133   : > { %v1536_v46 = vsel %vm1520_vm13, %v1512_v43, %v1528_v1  ;;  %v1537_v6 = vsel %vm1521_vm14, %v1513_v26, %v1529_v62  ;;  %v3286_v26 = vld [vmem:[%s4575_s18 + $0x60] sm:$0xff]  ;;  %v6310_v62 = vld [vmem:[#allocation22_spill] sm:$0xff]  ;;  %vm1421_vm7 = vcmp.gt.f32.partialorder %v3288_v37, -1e+29 }
 0x134   : > { %v4920_v51 = vpop.permute.xlu0 %2316  ;;  %1078 = vmax.xlane.f32.xlu0 %v4918_v3  ;;  %v4950_v27 = vadd.f32 %v1536_v46, %v4838_v50  ;;  %v4954_v43 = vadd.f32 %v1537_v6, %v4854_v60  ;;  %v1538_v25 = vsel %vm1522_vm0, %v1514_v5, %v1530_v63  ;;  %v1539_v1 = vsel %vm1523_vm1, %v1515_v29, %v1531_v23  ;;  %v6312_v23 = vld [vmem:[#allocation29_spill] sm:$0xff] }
 0x135   : > { %v4962_v50 = vadd.f32 %v1538_v25, %v4868_v2  ;;  %v4967_v60 = vadd.f32 %v1539_v1, %v4878_v39  ;;  %v1054_v2 = vmul.f32 0.2, %v4774_v48  ;;  %vm1419_vm6 = vcmp.gt.f32.partialorder %v3286_v26, -1e+29  ;;  %v5042_v25 = vld [vmem:[%s6234_s4 + $0x4] sm:$0x3] }
 0x136   : > { %6304 = vst [vmem:[#allocation33_spill] sm:$0xff] %v4954_v43  ;;  %v1681_v46 = vadd.f32 %v4647_v8, %v4870_v61  ;;  %v1682_v6 = vadd.f32 %v4647_v8, %v4880_v38  ;;  %v5034_v29 = vsel %vm1421_vm7, %v3288_v37, 0.0  ;;  %v1683_v38 = vadd.f32 %v4647_v8, %v6312_v23 }
 0x137   : > { %6305 = vst [vmem:[#allocation34_spill] sm:$0xff] %v4962_v50  ;;  %6306 = vst [vmem:[#allocation35_spill] sm:$0xff] %v4967_v60 }
 0x138   : > { %v4929_v52 = vpop.permute.xlu0 %2320  ;;  %902 = vmax.xlane.f32.xlu0 %v4924_v0 }
 0x13c   : > { %904 = vmax.xlane.f32.xlu0 %v4933_v57 }
 0x13d   : > { %v793_v44 = vpop.permute.xlu0 %792 }
 0x13e   : > { %v834_v7 = vadd.f32 %v4718_v32, %v793_v44 }
 0x140   : > { %v852_v59 = vadd.f32 %v844_v56, %v834_v7  ;;  %906 = vmax.xlane.f32.xlu0 %v4942_v10  ;;  %v3287_v56 = vld [vmem:[%s4575_s18 + $0x68] sm:$0xff]  ;;  %v6311_v7 = vld [vmem:[#allocation25_spill] sm:$0xff] }
 0x142   : > { %vm860_vm15 = vcmp.gt.f32.partialorder %v852_v59, 0.0  ;;  %v868_v49 = vmul.f32 0.2, %v852_v59 }
 0x144   : > { %1552 = vmax.xlane.f32.xlu0 %v4950_v27  ;;  %v876_v28 = vsel %vm860_vm15, %v852_v59, %v868_v49  ;;  %v3289_v59 = vld [vmem:[%s4575_s18 + $0x78] sm:$0xff]  ;;  %v3336_v49 = vld [vmem:[%s4575_s18 + $0x80] sm:$0xff] }
 0x145   : > { %v4957_v12 = vadd.f32 %v876_v28, %v4734_v45  ;;  %v3351_v45 = vld [vmem:[%s4577_s12 + $0xb0] sm:$0xff]  ;;  %s3370_s12 = sld [smem:[#allocation3 + $0x101]]  ;;  %vm1422_vm8 = vcmp.gt.f32.partialorder %v3289_v59, -1e+29  ;;  %vm2077_vm10 = vcmp.gt.f32.partialorder %v3336_v49, -1e+29 }
 0x147   : > { %892 = vmax.xlane.f32.xlu1 %v4957_v12 }
 0x148   : > { %1554 = vmax.xlane.f32.xlu0 %v4954_v43 }
 0x14b   : > { %894 = vmax.xlane.f32.xlu1 %v4762_v24 }
 0x14c   : > { %1556 = vmax.xlane.f32.xlu0 %v4962_v50  ;;  %v1510_v50 = vmul.f32 %v4910_v35, %v5034_v29 }
 0x150   : > { %1558 = vmax.xlane.f32.xlu0 %v4967_v60 }
 0x15c   : > { %1472 = vperm.xlu1 %3964, %v4654_v13   ;;  %v837_v13 = vadd.f32 %v4718_v32, %v4819_v9  ;;  %v6307_v9 = vmov -1e+30  }
 0x15d   : > { %v769_v31 = vsel %vm761_vm9, 0.0, %v6307_v9  ;;  %vm1420_vm9 = vcmp.gt.f32.partialorder %v3287_v56, -1e+29  ;;  %v5104_v37 = vsel %vm2077_vm10, 0.0, %v6307_v9 }
 0x15e   : > { %v1436_v44 = vsel %vm1420_vm9, %v3287_v56, 0.0 }
 0x15f   : > { %v1692_v63 = vmul.f32 %v6310_v62, %v1436_v44 }
 0x160   : > { %1477 = vperm.xlu1 %3964, %v4658_v14   ;;  %v847_v14 = vmul.f32 %v4712_v30, %v4740_v47  ;;  %v768_v47 = vsel %vm760_vm5, 0.0, %v6307_v9  ;;  %vm1046_vm5 = vcmp.gt.f32.partialorder %v4774_v48, 0.0 }
 0x161   : > { %v1700_v1 = vadd.f32 %v1692_v63, %v1682_v6 }
 0x163   : > { %vm1708_vm13 = vcmp.gt.f32.partialorder %v1700_v1, 0.0 }
 0x164   : > { %1482 = vperm.xlu1 %3964, %v4662_v15   ;;  %v855_v15 = vadd.f32 %v847_v14, %v837_v13  ;;  %v5050_v13 = vld [vmem:[%s4575_s18 + $0x88] sm:$0xff]  ;;  %v5053_v14 = vsel %vm1422_vm8, %v3289_v59, 0.0  ;;  %v5109_v59 = vld [vmem:[%s4575_s18 + $0xa0] sm:$0xff] }
 0x165   : > { %vm2078_vm12 = vcmp.gt.f32.partialorder %v5050_v13, -1e+29  ;;  %vm2081_vm1 = vcmp.gt.f32.partialorder %v5109_v59, -1e+29 }
 0x166   : > { %vm863_vm3 = vcmp.gt.f32.partialorder %v855_v15, 0.0  ;;  %v5098_v56 = vsel %vm2078_vm12, %v5050_v13, 0.0 }
 0x168   : > { %1487 = vperm.xlu1 %3964, %v4671_v17   ;;  %v838_v17 = vadd.f32 %v4718_v32, %v4840_v41 }
 0x16c   : > { %2114 = vperm.xlu1 %3964, %v4676_v18   ;;  %v871_v18 = vmul.f32 0.2, %v855_v15 }
 0x170   : > { %2119 = vperm.xlu1 %3964, %v4680_v19   ;;  %v848_v19 = vmul.f32 %v4712_v30, %v4757_v11 }
 0x174   : > { %2124 = vperm.xlu1 %3964, %v4684_v20   ;;  %v879_v20 = vsel %vm863_vm3, %v855_v15, %v871_v18  ;;  %v6313_v15 = vld [vmem:[#allocation18_spill] sm:$0xff] }
 0x178   : > { %2129 = vperm.xlu1 %3964, %v4688_v21   ;;  %v1053_v21 = vmul.f32 0.2, %v4766_v34 }
 0x17a   : > { %v1061_v32 = vsel %vm1045_vm4, %v4766_v34, %v1053_v21  ;;  %v5063_v21 = vstv %s3370_s12 }
 0x17b   : > { %v5000_v30 = vadd.f32 %v1061_v32, %v768_v47  ;;  %v6315_v32 = vld [vmem:[#allocation30_spill] sm:$0xff] }
 0x17c   : > { %2134 = vperm.xlu1 %3964, %v4692_v22   ;;  %v856_v22 = vadd.f32 %v848_v19, %v838_v17  ;;  %v5057_v17 = vrot.slane %v5042_v25, %v6313_v15  ;;  %v1427_v19 = vsel %vm1419_vm6, 0.0, %v6307_v9 }
 0x17e   : > { %v872_v41 = vmul.f32 0.2, %v856_v22  ;;  %vm864_vm2 = vcmp.gt.f32.partialorder %v856_v22, 0.0  ;;  %v2343_v13 = vadd.f32 %v5057_v17, %v4929_v52  ;;  %v2344_v52 = vadd.f32 %v5057_v17, %v5025_v53 }
 0x180   : > { %2144 = vperm.xlu1 %3964, %v3351_v45   ;;  %v880_v11 = vsel %vm864_vm2, %v856_v22, %v872_v41  ;;  %v6314_v22 = vld [vmem:[#allocation27_spill] sm:$0xff]  ;;  %v1684_v41 = vadd.f32 %v4647_v8, %v6315_v32  ;;  %v5087_v8 = vsel %vm1421_vm7, 0.0, %v6307_v9 }
 0x181   : > { %v5008_v34 = vadd.f32 %v880_v11, %v769_v31  ;;  %v1716_v11 = vmul.f32 0.2, %v1700_v1 }
 0x183   : > { %v1724_v15 = vsel %vm1708_vm13, %v1700_v1, %v1716_v11 }
 0x184   : > { %3965 = vset.pattern.permute.xlu1 %v6298_v42  ;;  %v1062_v42 = vsel %vm1046_vm5, %v4774_v48, %v1054_v2  ;;  %v1435_v48 = vsel %vm1419_vm6, %v3286_v26, 0.0  ;;  %v5078_v26 = vld [vmem:[%s4575_s18 + $0x98] sm:$0xff] }
 0x185   : > { %2328 = vperm.xlu1 %3965, %v3351_v45   ;;  %v5012_v39 = vadd.f32 %v1062_v42, %v769_v31  ;;  %v1691_v5 = vmul.f32 %v6310_v62, %v1435_v48  ;;  %v1693_v45 = vmul.f32 %v6310_v62, %v5034_v29  ;;  %v1694_v31 = vmul.f32 %v6310_v62, %v5053_v14  ;;  %v5075_v42 = vld [vmem:[%s4575_s18 + $0x90] sm:$0xff] }
 0x186   : > { %v5091_v62 = vsel %vm1422_vm8, 0.0, %v6307_v9  ;;  %vm2079_vm14 = vcmp.gt.f32.partialorder %v5075_v42, -1e+29  ;;  %vm2080_vm15 = vcmp.gt.f32.partialorder %v5078_v26, -1e+29 }
 0x187   : > { %v1699_v28 = vadd.f32 %v1691_v5, %v1681_v46  ;;  %v1701_v2 = vadd.f32 %v1693_v45, %v1683_v38  ;;  %v1508_v46 = vmul.f32 %v4910_v35, %v1435_v48  ;;  %v5083_v5 = vsel %vm1420_vm9, 0.0, %v6307_v9  ;;  %v6316_v38 = vld [vmem:[#allocation28_spill] sm:$0xff] }
 0x188   : > { %v1702_v32 = vadd.f32 %v1694_v31, %v1684_v41  ;;  %v5123_v60 = vsel %vm2079_vm14, %v5075_v42, 0.0  ;;  %v5128_v1 = vsel %vm2080_vm15, %v5078_v26, 0.0  ;;  %v5134_v41 = vadd.f32 %v1724_v15, %v5083_v5  ;;  %v6320_v31 = vld [vmem:[#allocation32_spill] sm:$0xff] }
 0x189   : > { %2332 = vperm.xlu1 %3965, %v4850_v33   ;;  %v4996_v33 = vadd.f32 %v879_v20, %v768_v47  ;;  %v1715_v20 = vmul.f32 0.2, %v1699_v28  ;;  %vm1707_vm11 = vcmp.gt.f32.partialorder %v1699_v28, 0.0  ;;  %v5067_v47 = vsel %vm2077_vm10, %v3336_v49, 0.0 }
 0x18a   : > { %v2349_v23 = vmul.f32 %v5063_v21, %v5067_v47  ;;  %vm1709_vm0 = vcmp.gt.f32.partialorder %v1701_v2, 0.0  ;;  %6319 = vst [vmem:[#allocation22_spill] sm:$0xff] %v5134_v41  ;;  %vm1710_vm4 = vcmp.gt.f32.partialorder %v1702_v32, 0.0  ;;  %v2351_v15 = vmul.f32 %v5063_v21, %v5123_v60 }
 0x18b   : > { %v1723_v63 = vsel %vm1707_vm11, %v1699_v28, %v1715_v20  ;;  %v6317_v28 = vld [vmem:[#allocation31_spill] sm:$0xff]  ;;  %v1717_v20 = vmul.f32 0.2, %v1701_v2  ;;  %v2352_v43 = vmul.f32 %v5063_v21, %v5128_v1 }
 0x18c   : > { %v2339_v45 = vadd.f32 %v5057_v17, %v6317_v28 }
 0x18e   : > { %v2357_v28 = vadd.f32 %v2349_v23, %v2339_v45  ;;  %v5152_v23 = vld [vmem:[%s4575_s18 + $0xa8] sm:$0xff] }
 0x18f   : > { %vm2082_vm6 = vcmp.gt.f32.partialorder %v5152_v23, -1e+29 }
 0x190   : > { %vm2365_vm5 = vcmp.gt.f32.partialorder %v2357_v28, 0.0 }
 0x1ad   : > { %896 = vmax.xlane.f32.xlu1 %v4782_v54 }
 0x1b1   : > { %898 = vmax.xlane.f32.xlu1 %v4996_v33 }
 0x1b5   : > { %1080 = vmax.xlane.f32.xlu1 %v5000_v30 }
 0x1b9   : > { %900 = vmax.xlane.f32.xlu1 %v5008_v34 }
 0x1bd   : > { %1082 = vmax.xlane.f32.xlu1 %v5012_v39 }
 0x1c1   : > { %1084 = vmax.xlane.f32.xlu1 %v4801_v55 }
 0x1c5   : > { %1086 = vmax.xlane.f32.xlu1 %v6308_v36 }
 0x1c9   : > { %1088 = vmax.xlane.f32.xlu1 %v6309_v40 }
 0x1cd   : > { %1735 = vmax.xlane.f32.xlu1 %v6311_v7 }
 0x1d0   : > { %v5037_v61 = vpop.xlane.xlu1 %892 }
 0x1d1   : > { %1737 = vmax.xlane.f32.xlu1 %v4864_v16  ;;  %v2350_v16 = vmul.f32 %v5063_v21, %v5098_v56 }
 0x1d4   : > { %v5059_v18 = vpop.xlane.xlu1 %894 }
 0x1d5   : > { %1739 = vmax.xlane.f32.xlu1 %v6314_v22  ;;  %v5113_v22 = vadd.f32 %v1723_v63, %v1427_v19  ;;  %v1725_v63 = vsel %vm1709_vm0, %v1701_v2, %v1717_v20  ;;  %v5149_v2 = vsel %vm2081_vm1, %v5109_v59, 0.0  ;;  %v2373_v20 = vmul.f32 0.2, %v2357_v28 }
 0x1d7   : > { %6318 = vst [vmem:[#allocation23_spill] sm:$0xff] %v5113_v22 }
 0x1d8   : > { %v1473_v6 = vpop.permute.xlu1 %1472 }
 0x1d9   : > { %v1498_v48 = vadd.f32 %v4905_v58, %v1473_v6  ;;  %1741 = vmax.xlane.f32.xlu1 %v6316_v38  ;;  %v1509_v6 = vmul.f32 %v4910_v35, %v1436_v44 }
 0x1db   : > { %v1516_v38 = vadd.f32 %v1508_v46, %v1498_v48  ;;  %v2340_v46 = vadd.f32 %v5057_v17, %v6320_v31  ;;  %v1718_v48 = vmul.f32 0.2, %v1702_v32 }
 0x1dc   : > { %v1478_v49 = vpop.permute.xlu1 %1477 }
 0x1dd   : > { %v1499_v44 = vadd.f32 %v4905_v58, %v1478_v49  ;;  %1743 = vmax.xlane.f32.xlu1 %v5113_v22  ;;  %vm1524_vm3 = vcmp.gt.f32.partialorder %v1516_v38, 0.0  ;;  %v1532_v11 = vmul.f32 0.2, %v1516_v38  ;;  %v1726_v45 = vsel %vm1710_vm4, %v1702_v32, %v1718_v48 }
 0x1df   : > { %v1540_v7 = vsel %vm1524_vm3, %v1516_v38, %v1532_v11  ;;  %v1517_v40 = vadd.f32 %v1509_v6, %v1499_v44  ;;  %v2341_v38 = vadd.f32 %v5057_v17, %v4912_v4  ;;  %v2358_v6 = vadd.f32 %v2350_v16, %v2340_v46  ;;  %v5183_v46 = vpop.xlane.xlu0 %1074 }
 0x1e0   : > { %v1483_v49 = vpop.permute.xlu1 %1482  ;;  %v5140_v22 = vadd.f32 %v1540_v7, %v1427_v19  ;;  %v5157_v7 = vadd.f32 %v1725_v63, %v5087_v8  ;;  %v1511_v11 = vmul.f32 %v4910_v35, %v5053_v14  ;;  %v5166_v63 = vstv %s5116_s15  ;;  %s6269_s15 = sshll.u32 %s4383_s0, 10 }
 0x1e1   : > { %v1500_v29 = vadd.f32 %v4905_v58, %v1483_v49  ;;  %1745 = vmax.xlane.f32.xlu1 %v5134_v41  ;;  %vm1525_vm2 = vcmp.gt.f32.partialorder %v1517_v40, 0.0  ;;  %v1533_v19 = vmul.f32 0.2, %v1517_v40  ;;  %v6322_v49 = vld [vmem:[#allocation19_spill] sm:$0xff]  ;;  %v5178_v35 = vadd.f32 %v1726_v45, %v5091_v62 }
 0x1e2   : > { %6321 = vst [vmem:[#allocation29_spill] sm:$0xff] %v5140_v22  ;;  %1560 = vmax.xlane.f32.xlu0 %v5140_v22  ;;  %v5170_v41 = vrot.slane %v5042_v25, %v6322_v49  ;;  %v2381_v25 = vsel %vm2365_vm5, %v2357_v28, %v2373_v20  ;;  %v2374_v14 = vmul.f32 0.2, %v2358_v6  ;;  %v2359_v32 = vadd.f32 %v2351_v15, %v2341_v38 }
 0x1e3   : > { %v1541_v44 = vsel %vm1525_vm2, %v1517_v40, %v1533_v19  ;;  %v1518_v31 = vadd.f32 %v1510_v50, %v1500_v29  ;;  %v2342_v40 = vadd.f32 %v5057_v17, %v4920_v51  ;;  %vm2366_vm7 = vcmp.gt.f32.partialorder %v2358_v6, 0.0 }
 0x1e4   : > { %v1488_v4 = vpop.permute.xlu1 %1487  ;;  %v5173_v22 = vadd.f32 %v1541_v44, %v5083_v5  ;;  %v2098_v29 = vsel %vm2082_vm6, %v5152_v23, 0.0  ;;  %v2086_v28 = vsel %vm2078_vm12, 0.0, %v6307_v9  ;;  %v2353_v15 = vmul.f32 %v5063_v21, %v5149_v2 }
 0x1e5   : > { %v1501_v16 = vadd.f32 %v4905_v58, %v1488_v4  ;;  %1747 = vmax.xlane.f32.xlu1 %v5157_v7  ;;  %vm1526_vm9 = vcmp.gt.f32.partialorder %v1518_v31, 0.0  ;;  %v1534_v50 = vmul.f32 0.2, %v1518_v31  ;;  %v2166_v58 = vmul.f32 %v5166_v63, %v5067_v47 }
 0x1e6   : > { %1562 = vmax.xlane.f32.xlu0 %v5173_v22  ;;  %v5201_v47 = vadd.f32 %v2381_v25, %v5104_v37  ;;  %vm2367_vm10 = vcmp.gt.f32.partialorder %v2359_v32, 0.0  ;;  %v2375_v20 = vmul.f32 0.2, %v2359_v32  ;;  %v2360_v44 = vadd.f32 %v2352_v43, %v2342_v40  ;;  %v5215_v43 = vpop.xlane.xlu0 %1076 }
 0x1e7   : > { %v1542_v5 = vsel %vm1526_vm9, %v1518_v31, %v1534_v50  ;;  %v1519_v48 = vadd.f32 %v1511_v11, %v1501_v16  ;;  %v2167_v31 = vmul.f32 %v5166_v63, %v5098_v56  ;;  %v2354_v4 = vmul.f32 %v5063_v21, %v2098_v29 }
 0x1e8   : > { %v2115_v19 = vpop.permute.xlu1 %2114  ;;  %v5191_v51 = vadd.f32 %v1542_v5, %v5087_v8  ;;  %v2382_v8 = vsel %vm2366_vm7, %v2358_v6, %v2374_v14  ;;  %v2087_v6 = vsel %vm2079_vm14, 0.0, %v6307_v9  ;;  %vm2368_vm12 = vcmp.gt.f32.partialorder %v2360_v44, 0.0  ;;  %v5226_v14 = vld [vmem:[%s4575_s18 + $0xb8] sm:$0xff] }
 0x1e9   : > { %v2156_v38 = vadd.f32 %v5170_v41, %v2115_v19  ;;  %1749 = vmax.xlane.f32.xlu1 %v5178_v35  ;;  %vm1527_vm8 = vcmp.gt.f32.partialorder %v1519_v48, 0.0  ;;  %v1535_v45 = vmul.f32 0.2, %v1519_v48  ;;  %v5222_v25 = vadd.f32 %v2382_v8, %v2086_v28 }
 0x1ea   : > { %1564 = vmax.xlane.f32.xlu0 %v5191_v51  ;;  %v2376_v42 = vmul.f32 0.2, %v2360_v44  ;;  %v2168_v53 = vmul.f32 %v5166_v63, %v5123_v60  ;;  %v5241_v60 = vsel %vm2081_vm1, 0.0, %v6307_v9  ;;  %vm2084_vm14 = vcmp.gt.f32.partialorder %v5226_v14, -1e+29 }
 0x1eb   : > { %v1543_v11 = vsel %vm1527_vm8, %v1519_v48, %v1535_v45  ;;  %v2174_v49 = vadd.f32 %v2166_v58, %v2156_v38  ;;  %v2361_v48 = vadd.f32 %v2353_v15, %v2343_v13  ;;  %v2088_v45 = vsel %vm2080_vm15, 0.0, %v6307_v9  ;;  %v5249_v13 = vld [vmem:[%s4575_s18 + $0xb0] sm:$0xff]  ;;  %s1373_s18 = sld [smem:[#allocation6]] }
 0x1ec   : > { %v2120_v16 = vpop.permute.xlu1 %2119  ;;  %v5210_v50 = vadd.f32 %v1543_v11, %v5091_v62  ;;  %v2383_v62 = vsel %vm2367_vm10, %v2359_v32, %v2375_v20  ;;  %v2140_v32 = vpop.permute.xlu0 %2139  ;;  %v2384_v26 = vsel %vm2368_vm12, %v2360_v44, %v2376_v42  ;;  %v2171_v59 = vmul.f32 %v5166_v63, %v2098_v29 }
 0x1ed   : > { %v2157_v40 = vadd.f32 %v5170_v41, %v2120_v16  ;;  %2397 = vmax.xlane.f32.xlu1 %v5201_v47  ;;  %vm2182_vm11 = vcmp.gt.f32.partialorder %v2174_v49, 0.0  ;;  %v2190_v56 = vmul.f32 0.2, %v2174_v49  ;;  %v5245_v15 = vadd.f32 %v2383_v62, %v2087_v6 }
 0x1ee   : > { %1566 = vmax.xlane.f32.xlu0 %v5210_v50  ;;  %v2377_v16 = vmul.f32 0.2, %v2361_v48  ;;  %vm2369_vm15 = vcmp.gt.f32.partialorder %v2361_v48, 0.0  ;;  %vm2083_vm1 = vcmp.gt.f32.partialorder %v5249_v13, -1e+29  ;;  %v5264_v29 = vadd.f32 %v2384_v26, %v2088_v45 }
 0x1ef   : > { %v2198_v5 = vsel %vm2182_vm11, %v2174_v49, %v2190_v56  ;;  %v2175_v58 = vadd.f32 %v2167_v31, %v2157_v40  ;;  %v2169_v31 = vmul.f32 %v5166_v63, %v5128_v1  ;;  %v2161_v40 = vadd.f32 %v5170_v41, %v2140_v32 }
 0x1f0   : > { %v2125_v19 = vpop.permute.xlu1 %2124  ;;  %v5231_v38 = vadd.f32 %v2198_v5, %v5104_v37  ;;  %v2362_v37 = vadd.f32 %v2354_v4, %v2344_v52  ;;  %v2100_v1 = vsel %vm2084_vm14, %v5226_v14, 0.0  ;;  %v2170_v42 = vmul.f32 %v5166_v63, %v5149_v2 }
 0x1f1   : > { %v2158_v8 = vadd.f32 %v5170_v41, %v2125_v19  ;;  %2399 = vmax.xlane.f32.xlu1 %v5222_v25  ;;  %vm2183_vm13 = vcmp.gt.f32.partialorder %v2175_v58, 0.0  ;;  %v2191_v20 = vmul.f32 0.2, %v2175_v58  ;;  %v2385_v5 = vsel %vm2369_vm15, %v2361_v48, %v2377_v16  ;;  %v2150_v19 = vpop.permute.xlu0 %2149 }
 0x1f2   : > { %2214 = vmax.xlane.f32.xlu0 %v5231_v38  ;;  %vm2370_vm3 = vcmp.gt.f32.partialorder %v2362_v37, 0.0  ;;  %v2173_v48 = vmul.f32 %v5166_v63, %v2100_v1  ;;  %v2163_v16 = vadd.f32 %v5170_v41, %v2150_v19  ;;  %vm2754_vm12 = vcmask 261120  }
 0x1f3   : > { %v2199_v11 = vsel %vm2183_vm13, %v2175_v58, %v2191_v20  ;;  %v2176_v49 = vadd.f32 %v2168_v53, %v2158_v8  ;;  %v2179_v58 = vadd.f32 %v2171_v59, %v2161_v40  ;;  %v2099_v20 = vsel %vm2083_vm1, %v5249_v13, 0.0 }
 0x1f4   : > { %v2130_v56 = vpop.permute.xlu1 %2129  ;;  %v5255_v4 = vadd.f32 %v2199_v11, %v2086_v28  ;;  %v2378_v28 = vmul.f32 0.2, %v2362_v37  ;;  %v2181_v23 = vadd.f32 %v2173_v48, %v2163_v16 }
 0x1f5   : > { %v2159_v52 = vadd.f32 %v5170_v41, %v2130_v56  ;;  %2401 = vmax.xlane.f32.xlu1 %v5245_v15  ;;  %vm2184_vm0 = vcmp.gt.f32.partialorder %v2176_v49, 0.0  ;;  %v2192_v44 = vmul.f32 0.2, %v2176_v49  ;;  %v2172_v56 = vmul.f32 %v5166_v63, %v2099_v20 }
 0x1f6   : > { %2216 = vmax.xlane.f32.xlu0 %v5255_v4  ;;  %vm2187_vm5 = vcmp.gt.f32.partialorder %v2179_v58, 0.0  ;;  %vm2189_vm7 = vcmp.gt.f32.partialorder %v2181_v23, 0.0 }
 0x1f7   : > { %v2200_v62 = vsel %vm2184_vm0, %v2176_v49, %v2192_v44  ;;  %v2177_v53 = vadd.f32 %v2169_v31, %v2159_v52  ;;  %v6323_v49 = vld [vmem:[#allocation20_spill] sm:$0xff]  ;;  %v2386_v31 = vsel %vm2370_vm3, %v2362_v37, %v2378_v28  ;;  %v908_v52 = vsub.f32 %v4957_v12, %v5037_v61  ;;  %v6324_v61 = vld [vmem:[#allocation21_spill] sm:$0xff] }
 0x1f8   : > { %v2135_v32 = vpop.permute.xlu1 %2134  ;;  %v5268_v8 = vadd.f32 %v2200_v62, %v2087_v6  ;;  %v1090_v2 = vsub.f32 %v6323_v49, %v5183_v46  ;;  %v5280_v6 = vadd.f32 %v2385_v5, %v5241_v60  ;;  %v2090_v62 = vsel %vm2082_vm6, 0.0, %v6307_v9 }
 0x1f9   : > { %v2160_v26 = vadd.f32 %v5170_v41, %v2135_v32  ;;  %2403 = vmax.xlane.f32.xlu1 %v5264_v29  ;;  %vm2185_vm4 = vcmp.gt.f32.partialorder %v2177_v53, 0.0  ;;  %v2193_v11 = vmul.f32 0.2, %v2177_v53  ;;  %v2195_v5 = vmul.f32 0.2, %v2179_v58 }
 0x1fa   : > { %2218 = vmax.xlane.f32.xlu0 %v5268_v8  ;;  %v1098_v28 = vmul.f32 1.442695, %v1090_v2  ;;  %v5295_v63 = vadd.f32 %v2386_v31, %v2090_v62  ;;  %v2355_v12 = vmul.f32 %v5063_v21, %v2099_v20  ;;  %v916_v19 = vmul.f32 1.442695, %v908_v52  ;;  %v1079_v2 = vpop.xlane.xlu0 %1078 }
 0x1fb   : > { %v2201_v59 = vsel %vm2185_vm4, %v2177_v53, %v2193_v11  ;;  %v2178_v40 = vadd.f32 %v2170_v42, %v2160_v26  ;;  %v2203_v49 = vsel %vm2187_vm5, %v2179_v58, %v2195_v5 }
 0x1fc   : > { %v2145_v44 = vpop.permute.xlu1 %2144  ;;  %v5287_v46 = vadd.f32 %v2201_v59, %v2088_v45  ;;  %v1091_v45 = vsub.f32 %v6324_v61, %v5215_v43  ;;  %3967 = vpow2.f32 %v1098_v28  ;;  %v2356_v43 = vmul.f32 %v5063_v21, %v2100_v1 }
 0x1fd   : > { %v2162_v32 = vadd.f32 %v5170_v41, %v2145_v44  ;;  %2405 = vmax.xlane.f32.xlu1 %v5280_v6  ;;  %vm2186_vm2 = vcmp.gt.f32.partialorder %v2178_v40, 0.0  ;;  %v2194_v37 = vmul.f32 0.2, %v2178_v40  ;;  %v909_v41 = vsub.f32 %v4762_v24, %v5059_v18 }
 0x1fe   : > { %2220 = vmax.xlane.f32.xlu0 %v5287_v46  ;;  %v1100_v48 = vmul.f32 1.442695, %v1091_v45  ;;  %v5309_v16 = vadd.f32 %v2203_v49, %v2090_v62  ;;  %v2091_v24 = vsel %vm2083_vm1, 0.0, %v6307_v9  ;;  %3969 = vpow2.f32 %v916_v19  ;;  %v979_v45 = vld [vmem:[%s6236_s6 + $0x78] sm:$0xff]  ;;  %v3277_v49 = vld [vmem:[%s6236_s6 + $0xe0] sm:$0xff] }
 0x1ff   : > { %v2202_v42 = vsel %vm2186_vm2, %v2178_v40, %v2194_v37  ;;  %v2180_v53 = vadd.f32 %v2172_v56, %v2162_v32  ;;  %v918_v58 = vmul.f32 1.442695, %v909_v41  ;;  %v2197_v40 = vmul.f32 0.2, %v2181_v23  ;;  %3636 = vmatprep.subr.mxu1 %v979_v45  ;;  %v3278_v41 = vld [vmem:[%s6236_s6 + $0xe8] sm:$0xff] }
 0x200   : > { %v2329_v26 = vpop.permute.xlu1 %2328  ;;  %v5303_v11 = vadd.f32 %v2202_v42, %v5241_v60  ;;  %v1092_v60 = vsub.f32 %v4918_v3, %v1079_v2  ;;  %3971 = vpow2.f32 %v1100_v48  ;;  %v978_v42 = vld [vmem:[%s6236_s6 + $0x70] sm:$0xff]  ;;  %3637 = vmatpush3.msra.mxu1 %v979_v45  ;;  %v976_v2 = vld [vmem:[%s6236_s6 + $0x60] sm:$0xff]  ;;  %v3266_v45 = vld [vmem:[%s6236_s6 + $0x88] sm:$0xff] }
 0x201   : > { %v2345_v31 = vadd.f32 %v5057_v17, %v2329_v26  ;;  %2407 = vmax.xlane.f32.xlu1 %v5295_v63  ;;  %v2196_v20 = vmul.f32 0.2, %v2180_v53  ;;  %vm2188_vm6 = vcmp.gt.f32.partialorder %v2180_v53, 0.0  ;;  %3973 = vpow2.f32 %v918_v58  ;;  %3638 = vmatprep.subr.mxu1 %v978_v42  ;;  %v977_v26 = vld [vmem:[%s6236_s6 + $0x68] sm:$0xff]  ;;  %v3275_v48 = vld [vmem:[%s6236_s6 + $0xd0] sm:$0xff]  ;;  %v3273_v58 = vld [vmem:[%s6236_s6 + $0xc0] sm:$0xff] }
 0x202   : > { %2222 = vmax.xlane.f32.xlu0 %v5303_v11  ;;  %v1102_v13 = vmul.f32 1.442695, %v1092_v60  ;;  %v2205_v32 = vsel %vm2189_vm7, %v2181_v23, %v2197_v40  ;;  %v3279_v23 = vld [vmem:[%s6236_s6 + $0xf0] sm:$0xff]  ;;  %3639 = vmatpush3.msra.mxu1 %v978_v42  ;;  %v973_v60 = vld [vmem:[%s6236_s6 + $0x48] sm:$0xff]  ;;  %v3272_v40 = vld [vmem:[%s6236_s6 + $0xb8] sm:$0xff] }
 0x203   : > { %v2363_v18 = vadd.f32 %v2355_v12, %v2345_v31  ;;  %v2204_v52 = vsel %vm2188_vm6, %v2180_v53, %v2196_v20  ;;  %3640 = vmatprep.subr.mxu1 %v977_v26  ;;  %v3276_v20 = vld [vmem:[%s6236_s6 + $0xd8] sm:$0xff]  ;;  %v3265_v42 = vld [vmem:[%s6236_s6 + $0x80] sm:$0xff] }
 0x204   : > { %v2333_v59 = vpop.permute.xlu1 %2332  ;;  %v5317_v62 = vadd.f32 %v2204_v52, %v2091_v24  ;;  %3975 = vpow2.f32 %v1102_v13  ;;  %3641 = vmatpush3.msra.mxu1 %v977_v26  ;;  %v3271_v52 = vld [vmem:[%s6236_s6 + $0xb0] sm:$0xff]  ;;  %v3269_v13 = vld [vmem:[%s6236_s6 + $0xa0] sm:$0xff]  ;;  %v903_v26 = vpop.xlane.xlu0 %902 }
 0x205   : > { %v2346_v56 = vadd.f32 %v5057_v17, %v2333_v59  ;;  %vm2371_vm9 = vcmp.gt.f32.partialorder %v2363_v18, 0.0  ;;  %v2379_v21 = vmul.f32 0.2, %v2363_v18  ;;  %v2092_v17 = vsel %vm2084_vm14, 0.0, %v6307_v9  ;;  %v3280_v9 = vld [vmem:[%s6236_s6 + $0xf8] sm:$0xff]  ;;  %3642 = vmatprep.subr.mxu1 %v976_v2  ;;  %v972_v59 = vld [vmem:[%s6236_s6 + $0x40] sm:$0xff] }
 0x206   : > { %2224 = vmax.xlane.f32.xlu0 %v5309_v16  ;;  %v5326_v28 = vadd.f32 %v2205_v32, %v2092_v17  ;;  %3592 = vmatprep.subr.mxu0 %v3280_v9  ;;  %v967_v32 = vld [vmem:[%s6236_s6 + $0x18] sm:$0xff] }
 0x207   : > { %v2364_v1 = vadd.f32 %v2356_v43, %v2346_v56  ;;  %v2387_v44 = vsel %vm2371_vm9, %v2363_v18, %v2379_v21  ;;  %3593 = vmatpush3.msra.mxu0 %v3280_v9  ;;  %v975_v43 = vld [vmem:[%s6236_s6 + $0x58] sm:$0xff]  ;;  %3643 = vmatpush3.msra.mxu1 %v976_v2  ;;  %v3274_v18 = vld [vmem:[%s6236_s6 + $0xc8] sm:$0xff]  ;;  %v970_v21 = vld [vmem:[%s6236_s6 + $0x30] sm:$0xff] }
 0x208   : > { %v5319_v3 = vadd.f32 %v2387_v44, %v2091_v24  ;;  %3594 = vmatprep.subr.mxu0 %v3279_v23  ;;  %v974_v24 = vld [vmem:[%s6236_s6 + $0x50] sm:$0xff]  ;;  %3644 = vmatprep.subr.mxu1 %v975_v43  ;;  %v971_v56 = vld [vmem:[%s6236_s6 + $0x38] sm:$0xff]  ;;  %v969_v44 = vld [vmem:[%s6236_s6 + $0x28] sm:$0xff] }
 0x209   : > { %v2380_v5 = vmul.f32 0.2, %v2364_v1  ;;  %vm2372_vm8 = vcmp.gt.f32.partialorder %v2364_v1, 0.0  ;;  %v5332_v61 = vpop.eup %3967  ;;  %3595 = vmatpush3.msra.mxu0 %v3279_v23  ;;  %3645 = vmatpush3.msra.mxu1 %v975_v43  ;;  %v966_v9 = vld [vmem:[%s6236_s6 + $0x10] sm:$0xff]  ;;  %v965_v23 = vld [vmem:[%s6236_s6 + $0x8] sm:$0xff] }
 0x20a   : > { %2226 = vmax.xlane.f32.xlu0 %v5317_v62  ;;  %2409 = vmax.xlane.f32.xlu1 %v5319_v3 }
 0x20b   : > { %v2388_v37 = vsel %vm2372_vm8, %v2364_v1, %v2380_v5  ;;  %v5334_v14 = vpop.eup %3969  ;;  %3596 = vmatprep.subr.mxu0 %v3278_v41  ;;  %3646 = vmatprep.subr.mxu1 %v974_v24  ;;  %v3270_v1 = vld [vmem:[%s6236_s6 + $0xa8] sm:$0xff]  ;;  %v968_v5 = vld [vmem:[%s6236_s6 + $0x20] sm:$0xff] }
 0x20c   : > { %v5328_v12 = vadd.f32 %v2388_v37, %v2092_v17  ;;  %3597 = vmatpush3.msra.mxu0 %v3278_v41  ;;  %3647 = vmatpush3.msra.mxu1 %v974_v24  ;;  %v3268_v17 = vld [vmem:[%s6236_s6 + $0x98] sm:$0xff]  ;;  %v3267_v37 = vld [vmem:[%s6236_s6 + $0x90] sm:$0xff]  ;;  %v964_v41 = vld [vmem:[%s6236_s6] sm:$0xff] }
 0x20d   : > { %v5350_v53 = vpop.eup %3971  ;;  %3598 = vmatprep.subr.mxu0 %v3277_v49  ;;  %3648 = vmatprep.subr.mxu1 %v973_v60 }
 0x20e   : > { %2228 = vmax.xlane.f32.xlu0 %v5326_v28  ;;  %2411 = vmax.xlane.f32.xlu1 %v5328_v12  ;;  %v5352_v19 = vpop.eup %3973 }
 0x20f   : > { %3599 = vmatpush3.msra.mxu0 %v3277_v49  ;;  %3649 = vmatpush3.msra.mxu1 %v973_v60 }
 0x210   : > { %3600 = vmatprep.subr.mxu0 %v3276_v20  ;;  %3650 = vmatprep.subr.mxu1 %v972_v59 }
 0x211   : > { %v5368_v31 = vpop.eup %3975  ;;  %3601 = vmatpush3.msra.mxu0 %v3276_v20  ;;  %3651 = vmatpush3.msra.mxu1 %v972_v59  ;;  %v905_v20 = vpop.xlane.xlu0 %904 }
 0x212   : > { %932 = vadd.xlane.f32.xlu0 %v5334_v14  ;;  %1114 = vadd.xlane.f32.xlu1 %v5332_v61 }
 0x213   : > { %3602 = vmatprep.subr.mxu0 %v3275_v48  ;;  %3652 = vmatprep.subr.mxu1 %v971_v56 }
 0x214   : > { %3603 = vmatpush3.msra.mxu0 %v3275_v48  ;;  %3653 = vmatpush3.msra.mxu1 %v971_v56  ;;  %v913_v56 = vsub.f32 %v4924_v0, %v903_v26 }
 0x215   : > { %3604 = vmatprep.subr.mxu0 %v3274_v18  ;;  %3654 = vmatprep.subr.mxu1 %v970_v21 }
 0x216   : > { %934 = vadd.xlane.f32.xlu0 %v5352_v19  ;;  %1116 = vadd.xlane.f32.xlu1 %v5350_v53 }
 0x217   : > { %3605 = vmatpush3.msra.mxu0 %v3274_v18  ;;  %3655 = vmatpush3.msra.mxu1 %v970_v21 }
 0x218   : > { %3606 = vmatprep.subr.mxu0 %v3273_v58  ;;  %3656 = vmatprep.subr.mxu1 %v969_v44 }
 0x219   : > { %3607 = vmatpush3.msra.mxu0 %v3273_v58  ;;  %3657 = vmatpush3.msra.mxu1 %v969_v44  ;;  %v907_v58 = vpop.xlane.xlu0 %906  ;;  %v926_v44 = vmul.f32 1.442695, %v913_v56 }
 0x21a   : > { %1118 = vadd.xlane.f32.xlu1 %v5368_v31  ;;  %3608 = vmatprep.subr.mxu0 %v3272_v40 }
 0x21b   : > { %3609 = vmatpush3.msra.mxu0 %v3272_v40  ;;  %3658 = vmatprep.subr.mxu1 %v968_v5 }
 0x21c   : > { %3610 = vmatprep.subr.mxu0 %v3271_v52  ;;  %3659 = vmatpush3.msra.mxu1 %v968_v5 }
 0x21d   : > { %3611 = vmatpush3.msra.mxu0 %v3271_v52  ;;  %3660 = vmatprep.subr.mxu1 %v967_v32 }
 0x21e   : > { %3612 = vmatprep.subr.mxu0 %v3270_v1  ;;  %3661 = vmatpush3.msra.mxu1 %v967_v32 }
 0x21f   : > { %3613 = vmatpush3.msra.mxu0 %v3270_v1  ;;  %3662 = vmatprep.subr.mxu1 %v966_v9 }
 0x220   : > { %3614 = vmatprep.subr.mxu0 %v3269_v13  ;;  %3663 = vmatpush3.msra.mxu1 %v966_v9 }
 0x221   : > { %3615 = vmatpush3.msra.mxu0 %v3269_v13  ;;  %3664 = vmatprep.subr.mxu1 %v965_v23  ;;  %v914_v13 = vsub.f32 %v4933_v57, %v905_v20 }
 0x222   : > { %3616 = vmatprep.subr.mxu0 %v3268_v17  ;;  %3665 = vmatpush3.msra.mxu1 %v965_v23 }
 0x223   : > { %3617 = vmatpush3.msra.mxu0 %v3268_v17  ;;  %3666 = vmatprep.subr.mxu1 %v964_v41  ;;  %v928_v0 = vmul.f32 1.442695, %v914_v13  ;;  %v6329_v13 = vld [vmem:[#allocation35_spill] sm:$0xff] }
 0x224   : > { %3618 = vmatprep.subr.mxu0 %v3267_v37  ;;  %3667 = vmatpush3.msra.mxu1 %v964_v41 }
 0x225   : > { %3619 = vmatpush3.msra.mxu0 %v3267_v37 }
 0x226   : > { %3620 = vmatprep.subr.mxu0 %v3266_v45 }
 0x227   : > { %3621 = vmatpush3.msra.mxu0 %v3266_v45 }
 0x228   : > { %3622 = vmatprep.subr.mxu0 %v3265_v42 }
 0x229   : > { %3623 = vmatpush3.msra.mxu0 %v3265_v42 }
 0x236   : > { %v897_v49 = vpop.xlane.xlu1 %896 }
 0x237   : > { %v910_v2 = vsub.f32 %v4782_v54, %v897_v49  ;;  %v1553_v54 = vpop.xlane.xlu0 %1552 }
 0x238   : > { %v1568_v23 = vsub.f32 %v4950_v27, %v1553_v54 }
 0x239   : > { %v920_v43 = vmul.f32 1.442695, %v910_v2  ;;  %v6325_v2 = vld [vmem:[#allocation33_spill] sm:$0xff] }
 0x23a   : > { %v899_v48 = vpop.xlane.xlu1 %898 }
 0x23b   : > { %3977 = vpow2.f32 %v920_v43  ;;  %v911_v24 = vsub.f32 %v4996_v33, %v899_v48  ;;  %v6326_v48 = vld [vmem:[#allocation24_spill] sm:$0xff] }
 0x23d   : > { %v922_v18 = vmul.f32 1.442695, %v911_v24 }
 0x23e   : > { %v1081_v60 = vpop.xlane.xlu1 %1080 }
 0x23f   : > { %3979 = vpow2.f32 %v922_v18  ;;  %v1093_v59 = vsub.f32 %v5000_v30, %v1081_v60  ;;  %v915_v30 = vsub.f32 %v4942_v10, %v907_v58  ;;  %v6327_v60 = vld [vmem:[#allocation34_spill] sm:$0xff] }
 0x241   : > { %v1104_v40 = vmul.f32 1.442695, %v1093_v59 }
 0x242   : > { %v901_v52 = vpop.xlane.xlu1 %900 }
 0x243   : > { %3981 = vpow2.f32 %v1104_v40  ;;  %v912_v21 = vsub.f32 %v5008_v34, %v901_v52  ;;  %v1555_v34 = vpop.xlane.xlu0 %1554  ;;  %v6328_v52 = vld [vmem:[#allocation25_spill] sm:$0xff] }
 0x244   : > { %v1569_v20 = vsub.f32 %v6325_v2, %v1555_v34  ;;  %v6332_v2 = vld [vmem:[#allocation28_spill] sm:$0xff] }
 0x245   : > { %v924_v1 = vmul.f32 1.442695, %v912_v21 }
 0x246   : > { %v1083_v5 = vpop.xlane.xlu1 %1082 }
 0x247   : > { %3983 = vpow2.f32 %v924_v1  ;;  %v1094_v33 = vsub.f32 %v5012_v39, %v1083_v5  ;;  %v930_v39 = vmul.f32 1.442695, %v915_v30  ;;  %v1557_v10 = vpop.xlane.xlu0 %1556 }
 0x248   : > { %v5450_v17 = vpop.eup %3977  ;;  %3985 = vpow2.f32 %v926_v44  ;;  %v1570_v58 = vsub.f32 %v6327_v60, %v1557_v10  ;;  %v6333_v60 = vld [vmem:[#allocation23_spill] sm:$0xff] }
 0x249   : > { %v1106_v32 = vmul.f32 1.442695, %v1094_v33  ;;  %936 = vadd.xlane.f32.xlu0 %v5450_v17 }
 0x24a   : > { %v1085_v37 = vpop.xlane.xlu1 %1084  ;;  %v1580_v44 = vmul.f32 1.442695, %v1570_v58 }
 0x24b   : > { %3987 = vpow2.f32 %v1106_v32  ;;  %v1095_v9 = vsub.f32 %v4801_v55, %v1085_v37  ;;  %v1576_v55 = vmul.f32 1.442695, %v1568_v23  ;;  %v1559_v56 = vpop.xlane.xlu0 %1558  ;;  %v6331_v23 = vld [vmem:[#allocation27_spill] sm:$0xff] }
 0x24c   : > { %v5455_v45 = vpop.eup %3979  ;;  %3989 = vpow2.f32 %v928_v0  ;;  %v1571_v5 = vsub.f32 %v6329_v13, %v1559_v56  ;;  %v6330_v0 = vld [vmem:[#allocation26_spill] sm:$0xff]  ;;  %v5512_v56 = vld [vmem:[%s6236_s6 + $0x1f8] sm:$0xff] }
 0x24d   : > { %v1108_v57 = vmul.f32 1.442695, %v1095_v9  ;;  %938 = vadd.xlane.f32.xlu0 %v5455_v45  ;;  %3680 = vmatprep.subr.mxu0 %v5512_v56 }
 0x24e   : > { %v1087_v42 = vpop.xlane.xlu1 %1086  ;;  %v1582_v9 = vmul.f32 1.442695, %v1571_v5 }
 0x24f   : > { %3991 = vpow2.f32 %v1108_v57  ;;  %v1096_v41 = vsub.f32 %v6308_v36, %v1087_v42  ;;  %v1578_v36 = vmul.f32 1.442695, %v1569_v20 }
 0x250   : > { %v5460_v26 = vpop.eup %3981  ;;  %3993 = vpow2.f32 %v930_v39 }
 0x251   : > { %v1110_v49 = vmul.f32 1.442695, %v1096_v41  ;;  %1120 = vadd.xlane.f32.xlu1 %v5460_v26 }
 0x252   : > { %v1089_v43 = vpop.xlane.xlu1 %1088 }
 0x253   : > { %3995 = vpow2.f32 %v1110_v49  ;;  %v1097_v24 = vsub.f32 %v6326_v48, %v1089_v43  ;;  %v5499_v48 = vld [vmem:[%s6236_s6 + $0x178] sm:$0xff] }
 0x254   : > { %v5465_v18 = vpop.eup %3983  ;;  %3997 = vpow2.f32 %v1576_v55  ;;  %3724 = vmatprep.subr.mxu1 %v5499_v48 }
 0x255   : > { %v1112_v27 = vmul.f32 1.442695, %v1097_v24  ;;  %940 = vadd.xlane.f32.xlu0 %v5465_v18  ;;  %v5469_v40 = vpop.eup %3985 }
 0x256   : > { %v1736_v59 = vpop.xlane.xlu1 %1735 }
 0x257   : > { %3999 = vpow2.f32 %v1112_v27  ;;  %v1751_v21 = vsub.f32 %v6328_v52, %v1736_v59 }
 0x258   : > { %v5472_v54 = vpop.eup %3987  ;;  %4001 = vpow2.f32 %v1578_v36 }
 0x259   : > { %v1759_v1 = vmul.f32 1.442695, %v1751_v21  ;;  %942 = vadd.xlane.f32.xlu0 %v5469_v40  ;;  %1122 = vadd.xlane.f32.xlu1 %v5472_v54  ;;  %v5477_v32 = vpop.eup %3989 }
 0x25a   : > { %v1738_v33 = vpop.xlane.xlu1 %1737 }
 0x25b   : > { %4003 = vpow2.f32 %v1759_v1  ;;  %v1752_v30 = vsub.f32 %v6330_v0, %v1738_v33  ;;  %v6335_v0 = vld [vmem:[#allocation29_spill] sm:$0xff] }
 0x25c   : > { %v5480_v37 = vpop.eup %3991  ;;  %4005 = vpow2.f32 %v1580_v44  ;;  %v6334_v44 = vld [vmem:[#allocation22_spill] sm:$0xff] }
 0x25d   : > { %v1761_v34 = vmul.f32 1.442695, %v1752_v30  ;;  %944 = vadd.xlane.f32.xlu0 %v5477_v32  ;;  %1124 = vadd.xlane.f32.xlu1 %v5480_v37  ;;  %v5484_v39 = vpop.eup %3993 }
 0x25e   : > { %v1740_v57 = vpop.xlane.xlu1 %1739 }
 0x25f   : > { %4007 = vpow2.f32 %v1761_v34  ;;  %v1753_v42 = vsub.f32 %v6331_v23, %v1740_v57 }
 0x260   : > { %v5487_v41 = vpop.eup %3995  ;;  %4009 = vpow2.f32 %v1582_v9 }
 0x261   : > { %v1763_v10 = vmul.f32 1.442695, %v1753_v42  ;;  %946 = vadd.xlane.f32.xlu0 %v5484_v39  ;;  %1126 = vadd.xlane.f32.xlu1 %v5487_v41  ;;  %v5491_v55 = vpop.eup %3997 }
 0x262   : > { %v1742_v49 = vpop.xlane.xlu1 %1741 }
 0x263   : > { %4011 = vpow2.f32 %v1763_v10  ;;  %v1754_v20 = vsub.f32 %v6332_v2, %v1742_v49 }
 0x264   : > { %v5494_v43 = vpop.eup %3999 }
 0x265   : > { %v1765_v24 = vmul.f32 1.442695, %v1754_v20  ;;  %1592 = vadd.xlane.f32.xlu0 %v5491_v55  ;;  %1128 = vadd.xlane.f32.xlu1 %v5494_v43  ;;  %v5504_v36 = vpop.eup %4001 }
 0x266   : > { %v1744_v27 = vpop.xlane.xlu1 %1743 }
 0x267   : > { %4013 = vpow2.f32 %v1765_v24  ;;  %v1755_v58 = vsub.f32 %v6333_v60, %v1744_v27 }
 0x268   : > { %v5507_v59 = vpop.eup %4003 }
 0x269   : > { %v1767_v52 = vmul.f32 1.442695, %v1755_v58  ;;  %1594 = vadd.xlane.f32.xlu0 %v5504_v36  ;;  %1775 = vadd.xlane.f32.xlu1 %v5507_v59  ;;  %v5517_v1 = vpop.eup %4005 }
 0x26a   : > { %v1746_v21 = vpop.xlane.xlu1 %1745 }
 0x26b   : > { %4015 = vpow2.f32 %v1767_v52  ;;  %v1756_v13 = vsub.f32 %v6334_v44, %v1746_v21  ;;  %v1561_v5 = vpop.xlane.xlu0 %1560 }
 0x26c   : > { %v5520_v33 = vpop.eup %4007  ;;  %v1572_v30 = vsub.f32 %v6335_v0, %v1561_v5 }
 0x26d   : > { %v1769_v34 = vmul.f32 1.442695, %v1756_v13  ;;  %1596 = vadd.xlane.f32.xlu0 %v5517_v1  ;;  %1777 = vadd.xlane.f32.xlu1 %v5520_v33  ;;  %v5525_v23 = vpop.eup %4009 }
 0x26e   : > { %v1584_v9 = vmul.f32 1.442695, %v1572_v30  ;;  %v1748_v57 = vpop.xlane.xlu1 %1747 }
 0x26f   : > { %4017 = vpow2.f32 %v1769_v34  ;;  %v1757_v42 = vsub.f32 %v5157_v7, %v1748_v57  ;;  %v1563_v10 = vpop.xlane.xlu0 %1562 }
 0x270   : > { %v5528_v49 = vpop.eup %4011  ;;  %4019 = vpow2.f32 %v1584_v9  ;;  %v1573_v2 = vsub.f32 %v5173_v22, %v1563_v10 }
 0x271   : > { %v1771_v20 = vmul.f32 1.442695, %v1757_v42  ;;  %1598 = vadd.xlane.f32.xlu0 %v5525_v23  ;;  %1779 = vadd.xlane.f32.xlu1 %v5528_v49 }
 0x272   : > { %v1586_v24 = vmul.f32 1.442695, %v1573_v2  ;;  %v1750_v27 = vpop.xlane.xlu1 %1749 }
 0x273   : > { %4021 = vpow2.f32 %v1771_v20  ;;  %v1758_v60 = vsub.f32 %v5178_v35, %v1750_v27  ;;  %v1565_v58 = vpop.xlane.xlu0 %1564 }
 0x274   : > { %v5534_v52 = vpop.eup %4013  ;;  %4023 = vpow2.f32 %v1586_v24  ;;  %v1574_v7 = vsub.f32 %v5191_v51, %v1565_v58 }
 0x275   : > { %v1773_v21 = vmul.f32 1.442695, %v1758_v60  ;;  %1781 = vadd.xlane.f32.xlu1 %v5534_v52 }
 0x276   : > { %v1588_v22 = vmul.f32 1.442695, %v1574_v7  ;;  %v2398_v44 = vpop.xlane.xlu1 %2397 }
 0x277   : > { %4025 = vpow2.f32 %v1773_v21  ;;  %v2413_v13 = vsub.f32 %v5201_v47, %v2398_v44  ;;  %v1567_v5 = vpop.xlane.xlu0 %1566 }
 0x278   : > { %v5539_v0 = vpop.eup %4015  ;;  %4027 = vpow2.f32 %v1588_v22  ;;  %v1575_v35 = vsub.f32 %v5210_v50, %v1567_v5 }
 0x279   : > { %v2421_v30 = vmul.f32 1.442695, %v2413_v13  ;;  %1783 = vadd.xlane.f32.xlu1 %v5539_v0 }
 0x27a   : > { %v1590_v34 = vmul.f32 1.442695, %v1575_v35  ;;  %v2400_v9 = vpop.xlane.xlu1 %2399 }
 0x27b   : > { %4029 = vpow2.f32 %v2421_v30  ;;  %v2414_v51 = vsub.f32 %v5222_v25, %v2400_v9  ;;  %v2215_v57 = vpop.xlane.xlu0 %2214 }
 0x27c   : > { %v5544_v42 = vpop.eup %4017  ;;  %4031 = vpow2.f32 %v1590_v34  ;;  %v2230_v47 = vsub.f32 %v5231_v38, %v2215_v57 }
 0x27d   : > { %v5547_v10 = vpop.eup %4019  ;;  %v2423_v2 = vmul.f32 1.442695, %v2414_v51  ;;  %1785 = vadd.xlane.f32.xlu1 %v5544_v42 }
 0x27e   : > { %v2238_v50 = vmul.f32 1.442695, %v2230_v47  ;;  %1600 = vadd.xlane.f32.xlu0 %v5547_v10  ;;  %v2402_v20 = vpop.xlane.xlu1 %2401 }
 0x27f   : > { %4033 = vpow2.f32 %v2423_v2  ;;  %v2415_v24 = vsub.f32 %v5245_v15, %v2402_v20  ;;  %v2217_v27 = vpop.xlane.xlu0 %2216 }
 0x280   : > { %v5552_v25 = vpop.eup %4021  ;;  %4035 = vpow2.f32 %v2238_v50  ;;  %v2231_v60 = vsub.f32 %v5255_v4, %v2217_v27 }
 0x281   : > { %v5555_v58 = vpop.eup %4023  ;;  %v2425_v38 = vmul.f32 1.442695, %v2415_v24  ;;  %1787 = vadd.xlane.f32.xlu1 %v5552_v25 }
 0x282   : > { %v2240_v7 = vmul.f32 1.442695, %v2231_v60  ;;  %1602 = vadd.xlane.f32.xlu0 %v5555_v58  ;;  %v2404_v21 = vpop.xlane.xlu1 %2403 }
 0x283   : > { %4037 = vpow2.f32 %v2425_v38  ;;  %v2416_v22 = vsub.f32 %v5264_v29, %v2404_v21  ;;  %v2219_v44 = vpop.xlane.xlu0 %2218 }
 0x284   : > { %v5560_v15 = vpop.eup %4025  ;;  %4039 = vpow2.f32 %v2240_v7  ;;  %v2232_v13 = vsub.f32 %v5268_v8, %v2219_v44 }
 0x285   : > { %v5563_v5 = vpop.eup %4027  ;;  %v2427_v4 = vmul.f32 1.442695, %v2416_v22  ;;  %1789 = vadd.xlane.f32.xlu1 %v5560_v15 }
 0x286   : > { %v2242_v35 = vmul.f32 1.442695, %v2232_v13  ;;  %1604 = vadd.xlane.f32.xlu0 %v5563_v5  ;;  %v2406_v30 = vpop.xlane.xlu1 %2405 }
 0x287   : > { %4041 = vpow2.f32 %v2427_v4  ;;  %v2417_v34 = vsub.f32 %v5280_v6, %v2406_v30  ;;  %v2221_v9 = vpop.xlane.xlu0 %2220 }
 0x288   : > { %v5568_v29 = vpop.eup %4029  ;;  %4043 = vpow2.f32 %v2242_v35  ;;  %v2233_v51 = vsub.f32 %v5287_v46, %v2221_v9 }
 0x289   : > { %v5571_v57 = vpop.eup %4031  ;;  %v2429_v8 = vmul.f32 1.442695, %v2417_v34  ;;  %2437 = vadd.xlane.f32.xlu1 %v5568_v29 }
 0x28a   : > { %v2244_v47 = vmul.f32 1.442695, %v2233_v51  ;;  %1606 = vadd.xlane.f32.xlu0 %v5571_v57  ;;  %v2408_v2 = vpop.xlane.xlu1 %2407 }
 0x28b   : > { %4045 = vpow2.f32 %v2429_v8  ;;  %v2418_v50 = vsub.f32 %v5295_v63, %v2408_v2  ;;  %v2223_v20 = vpop.xlane.xlu0 %2222 }
 0x28c   : > { %v5576_v6 = vpop.eup %4033  ;;  %4047 = vpow2.f32 %v2244_v47  ;;  %v2234_v24 = vsub.f32 %v5303_v11, %v2223_v20 }
 0x28d   : > { %v5579_v27 = vpop.eup %4035  ;;  %v2431_v46 = vmul.f32 1.442695, %v2418_v50  ;;  %2439 = vadd.xlane.f32.xlu1 %v5576_v6 }
 0x28e   : > { %v2246_v60 = vmul.f32 1.442695, %v2234_v24  ;;  %2254 = vadd.xlane.f32.xlu0 %v5579_v27 }
 0x28f   : > { %4049 = vpow2.f32 %v2431_v46  ;;  %v2225_v38 = vpop.xlane.xlu0 %2224 }
 0x290   : > { %v5583_v7 = vpop.eup %4037  ;;  %4051 = vpow2.f32 %v2246_v60  ;;  %v2235_v63 = vsub.f32 %v5309_v16, %v2225_v38 }
 0x291   : > { %v5586_v21 = vpop.eup %4039  ;;  %2441 = vadd.xlane.f32.xlu1 %v5583_v7 }
 0x292   : > { %v2248_v11 = vmul.f32 1.442695, %v2235_v63  ;;  %2256 = vadd.xlane.f32.xlu0 %v5586_v21 }
 0x293   : > { %v2227_v22 = vpop.xlane.xlu0 %2226  ;;  %v2410_v44 = vpop.xlane.xlu1 %2409 }
 0x294   : > { %v5590_v13 = vpop.eup %4041  ;;  %4053 = vpow2.f32 %v2248_v11  ;;  %v2236_v4 = vsub.f32 %v5317_v62, %v2227_v22  ;;  %v2419_v35 = vsub.f32 %v5319_v3, %v2410_v44 }
 0x295   : > { %v5594_v30 = vpop.eup %4043  ;;  %2443 = vadd.xlane.f32.xlu1 %v5590_v13 }
 0x296   : > { %v2250_v16 = vmul.f32 1.442695, %v2236_v4  ;;  %v2433_v34 = vmul.f32 1.442695, %v2419_v35  ;;  %2258 = vadd.xlane.f32.xlu0 %v5594_v30 }
 0x297   : > { %v2229_v9 = vpop.xlane.xlu0 %2228  ;;  %v2412_v51 = vpop.xlane.xlu1 %2411 }
 0x298   : > { %v5598_v8 = vpop.eup %4045  ;;  %4055 = vpow2.f32 %v2250_v16  ;;  %v2237_v47 = vsub.f32 %v5326_v28, %v2229_v9  ;;  %v2420_v2 = vsub.f32 %v5328_v12, %v2412_v51 }
 0x299   : > { %v5602_v62 = vpop.eup %4047  ;;  %4057 = vpow2.f32 %v2433_v34  ;;  %2445 = vadd.xlane.f32.xlu1 %v5598_v8 }
 0x29a   : > { %v2252_v3 = vmul.f32 1.442695, %v2237_v47  ;;  %v2435_v50 = vmul.f32 1.442695, %v2420_v2  ;;  %2260 = vadd.xlane.f32.xlu0 %v5602_v62 }
 0x29b   : > { %v933_v20 = vpop.xlane.xlu0 %932  ;;  %v1115_v24 = vpop.xlane.xlu1 %1114 }
 0x29c   : > { %v5606_v46 = vpop.eup %4049  ;;  %4059 = vpow2.f32 %v2252_v3 }
 0x29d   : > { %v5608_v60 = vpop.eup %4051  ;;  %4061 = vpow2.f32 %v2435_v50  ;;  %2447 = vadd.xlane.f32.xlu1 %v5606_v46  ;;  %v3314_v50 = vld [vmem:[%s6236_s6 + $0x170] sm:$0xff] }
 0x29e   : > { %4063 = vrcp.f32 %v933_v20  ;;  %2262 = vadd.xlane.f32.xlu0 %v5608_v60  ;;  %v3331_v20 = vld [vmem:[%s6236_s6 + $0x1f0] sm:$0xff] }
 0x29f   : > { %4065 = vrcp.f32 %v1115_v24  ;;  %v935_v28 = vpop.xlane.xlu0 %934  ;;  %v1117_v12 = vpop.xlane.xlu1 %1116  ;;  %v3330_v24 = vld [vmem:[%s6236_s6 + $0x1e8] sm:$0xff] }
 0x2a0   : > { %4067 = vrcp.f32 %v935_v28  ;;  %v3328_v28 = vld [vmem:[%s6236_s6 + $0x1d8] sm:$0xff] }
 0x2a1   : > { %v5612_v38 = vpop.eup %4053  ;;  %4069 = vrcp.f32 %v1117_v12  ;;  %v3309_v12 = vld [vmem:[%s6236_s6 + $0x148] sm:$0xff] }
 0x2a2   : > { %2264 = vadd.xlane.f32.xlu0 %v5612_v38 }
 0x2a3   : > { %v1119_v63 = vpop.xlane.xlu1 %1118 }
 0x2a4   : > { %4071 = vrcp.f32 %v1119_v63  ;;  %v3327_v63 = vld [vmem:[%s6236_s6 + $0x1d0] sm:$0xff] }
 0x2a5   : > { %v5615_v11 = vpop.eup %4055 }
 0x2a6   : > { %v5617_v22 = vpop.eup %4057  ;;  %2266 = vadd.xlane.f32.xlu0 %v5615_v11 }
 0x2a7   : > { %2449 = vadd.xlane.f32.xlu1 %v5617_v22 }
 0x2a9   : > { %v5621_v44 = vpop.eup %4059 }
 0x2aa   : > { %v5623_v4 = vpop.eup %4061  ;;  %2268 = vadd.xlane.f32.xlu0 %v5621_v44 }
 0x2ab   : > { %v4064_v35 = vpop.eup %4063  ;;  %2451 = vadd.xlane.f32.xlu1 %v5623_v4 }
 0x2ac   : > { %v4066_v16 = vpop.eup %4065  ;;  %v949_v34 = vmul.f32 %v4064_v35, %v5334_v14  ;;  %v3308_v35 = vld [vmem:[%s6236_s6 + $0x140] sm:$0xff] }
 0x2ad   : > { %v4068_v9 = vpop.eup %4067  ;;  %v1131_v51 = vmul.f32 %v4066_v16, %v5332_v61  ;;  %v3313_v61 = vld [vmem:[%s6236_s6 + $0x168] sm:$0xff] }
 0x2ae   : > { %v4070_v47 = vpop.eup %4069  ;;  %3668 = vmatprep.mubr.f32.mxu1 %v949_v34  ;;  %v951_v2 = vmul.f32 %v4068_v9, %v5352_v19  ;;  %v3326_v16 = vld [vmem:[%s6236_s6 + $0x1c8] sm:$0xff]  ;;  %v3307_v34 = vld [vmem:[%s6236_s6 + $0x138] sm:$0xff]  ;;  %v3325_v9 = vld [vmem:[%s6236_s6 + $0x1c0] sm:$0xff] }
 0x2af   : > { %3624 = vmatprep.mubr.f32.mxu0 %v1131_v51  ;;  %v1133_v3 = vmul.f32 %v4070_v47, %v5350_v53  ;;  %v3312_v53 = vld [vmem:[%s6236_s6 + $0x160] sm:$0xff]  ;;  %v3306_v51 = vld [vmem:[%s6236_s6 + $0x130] sm:$0xff]  ;;  %v3324_v47 = vld [vmem:[%s6236_s6 + $0x1b8] sm:$0xff] }
 0x2b0   : > { %3669 = vmatmul.mubr.f32.vlgmr.msra.gmra.mxu1 %v951_v2  ;;  %v3305_v2 = vld [vmem:[%s6236_s6 + $0x128] sm:$0xff] }
 0x2b1   : > { %v4072_v14 = vpop.eup %4071  ;;  %3625 = vmatmul.mubr.f32.vlgmr.msra.gmra.mxu0 %v1133_v3  ;;  %3725 = vmatpush3.msra.mxu1 %v5499_v48  ;;  %v3329_v48 = vld [vmem:[%s6236_s6 + $0x1e0] sm:$0xff]  ;;  %v3323_v3 = vld [vmem:[%s6236_s6 + $0x1b0] sm:$0xff] }
 0x2b2   : > { %v1135_v19 = vmul.f32 %v4072_v14, %v5368_v31  ;;  %3726 = vmatprep.subr.mxu1 %v3314_v50  ;;  %3681 = vmatpush3.msra.mxu0 %v5512_v56  ;;  %v3311_v31 = vld [vmem:[%s6236_s6 + $0x158] sm:$0xff]  ;;  %v3310_v56 = vld [vmem:[%s6236_s6 + $0x150] sm:$0xff] }
 0x2b3   : > { %3727 = vmatpush3.msra.mxu1 %v3314_v50  ;;  %3682 = vmatprep.subr.mxu0 %v3331_v20  ;;  %v3304_v50 = vld [vmem:[%s6236_s6 + $0x120] sm:$0xff]  ;;  %v3303_v14 = vld [vmem:[%s6236_s6 + $0x118] sm:$0xff] }
 0x2b4   : > { %3627 = vmatprep.mubr.f32.mxu0 %v1135_v19  ;;  %3728 = vmatprep.subr.mxu1 %v3313_v61  ;;  %v3302_v19 = vld [vmem:[%s6236_s6 + $0x110] sm:$0xff] }
 0x2b5   : > { %3729 = vmatpush3.msra.mxu1 %v3313_v61  ;;  %3683 = vmatpush3.msra.mxu0 %v3331_v20  ;;  %v3322_v20 = vld [vmem:[%s6236_s6 + $0x1a8] sm:$0xff]  ;;  %v3321_v61 = vld [vmem:[%s6236_s6 + $0x1a0] sm:$0xff] }
 0x2b6   : > { %3730 = vmatprep.subr.mxu1 %v3312_v53  ;;  %3684 = vmatprep.subr.mxu0 %v3330_v24 }
 0x2b7   : > { %3731 = vmatpush3.msra.mxu1 %v3312_v53  ;;  %3685 = vmatpush3.msra.mxu0 %v3330_v24  ;;  %v3320_v53 = vld [vmem:[%s6236_s6 + $0x198] sm:$0xff]  ;;  %v3301_v24 = vld [vmem:[%s6236_s6 + $0x108] sm:$0xff] }
 0x2b8   : > { %3732 = vmatprep.subr.mxu1 %v3311_v31  ;;  %3686 = vmatprep.subr.mxu0 %v3329_v48 }
 0x2b9   : > { %3733 = vmatpush3.msra.mxu1 %v3311_v31  ;;  %3687 = vmatpush3.msra.mxu0 %v3329_v48  ;;  %v3319_v31 = vld [vmem:[%s6236_s6 + $0x190] sm:$0xff]  ;;  %v3300_v48 = vld [vmem:[%s6236_s6 + $0x100] sm:$0xff] }
 0x2ba   : > { %3734 = vmatprep.subr.mxu1 %v3310_v56  ;;  %3688 = vmatprep.subr.mxu0 %v3328_v28 }
 0x2bb   : > { %3735 = vmatpush3.msra.mxu1 %v3310_v56  ;;  %3689 = vmatpush3.msra.mxu0 %v3328_v28  ;;  %v3318_v56 = vld [vmem:[%s6236_s6 + $0x188] sm:$0xff]  ;;  %v3317_v28 = vld [vmem:[%s6236_s6 + $0x180] sm:$0xff] }
 0x2bc   : > { %3736 = vmatprep.subr.mxu1 %v3309_v12  ;;  %3690 = vmatprep.subr.mxu0 %v3327_v63 }
 0x2bd   : > { %3737 = vmatpush3.msra.mxu1 %v3309_v12  ;;  %3691 = vmatpush3.msra.mxu0 %v3327_v63  ;;  %v5727_v12 = vld [vmem:[%s6236_s6 + $0x278] sm:$0xff] }
 0x2be   : > { %3738 = vmatprep.subr.mxu1 %v3308_v35  ;;  %3692 = vmatprep.subr.mxu0 %v3326_v16  ;;  %v5732_v63 = vld [vmem:[%s6236_s6 + $0x2f8] sm:$0xff] }
 0x2bf   : > { %3739 = vmatpush3.msra.mxu1 %v3308_v35  ;;  %3693 = vmatpush3.msra.mxu0 %v3326_v16 }
 0x2c0   : > { %3740 = vmatprep.subr.mxu1 %v3307_v34  ;;  %3694 = vmatprep.subr.mxu0 %v3325_v9 }
 0x2c1   : > { %3741 = vmatpush3.msra.mxu1 %v3307_v34  ;;  %3695 = vmatpush3.msra.mxu0 %v3325_v9 }
 0x2c2   : > { %3742 = vmatprep.subr.mxu1 %v3306_v51  ;;  %3696 = vmatprep.subr.mxu0 %v3324_v47 }
 0x2c3   : > { %3743 = vmatpush3.msra.mxu1 %v3306_v51  ;;  %3697 = vmatpush3.msra.mxu0 %v3324_v47 }
 0x2c4   : > { %3744 = vmatprep.subr.mxu1 %v3305_v2  ;;  %3698 = vmatprep.subr.mxu0 %v3323_v3 }
 0x2c5   : > { %3745 = vmatpush3.msra.mxu1 %v3305_v2  ;;  %3699 = vmatpush3.msra.mxu0 %v3323_v3 }
 0x2c6   : > { %3746 = vmatprep.subr.mxu1 %v3304_v50  ;;  %3700 = vmatprep.subr.mxu0 %v3322_v20 }
 0x2c7   : > { %3747 = vmatpush3.msra.mxu1 %v3304_v50  ;;  %3701 = vmatpush3.msra.mxu0 %v3322_v20 }
 0x2c8   : > { %3748 = vmatprep.subr.mxu1 %v3303_v14  ;;  %3702 = vmatprep.subr.mxu0 %v3321_v61 }
 0x2c9   : > { %3749 = vmatpush3.msra.mxu1 %v3303_v14  ;;  %3703 = vmatpush3.msra.mxu0 %v3321_v61 }
 0x2ca   : > { %3750 = vmatprep.subr.mxu1 %v3302_v19  ;;  %3704 = vmatprep.subr.mxu0 %v3320_v53 }
 0x2cb   : > { %3751 = vmatpush3.msra.mxu1 %v3302_v19  ;;  %3705 = vmatpush3.msra.mxu0 %v3320_v53 }
 0x2cc   : > { %3752 = vmatprep.subr.mxu1 %v3301_v24  ;;  %3706 = vmatprep.subr.mxu0 %v3319_v31 }
 0x2cd   : > { %3753 = vmatpush3.msra.mxu1 %v3301_v24  ;;  %3707 = vmatpush3.msra.mxu0 %v3319_v31 }
 0x2ce   : > { %3754 = vmatprep.subr.mxu1 %v3300_v48  ;;  %3708 = vmatprep.subr.mxu0 %v3318_v56 }
 0x2cf   : > { %3755 = vmatpush3.msra.mxu1 %v3300_v48  ;;  %3709 = vmatpush3.msra.mxu0 %v3318_v56 }
 0x2d0   : > { %3710 = vmatprep.subr.mxu0 %v3317_v28  ;;  %3812 = vmatprep.subr.mxu1 %v5727_v12 }
 0x2d1   : > { %3711 = vmatpush3.msra.mxu0 %v3317_v28 }
 0x2d2   : > { %v937_v35 = vpop.xlane.xlu0 %936  ;;  %3768 = vmatprep.subr.mxu0 %v5732_v63 }
 0x2d3   : > { %4073 = vrcp.f32 %v937_v35 }
 0x2d6   : > { %v939_v16 = vpop.xlane.xlu0 %938 }
 0x2d7   : > { %4075 = vrcp.f32 %v939_v16 }
 0x2da   : > { %v1121_v34 = vpop.xlane.xlu1 %1120 }
 0x2db   : > { %4077 = vrcp.f32 %v1121_v34 }
 0x2de   : > { %v941_v9 = vpop.xlane.xlu0 %940 }
 0x2df   : > { %4079 = vrcp.f32 %v941_v9 }
 0x2e0   : > { %v4074_v51 = vpop.eup %4073 }
 0x2e1   : > { %v953_v47 = vmul.f32 %v4074_v51, %v5450_v17 }
 0x2e2   : > { %v943_v2 = vpop.xlane.xlu0 %942  ;;  %v1123_v3 = vpop.xlane.xlu1 %1122 }
 0x2e3   : > { %4081 = vrcp.f32 %v943_v2  ;;  %3671 = vmatprep.mubr.f32.mxu1 %v953_v47 }
 0x2e4   : > { %v4076_v50 = vpop.eup %4075  ;;  %4083 = vrcp.f32 %v1123_v3 }
 0x2e5   : > { %v955_v20 = vmul.f32 %v4076_v50, %v5455_v45 }
 0x2e6   : > { %v945_v14 = vpop.xlane.xlu0 %944  ;;  %v1125_v61 = vpop.xlane.xlu1 %1124 }
 0x2e7   : > { %4085 = vrcp.f32 %v945_v14  ;;  %3672 = vmatmul.mubr.f32.gmra.mxu1 %v955_v20 }
 0x2e8   : > { %v4078_v19 = vpop.eup %4077  ;;  %4087 = vrcp.f32 %v1125_v61 }
 0x2e9   : > { %v1137_v53 = vmul.f32 %v4078_v19, %v5460_v26 }
 0x2ea   : > { %v947_v24 = vpop.xlane.xlu0 %946  ;;  %v1127_v31 = vpop.xlane.xlu1 %1126 }
 0x2eb   : > { %4089 = vrcp.f32 %v947_v24  ;;  %3628 = vmatmul.mubr.f32.gmra.mxu0 %v1137_v53 }
 0x2ec   : > { %v4080_v17 = vpop.eup %4079  ;;  %4091 = vrcp.f32 %v1127_v31 }
 0x2ed   : > { %v957_v48 = vmul.f32 %v4080_v17, %v5465_v18 }
 0x2ee   : > { %v1593_v56 = vpop.xlane.xlu0 %1592  ;;  %v1129_v28 = vpop.xlane.xlu1 %1128 }
 0x2ef   : > { %4093 = vrcp.f32 %v1593_v56  ;;  %3674 = vmatprep.mubr.f32.mxu1 %v957_v48 }
 0x2f0   : > { %v4082_v45 = vpop.eup %4081  ;;  %4095 = vrcp.f32 %v1129_v28  ;;  %v3368_v28 = vld [vmem:[%s6236_s6 + $0x270] sm:$0xff] }
 0x2f1   : > { %v4084_v35 = vpop.eup %4083  ;;  %v959_v16 = vmul.f32 %v4082_v45, %v5469_v40 }
 0x2f2   : > { %v1595_v34 = vpop.xlane.xlu0 %1594  ;;  %v1776_v9 = vpop.xlane.xlu1 %1775  ;;  %v1139_v26 = vmul.f32 %v4084_v35, %v5472_v54 }
 0x2f3   : > { %4097 = vrcp.f32 %v1595_v34  ;;  %3675 = vmatmul.mubr.f32.gmra.mxu1 %v959_v16  ;;  %v3366_v16 = vld [vmem:[%s6236_s6 + $0x260] sm:$0xff] }
 0x2f4   : > { %v4086_v51 = vpop.eup %4085  ;;  %4099 = vrcp.f32 %v1776_v9  ;;  %3630 = vmatprep.mubr.f32.mxu0 %v1139_v26  ;;  %v3384_v26 = vld [vmem:[%s6236_s6 + $0x2e8] sm:$0xff] }
 0x2f5   : > { %v4088_v47 = vpop.eup %4087  ;;  %v961_v18 = vmul.f32 %v4086_v51, %v5477_v32 }
 0x2f6   : > { %v1597_v2 = vpop.xlane.xlu0 %1596  ;;  %v1778_v3 = vpop.xlane.xlu1 %1777  ;;  %v1141_v50 = vmul.f32 %v4088_v47, %v5480_v37 }
 0x2f7   : > { %4101 = vrcp.f32 %v1597_v2  ;;  %3677 = vmatprep.mubr.f32.mxu1 %v961_v18  ;;  %v3365_v18 = vld [vmem:[%s6236_s6 + $0x258] sm:$0xff] }
 0x2f8   : > { %v4090_v20 = vpop.eup %4089  ;;  %4103 = vrcp.f32 %v1778_v3  ;;  %3631 = vmatmul.mubr.f32.gmra.mxu0 %v1141_v50  ;;  %v3382_v50 = vld [vmem:[%s6236_s6 + $0x2d8] sm:$0xff] }
 0x2f9   : > { %v4092_v40 = vpop.eup %4091  ;;  %v963_v54 = vmul.f32 %v4090_v20, %v5484_v39 }
 0x2fa   : > { %v1599_v14 = vpop.xlane.xlu0 %1598  ;;  %v1780_v61 = vpop.xlane.xlu1 %1779  ;;  %v1143_v19 = vmul.f32 %v4092_v40, %v5487_v41 }
 0x2fb   : > { %4105 = vrcp.f32 %v1599_v14  ;;  %3678 = vmatmul.mubr.f32.gmra.mxu1 %v963_v54  ;;  %v3381_v54 = vld [vmem:[%s6236_s6 + $0x2d0] sm:$0xff] }
 0x2fc   : > { %v4094_v53 = vpop.eup %4093  ;;  %4107 = vrcp.f32 %v1780_v61  ;;  %3633 = vmatprep.mubr.f32.mxu0 %v1143_v19  ;;  %v3380_v19 = vld [vmem:[%s6236_s6 + $0x2c8] sm:$0xff] }
 0x2fd   : > { %v4096_v32 = vpop.eup %4095  ;;  %v1609_v37 = vmul.f32 %v4094_v53, %v5491_v55 }
 0x2fe   : > { %v1782_v24 = vpop.xlane.xlu1 %1781  ;;  %v1145_v31 = vmul.f32 %v4096_v32, %v5494_v43  ;;  %v3367_v43 = vld [vmem:[%s6236_s6 + $0x268] sm:$0xff]  ;;  %v3362_v32 = vld [vmem:[%s6236_s6 + $0x240] sm:$0xff] }
 0x2ff   : > { %4109 = vrcp.f32 %v1782_v24  ;;  %3756 = vmatprep.mubr.f32.mxu1 %v1609_v37 }
 0x300   : > { %v4098_v17 = vpop.eup %4097  ;;  %3634 = vmatmul.mubr.f32.gmra.mxu0 %v1145_v31  ;;  %v3361_v31 = vld [vmem:[%s6236_s6 + $0x238] sm:$0xff] }
 0x301   : > { %v4100_v39 = vpop.eup %4099  ;;  %v1611_v48 = vmul.f32 %v4098_v17, %v5504_v36 }
 0x302   : > { %v1784_v56 = vpop.xlane.xlu1 %1783  ;;  %v1792_v41 = vmul.f32 %v4100_v39, %v5507_v59 }
 0x303   : > { %4111 = vrcp.f32 %v1784_v56  ;;  %3757 = vmatmul.mubr.f32.vlgmr.msra.gmra.mxu1 %v1611_v48  ;;  %v3378_v48 = vld [vmem:[%s6236_s6 + $0x2b8] sm:$0xff] }
 0x304   : > { %v4102_v55 = vpop.eup %4101  ;;  %3712 = vmatprep.mubr.f32.mxu0 %v1792_v41  ;;  %3813 = vmatpush3.msra.mxu1 %v5727_v12  ;;  %v3385_v12 = vld [vmem:[%s6236_s6 + $0x2f0] sm:$0xff] }
 0x305   : > { %v4104_v45 = vpop.eup %4103  ;;  %v1613_v36 = vmul.f32 %v4102_v55, %v5517_v1  ;;  %3814 = vmatprep.subr.mxu1 %v3368_v28  ;;  %v3377_v55 = vld [vmem:[%s6236_s6 + $0x2b0] sm:$0xff] }
 0x306   : > { %v1786_v35 = vpop.xlane.xlu1 %1785  ;;  %v1794_v59 = vmul.f32 %v4104_v45, %v5520_v33  ;;  %3815 = vmatpush3.msra.mxu1 %v3368_v28 }
 0x307   : > { %4113 = vrcp.f32 %v1786_v35  ;;  %3759 = vmatprep.mubr.f32.mxu1 %v1613_v36  ;;  %v1601_v34 = vpop.xlane.xlu0 %1600  ;;  %3816 = vmatprep.subr.mxu1 %v3367_v43 }
 0x308   : > { %v4106_v9 = vpop.eup %4105  ;;  %4115 = vrcp.f32 %v1601_v34  ;;  %3713 = vmatmul.mubr.f32.vlgmr.msra.gmra.mxu0 %v1794_v59  ;;  %3817 = vmatpush3.msra.mxu1 %v3367_v43  ;;  %v3360_v59 = vld [vmem:[%s6236_s6 + $0x230] sm:$0xff] }
 0x309   : > { %v4108_v1 = vpop.eup %4107  ;;  %3769 = vmatpush3.msra.mxu0 %v5732_v63  ;;  %v1615_v33 = vmul.f32 %v4106_v9, %v5525_v23  ;;  %3818 = vmatprep.subr.mxu1 %v3366_v16  ;;  %v3383_v23 = vld [vmem:[%s6236_s6 + $0x2e0] sm:$0xff] }
 0x30a   : > { %3770 = vmatprep.subr.mxu0 %v3385_v12  ;;  %v1788_v51 = vpop.xlane.xlu1 %1787  ;;  %v1796_v47 = vmul.f32 %v4108_v1, %v5528_v49  ;;  %3819 = vmatpush3.msra.mxu1 %v3366_v16  ;;  %v3364_v49 = vld [vmem:[%s6236_s6 + $0x250] sm:$0xff]  ;;  %v3374_v1 = vld [vmem:[%s6236_s6 + $0x298] sm:$0xff] }
 0x30b   : > { %3771 = vmatpush3.msra.mxu0 %v3385_v12  ;;  %4117 = vrcp.f32 %v1788_v51  ;;  %3760 = vmatmul.mubr.f32.gmra.mxu1 %v1615_v33  ;;  %v1603_v63 = vpop.xlane.xlu0 %1602 }
 0x30c   : > { %v4110_v2 = vpop.eup %4109  ;;  %4119 = vrcp.f32 %v1603_v63  ;;  %3715 = vmatprep.mubr.f32.mxu0 %v1796_v47  ;;  %3772 = vmatprep.subr.mxu0 %v3384_v26  ;;  %v3373_v47 = vld [vmem:[%s6236_s6 + $0x290] sm:$0xff] }
 0x30d   : > { %3773 = vmatpush3.msra.mxu0 %v3384_v26  ;;  %v1798_v3 = vmul.f32 %v4110_v2, %v5534_v52  ;;  %3820 = vmatprep.subr.mxu1 %v3365_v18  ;;  %v3363_v52 = vld [vmem:[%s6236_s6 + $0x248] sm:$0xff] }
 0x30e   : > { %3774 = vmatprep.subr.mxu0 %v3383_v23  ;;  %v1790_v20 = vpop.xlane.xlu1 %1789  ;;  %3821 = vmatpush3.msra.mxu1 %v3365_v18 }
 0x30f   : > { %3775 = vmatpush3.msra.mxu0 %v3383_v23  ;;  %4121 = vrcp.f32 %v1790_v20  ;;  %v1605_v40 = vpop.xlane.xlu0 %1604  ;;  %3822 = vmatprep.subr.mxu1 %v3364_v49 }
 0x310   : > { %v4112_v14 = vpop.eup %4111  ;;  %4123 = vrcp.f32 %v1605_v40  ;;  %3716 = vmatmul.mubr.f32.gmra.mxu0 %v1798_v3  ;;  %3776 = vmatprep.subr.mxu0 %v3382_v50 }
 0x311   : > { %3777 = vmatpush3.msra.mxu0 %v3382_v50  ;;  %v1800_v61 = vmul.f32 %v4112_v14, %v5539_v0  ;;  %3823 = vmatpush3.msra.mxu1 %v3364_v49  ;;  %v3379_v0 = vld [vmem:[%s6236_s6 + $0x2c0] sm:$0xff]  ;;  %v3357_v50 = vld [vmem:[%s6236_s6 + $0x218] sm:$0xff] }
 0x312   : > { %3778 = vmatprep.subr.mxu0 %v3381_v54  ;;  %v2438_v53 = vpop.xlane.xlu1 %2437  ;;  %3824 = vmatprep.subr.mxu1 %v3363_v52 }
 0x313   : > { %3779 = vmatpush3.msra.mxu0 %v3381_v54  ;;  %4125 = vrcp.f32 %v2438_v53  ;;  %v1607_v37 = vpop.xlane.xlu0 %1606  ;;  %3718 = vmatprep.mubr.f32.mxu0 %v1800_v61 }
 0x314   : > { %v4114_v24 = vpop.eup %4113  ;;  %4127 = vrcp.f32 %v1607_v37  ;;  %3780 = vmatprep.subr.mxu0 %v3380_v19  ;;  %3825 = vmatpush3.msra.mxu1 %v3363_v52 }
 0x315   : > { %v4116_v17 = vpop.eup %4115  ;;  %3781 = vmatpush3.msra.mxu0 %v3380_v19  ;;  %v1802_v39 = vmul.f32 %v4114_v24, %v5544_v42  ;;  %3826 = vmatprep.subr.mxu1 %v3362_v32  ;;  %v3355_v19 = vld [vmem:[%s6236_s6 + $0x208] sm:$0xff] }
 0x316   : > { %3782 = vmatprep.subr.mxu0 %v3379_v0  ;;  %v2440_v56 = vpop.xlane.xlu1 %2439  ;;  %v1617_v41 = vmul.f32 %v4116_v17, %v5547_v10  ;;  %3827 = vmatpush3.msra.mxu1 %v3362_v32  ;;  %v3376_v10 = vld [vmem:[%s6236_s6 + $0x2a8] sm:$0xff] }
 0x317   : > { %3783 = vmatpush3.msra.mxu0 %v3379_v0  ;;  %4129 = vrcp.f32 %v2440_v56  ;;  %v2255_v28 = vpop.xlane.xlu0 %2254  ;;  %3828 = vmatprep.subr.mxu1 %v3361_v31 }
 0x318   : > { %v4118_v43 = vpop.eup %4117  ;;  %4131 = vrcp.f32 %v2255_v28  ;;  %3719 = vmatmul.mubr.f32.gmra.mxu0 %v1802_v39  ;;  %3784 = vmatprep.subr.mxu0 %v3378_v48 }
 0x319   : > { %v4120_v42 = vpop.eup %4119  ;;  %3762 = vmatprep.mubr.f32.mxu1 %v1617_v41  ;;  %3785 = vmatpush3.msra.mxu0 %v3378_v48  ;;  %v1804_v45 = vmul.f32 %v4118_v43, %v5552_v25  ;;  %v3375_v25 = vld [vmem:[%s6236_s6 + $0x2a0] sm:$0xff] }
 0x31a   : > { %3786 = vmatprep.subr.mxu0 %v3377_v55  ;;  %v2442_v36 = vpop.xlane.xlu1 %2441  ;;  %v1619_v35 = vmul.f32 %v4120_v42, %v5555_v58  ;;  %3829 = vmatpush3.msra.mxu1 %v3361_v31  ;;  %v3359_v58 = vld [vmem:[%s6236_s6 + $0x228] sm:$0xff] }
 0x31b   : > { %3787 = vmatpush3.msra.mxu0 %v3377_v55  ;;  %4133 = vrcp.f32 %v2442_v36  ;;  %v2257_v16 = vpop.xlane.xlu0 %2256  ;;  %3721 = vmatprep.mubr.f32.mxu0 %v1804_v45 }
 0x31c   : > { %v4122_v34 = vpop.eup %4121  ;;  %4135 = vrcp.f32 %v2257_v16  ;;  %3788 = vmatprep.subr.mxu0 %v3376_v10  ;;  %3763 = vmatmul.mubr.f32.gmra.mxu1 %v1619_v35 }
 0x31d   : > { %v4124_v12 = vpop.eup %4123  ;;  %3789 = vmatpush3.msra.mxu0 %v3376_v10  ;;  %3830 = vmatprep.subr.mxu1 %v3360_v59  ;;  %v1806_v9 = vmul.f32 %v4122_v34, %v5560_v15  ;;  %v3358_v15 = vld [vmem:[%s6236_s6 + $0x220] sm:$0xff]  ;;  %v2749_v34 = vld [vmem:[%s6238_s8 + $0x18] sm:$0xff] }
 0x31e   : > { %3790 = vmatprep.subr.mxu0 %v3375_v25  ;;  %v2444_v33 = vpop.xlane.xlu1 %2443  ;;  %3831 = vmatpush3.msra.mxu1 %v3360_v59  ;;  %v1621_v26 = vmul.f32 %v4124_v12, %v5563_v5  ;;  %v3372_v5 = vld [vmem:[%s6236_s6 + $0x288] sm:$0xff] }
 0x31f   : > { %3791 = vmatpush3.msra.mxu0 %v3375_v25  ;;  %4137 = vrcp.f32 %v2444_v33  ;;  %v2259_v51 = vpop.xlane.xlu0 %2258  ;;  %3832 = vmatprep.subr.mxu1 %v3359_v58  ;;  %v2747_v12 = vld [vmem:[%s6238_s8 + $0x8] sm:$0xff] }
 0x320   : > { %v4126_v18 = vpop.eup %4125  ;;  %4139 = vrcp.f32 %v2259_v51  ;;  %3722 = vmatmul.mubr.f32.gmra.mxu0 %v1806_v9  ;;  %3792 = vmatprep.subr.mxu0 %v3374_v1  ;;  %v2746_v9 = vld [vmem:[%s6238_s8] sm:$0xff] }
 0x321   : > { %v4128_v63 = vpop.eup %4127  ;;  %3765 = vmatprep.mubr.f32.mxu1 %v1621_v26  ;;  %3793 = vmatpush3.msra.mxu0 %v3374_v1  ;;  %v2454_v23 = vmul.f32 %v4126_v18, %v5568_v29  ;;  %v3371_v29 = vld [vmem:[%s6236_s6 + $0x280] sm:$0xff]  ;;  %v5900_v1 = vld [vmem:[%s6239_s9 + $0x18] sm:$0xff] }
 0x322   : > { %3794 = vmatprep.subr.mxu0 %v3373_v47  ;;  %3833 = vmatpush3.msra.mxu1 %v3359_v58  ;;  %v2446_v2 = vpop.xlane.xlu1 %2445  ;;  %v1623_v49 = vmul.f32 %v4128_v63, %v5571_v57  ;;  %v3356_v57 = vld [vmem:[%s6236_s6 + $0x210] sm:$0xff] }
 0x323   : > { %3795 = vmatpush3.msra.mxu0 %v3373_v47  ;;  %3834 = vmatprep.subr.mxu1 %v3358_v15  ;;  %4141 = vrcp.f32 %v2446_v2  ;;  %v2261_v3 = vpop.xlane.xlu0 %2260  ;;  %v2748_v58 = vld [vmem:[%s6238_s8 + $0x10] sm:$0xff] }
 0x324   : > { %v4130_v20 = vpop.eup %4129  ;;  %3835 = vmatpush3.msra.mxu1 %v3358_v15  ;;  %4143 = vrcp.f32 %v2261_v3  ;;  %3796 = vmatprep.subr.mxu0 %v3372_v5 }
 0x325   : > { %v4132_v40 = vpop.eup %4131  ;;  %3800 = vmatprep.mubr.f32.mxu0 %v2454_v23  ;;  %3766 = vmatmul.mubr.f32.gmra.mxu1 %v1623_v49  ;;  %v2456_v54 = vmul.f32 %v4130_v20, %v5576_v6  ;;  %v3354_v6 = vld [vmem:[%s6236_s6 + $0x200] sm:$0xff] }
 0x326   : > { %3797 = vmatpush3.msra.mxu0 %v3372_v5  ;;  %3836 = vmatprep.subr.mxu1 %v3357_v50  ;;  %v2448_v52 = vpop.xlane.xlu1 %2447  ;;  %v2271_v14 = vmul.f32 %v4132_v40, %v5579_v27 }
 0x327   : > { %3798 = vmatprep.subr.mxu0 %v3371_v29  ;;  %3837 = vmatpush3.msra.mxu1 %v3357_v50  ;;  %4145 = vrcp.f32 %v2448_v52  ;;  %v2263_v61 = vpop.xlane.xlu0 %2262 }
 0x328   : > { %v4134_v53 = vpop.eup %4133  ;;  %3799 = vmatpush3.msra.mxu0 %v3371_v29  ;;  %3838 = vmatprep.subr.mxu1 %v3356_v57  ;;  %4147 = vrcp.f32 %v2263_v61 }
 0x329   : > { %v4136_v32 = vpop.eup %4135  ;;  %3839 = vmatpush3.msra.mxu1 %v3356_v57  ;;  %3801 = vmatmul.mubr.f32.vlgmr.msra.gmra.mxu0 %v2456_v54  ;;  %v2458_v27 = vmul.f32 %v4134_v53, %v5583_v7 }
 0x32a   : > { %3840 = vmatprep.subr.mxu1 %v3355_v19  ;;  %3844 = vmatprep.mubr.f32.mxu1 %v2271_v14  ;;  %v2273_v37 = vmul.f32 %v4136_v32, %v5586_v21 }
 0x32b   : > { %3841 = vmatpush3.msra.mxu1 %v3355_v19  ;;  %v2265_v0 = vpop.xlane.xlu0 %2264  ;;  %3803 = vmatprep.mubr.f32.mxu0 %v2458_v27 }
 0x32c   : > { %v4138_v24 = vpop.eup %4137  ;;  %3842 = vmatprep.subr.mxu1 %v3354_v6  ;;  %4149 = vrcp.f32 %v2265_v0 }
 0x32d   : > { %v4140_v31 = vpop.eup %4139  ;;  %3843 = vmatpush3.msra.mxu1 %v3354_v6  ;;  %v2460_v17 = vmul.f32 %v4138_v24, %v5590_v13 }
 0x32e   : > { %3845 = vmatmul.mubr.f32.vlgmr.msra.gmra.mxu1 %v2273_v37  ;;  %v2275_v39 = vmul.f32 %v4140_v31, %v5594_v30 }
 0x32f   : > { %v2267_v48 = vpop.xlane.xlu0 %2266  ;;  %3804 = vmatmul.mubr.f32.gmra.mxu0 %v2460_v17  ;;  %v6336_v17 = vld [vmem:[#allocation17_spill] sm:$0xff] }
 0x330   : > { %v4142_v7 = vpop.eup %4141  ;;  %4151 = vrcp.f32 %v2267_v48  ;;  %v2450_v56 = vpop.xlane.xlu1 %2449  ;;  %3847 = vmatprep.mubr.f32.mxu1 %v2275_v39  ;;  %v707_v39 = vadd.s32 8, %v6336_v17  ;;  %v5936_v48 = vld [vmem:[%s6237_s7] ss:$0 sm:$0xff] }
 0x331   : > { %v4144_v21 = vpop.eup %4143  ;;  %4153 = vrcp.f32 %v2450_v56  ;;  %v2462_v41 = vmul.f32 %v4142_v7, %v5598_v8 }
 0x332   : > { %v2277_v28 = vmul.f32 %v4144_v21, %v5602_v62  ;;  %v5940_v21 = vstv %s3255_s25  ;;  %s6135_s25 = scalar_lea.hbm %s6240_s10, %s6269_s15 }
 0x333   : > { %v2269_v55 = vpop.xlane.xlu0 %2268  ;;  %3806 = vmatprep.mubr.f32.mxu0 %v2462_v41  ;;  %v5945_v41 = vld [vmem:[%s6237_s7 + $0x1] ss:$0 sm:$0xff] }
 0x334   : > { %v4146_v43 = vpop.eup %4145  ;;  %4155 = vrcp.f32 %v2269_v55  ;;  %v2452_v13 = vpop.xlane.xlu1 %2451  ;;  %3848 = vmatmul.mubr.f32.gmra.mxu1 %v2277_v28 }
 0x335   : > { %v4148_v42 = vpop.eup %4147  ;;  %4157 = vrcp.f32 %v2452_v13  ;;  %v2464_v30 = vmul.f32 %v4146_v43, %v5606_v46 }
 0x336   : > { %v2279_v45 = vmul.f32 %v4148_v42, %v5608_v60  ;;  %v716_v42 = vadd.s32 %v5940_v21, %v707_v39 }
 0x337   : > { %3807 = vmatmul.mubr.f32.gmra.mxu0 %v2464_v30  ;;  %v5951_v30 = vstv %s1373_s18  ;;  %s3085_s18 = sshll.u32 %s6119_s14, 4  ;;  %s6137_s18 = int_to_ptr.vmem [resolvable:$true] %s3085_s18 }
 0x338   : > { %3850 = vmatprep.mubr.f32.mxu1 %v2279_v45  ;;  %s4189_s12 = scalar_lea.vmem %s6137_s18, 1024 }
 0x339   : > { %v4150_v10 = vpop.eup %4149  ;;  %p4190_p7 = scmp.ne.s32.totalorder %s6137_s18, %s4189_s12 }
 0x33a   : > { %v2281_v36 = vmul.f32 %v4150_v10, %v5612_v38  ;;  %v2753_v38 = vld [vmem:[%s6238_s8 + $0x38] sm:$0xff] }
 0x33b   : > { %2803 = vmatprep.subr.mxu0 %v2753_v38  ;;  %3876 = vmatprep.subr.mxu1 %v2753_v38  ;;  %p4191_p9 = pnand %p4190_p7, %p6337_p8 }
 0x33c   : > { %3851 = vmatmul.mubr.f32.gmra.mxu1 %v2281_v36 }
 0x33d   : > { %v4152_v8 = vpop.eup %4151  ;;  %p4192_p13 = pneg %p4191_p9 }
 0x33e   : > { %v4154_v62 = vpop.eup %4153  ;;  %v2283_v35 = vmul.f32 %v4152_v8, %v5615_v11  ;;  %v2752_v11 = vld [vmem:[%s6238_s8 + $0x30] sm:$0xff]  ;;  %v715_v8 = vadd.s32 %v5940_v21, %v6336_v17 }
 0x33f   : > { %v2466_v59 = vmul.f32 %v4154_v62, %v5617_v22  ;;  %2804 = vmatpush1.msra.mxu0 %v2752_v11  ;;  %v2751_v22 = vld [vmem:[%s6238_s8 + $0x28] sm:$0xff]  ;;  %3880 = vmatpush1.msra.mxu1 %v2752_v11  ;;  %v5958_v62 = vstv %s723_s16  ;;  %s4295_s16 = smov [#allocation10]  }
 0x340   : > { %3853 = vmatprep.mubr.f32.mxu1 %v2283_v35  ;;  %2805 = vmatprep.subr.mxu0 %v2751_v22  ;;  %v5960_v35 = vstv %s3333_s17  ;;  %vm726_vm10 = vcmp.lt.s32.totalorder %v716_v42, %v5958_v62  ;;  %vm725_vm11 = vcmp.lt.s32.totalorder %v715_v8, %v5958_v62  ;;  %s4193_s17 = sshll.u32 %s4295_s16, 4  ;;  %s4194_s17 = int_to_ptr.vmem [resolvable:$false] %s4193_s17 }
 0x341   : > { %v4156_v16 = vpop.eup %4155  ;;  %3809 = vmatprep.mubr.f32.mxu0 %v2466_v59  ;;  %3877 = vmatprep.subr.mxu1 %v2751_v22  ;;  %s4195_s15 = scalar_lea.vmem %s4194_s17, 2048  ;;  %p4196_p1 = scmp.lt.s32.totalorder %s6137_s18, %s4194_s17 }
 0x342   : > { %v4158_v25 = vpop.eup %4157  ;;  %v2285_v46 = vmul.f32 %v4156_v16, %v5621_v44  ;;  %v2750_v44 = vld [vmem:[%s6238_s8 + $0x20] sm:$0xff]  ;;  %p4197_p3 = scmp.lt.s32.totalorder %s4195_s15, %s4189_s12 }
 0x343   : > { %v2468_v60 = vmul.f32 %v4158_v25, %v5623_v4  ;;  %v4294_v4 = vmov 0.0   ;;  %2806 = vmatpush1.msra.mxu0 %v2750_v44  ;;  %3881 = vmatpush1.msra.mxu1 %v2750_v44 }
 0x344   : > { %3854 = vmatmul.mubr.f32.gmra.mxu1 %v2285_v46  ;;  %2807 = vmatprep.subr.mxu0 %v2749_v34  ;;  %v5967_v46 = vld [vmem:[%s6237_s7 + $0x2] ss:$0 sm:$0xff]  ;;  %p4198_p4 = por %p4197_p3, %p4196_p1 }
 0x345   : > { %3810 = vmatmul.mubr.f32.gmra.mxu0 %v2468_v60  ;;  %3878 = vmatprep.subr.mxu1 %v2749_v34  ;;  %v5969_v60 = vstv %s3387_s28  ;;  %s6142_s28 = scalar_lea.vmem [#allocation11], %s3253_s23 }
 0x346   : > { %2843 = vmatprep.mubr.f32.mxu0 %v4294_v4  ;;  %2808 = vmatpush1.msra.mxu0 %v2748_v58  ;;  %p4199_p5 = pnand %p4198_p4, %p4192_p13 }
 0x347   : > { %2809 = vmatprep.subr.mxu0 %v2747_v12  ;;  %3882 = vmatpush1.msra.mxu1 %v2748_v58 }
 0x348   : > { %2810 = vmatpush1.msra.mxu0 %v2746_v9  ;;  %3879 = vmatprep.subr.mxu1 %v2747_v12 }
 0x349   : > { %3883 = vmatpush1.msra.mxu1 %v2746_v9  ;;  %2879 = vmatprep.mubr.f32.mxu1 %v4294_v4  ;;  %v708_v9 = vadd.s32 16, %v6336_v17 }
 0x34a   : > { %3856 = vmatprep.subr.mxu1 %v5900_v1 }
 0x370   : > { %v3670_v26 = vpop.f32.mrf.mxu1 }
 0x371   : > { %v3626_v33 = vpop.f32.mrf.mxu0 }
 0x372   : > { %v1334_v47 = vpop.f32.mrf.mxu1  ;;  %v1340_v31 = vadd.f32 %v3670_v26, %v3626_v33 }
 0x373   : > { %v1229_v51 = vpop.f32.mrf.mxu0 }
 0x374   : > { %v1335_v55 = vadd.f32 %v1334_v47, %v1229_v51  ;;  %v1382_v13 = vadd.f32 %v5936_v48, %v1340_v31 }
 0x376   : > { %v1381_v16 = vadd.f32 %v5936_v48, %v1335_v55  ;;  %v1391_v38 = vmul.f32 %v5951_v30, %v1382_v13 }
 0x3a7   : > { %v5905_v15 = vpop.f32.mrf.mxu1 }
 0x3a9   : > { %v1344_v5 = vpop.f32.mrf.mxu1 }
 0x3ab   : > { %v5903_v18 = vpop.f32.mrf.mxu0 }
 0x3ad   : > { %v1239_v63 = vpop.f32.mrf.mxu0 }
 0x3ae   : > { %v1345_v44 = vadd.f32 %v1344_v5, %v1239_v63  ;;  %v3257_v5 = vsel %vm726_vm10, 1.0, %v4294_v4 }
 0x3b3   : > { %v5909_v2 = vpop.f32.mrf.mxu1 }
 0x3b5   : > { %v5913_v3 = vpop.f32.mrf.mxu1 }
 0x3b8   : > { %v5907_v23 = vpop.f32.mrf.mxu0 }
 0x3ba   : > { %v5911_v49 = vpop.f32.mrf.mxu0 }
 0x3bb   : > { %v5917_v20 = vpop.f32.mrf.mxu1 }
 0x3bd   : > { %v5921_v40 = vpop.f32.mrf.mxu1 }
 0x3c0   : > { %v5915_v50 = vpop.f32.mrf.mxu0 }
 0x3c2   : > { %v5919_v29 = vpop.f32.mrf.mxu0 }
 0x3c3   : > { %v3758_v54 = vpop.f32.mrf.mxu1 }
 0x3c5   : > { %v1995_v14 = vpop.f32.mrf.mxu1 }
 0x3c8   : > { %v3714_v57 = vpop.f32.mrf.mxu0 }
 0x3c9   : > { %v2001_v7 = vadd.f32 %v3758_v54, %v3714_v57  ;;  %v1390_v57 = vmul.f32 %v5951_v30, %v1381_v16  ;;  %v1350_v54 = vadd.f32 %v5905_v15, %v5903_v18  ;;  %v717_v18 = vadd.s32 %v5940_v21, %v708_v9 }
 0x3ca   : > { %v1890_v52 = vpop.f32.mrf.mxu0 }
 0x3cb   : > { %v3761_v19 = vpop.f32.mrf.mxu1  ;;  %v1996_v28 = vadd.f32 %v1995_v14, %v1890_v52  ;;  %v2044_v45 = vadd.f32 %v5945_v41, %v2001_v7  ;;  %v709_v52 = vadd.s32 24, %v6336_v17  ;;  %v1384_v13 = vadd.f32 %v5936_v48, %v1350_v54 }
 0x3cc   : > { %vm727_vm13 = vcmp.lt.s32.totalorder %v717_v18, %v5958_v62 }
 0x3cd   : > { %v2005_v32 = vpop.f32.mrf.mxu1  ;;  %v2043_v59 = vadd.f32 %v5945_v41, %v1996_v28  ;;  %v2053_v34 = vmul.f32 %v5960_v35, %v2044_v45  ;;  %v1393_v9 = vmul.f32 %v5951_v30, %v1384_v13 }
 0x3cf   : > { %v2052_v33 = vmul.f32 %v5960_v35, %v2043_v59  ;;  %v2061_v31 = vadd.f32 %v2053_v34, %v1391_v38  ;;  %v5994_v59 = vadd.s32 %v5940_v21, %v709_v52 }
 0x3d0   : > { %v3717_v61 = vpop.f32.mrf.mxu0 }
 0x3d1   : > { %v2011_v26 = vadd.f32 %v3761_v19, %v3717_v61  ;;  %v1383_v19 = vadd.f32 %v5936_v48, %v1345_v44  ;;  %v2060_v15 = vadd.f32 %v2052_v33, %v1390_v57  ;;  %v1355_v44 = vadd.f32 %v5913_v3, %v5911_v49 }
 0x3d2   : > { %v1900_v53 = vpop.f32.mrf.mxu0  ;;  %v1360_v33 = vadd.f32 %v5909_v2, %v5907_v23  ;;  %vm728_vm14 = vcmp.lt.s32.totalorder %v5994_v59, %v5958_v62  ;;  %v711_v23 = vadd.s32 40, %v6336_v17  ;;  %v713_v59 = vadd.s32 56, %v6336_v17 }
 0x3d3   : > { %v2006_v11 = vadd.f32 %v2005_v32, %v1900_v53  ;;  %v3256_v32 = vsel %vm725_vm11, 1.0, %v4294_v4  ;;  %v2046_v7 = vadd.f32 %v5945_v41, %v2011_v26 }
 0x3d5   : > { %v2045_v14 = vadd.f32 %v5945_v41, %v2006_v11 }
 0x3d7   : > { %v2054_v16 = vmul.f32 %v5960_v35, %v2045_v14 }
 0x3d8   : > { %v5923_v6 = vpop.f32.mrf.mxu0 }
 0x3da   : > { %v5927_v37 = vpop.f32.mrf.mxu0 }
 0x3dc   : > { %v5925_v27 = vpop.f32.mrf.mxu1 }
 0x3dd   : > { %v2021_v34 = vadd.f32 %v5925_v27, %v5923_v6  ;;  %v1385_v6 = vadd.f32 %v5936_v48, %v1355_v44 }
 0x3de   : > { %v2015_v0 = vpop.f32.mrf.mxu1 }
 0x3df   : > { %v2016_v42 = vadd.f32 %v2015_v0, %v5927_v37  ;;  %v710_v37 = vadd.s32 32, %v6336_v17  ;;  %v2055_v0 = vmul.f32 %v5960_v35, %v2046_v7  ;;  %v2048_v52 = vadd.f32 %v5945_v41, %v2021_v34 }
 0x3e0   : > { %v5930_v24 = vpop.f32.mrf.mxu0 }
 0x3e1   : > { %v2047_v26 = vadd.f32 %v5945_v41, %v2016_v42  ;;  %v2063_v2 = vadd.f32 %v2055_v0, %v1393_v9  ;;  %v2057_v18 = vmul.f32 %v5960_v35, %v2048_v52 }
 0x3e2   : > { %v5947_v43 = vpop.f32.mrf.mxu0 }
 0x3e5   : > { %v5938_v56 = vpop.f32.mrf.mxu1 }
 0x3e6   : > { %v2031_v42 = vadd.f32 %v5938_v56, %v5930_v24  ;;  %v1370_v56 = vadd.f32 %v5917_v20, %v5915_v50  ;;  %v3259_v50 = vsel %vm728_vm14, 1.0, %v4294_v4 }
 0x3e7   : > { %v5954_v10 = vpop.f32.mrf.mxu1 }
 0x3e8   : > { %v2050_v44 = vadd.f32 %v5945_v41, %v2031_v42 }
 0x3e9   : > { %v3802_v36 = vpop.f32.mrf.mxu0 }
 0x3eb   : > { %v2552_v58 = vpop.f32.mrf.mxu0 }
 0x3ee   : > { %v3846_v25 = vpop.f32.mrf.mxu1 }
 0x3ef   : > { %v2663_v22 = vadd.f32 %v3846_v25, %v3802_v36  ;;  %v3805_v63 = vpop.f32.mrf.mxu0 }
 0x3f0   : > { %v2657_v12 = vpop.f32.mrf.mxu1 }
 0x3f1   : > { %v2706_v51 = vadd.f32 %v5967_v46, %v2663_v22  ;;  %v2658_v47 = vadd.f32 %v2657_v12, %v2552_v58  ;;  %v2562_v36 = vpop.f32.mrf.mxu0  ;;  %v1392_v22 = vmul.f32 %v5951_v30, %v1383_v19 }
 0x3f3   : > { %v2715_v53 = vmul.f32 %v5969_v60, %v2706_v51  ;;  %v2705_v61 = vadd.f32 %v5967_v46, %v2658_v47  ;;  %v2062_v51 = vadd.f32 %v2054_v16, %v1392_v22 }
 0x3f4   : > { %v3849_v39 = vpop.f32.mrf.mxu1 }
 0x3f5   : > { %v2714_v28 = vmul.f32 %v5969_v60, %v2705_v61  ;;  %v2673_v55 = vadd.f32 %v3849_v39, %v3805_v63  ;;  %v2723_v45 = vadd.f32 %v2715_v53, %v2061_v31  ;;  %v719_v63 = vadd.s32 %v5940_v21, %v710_v37 }
 0x3f6   : > { %v2667_v8 = vpop.f32.mrf.mxu1  ;;  %v2056_v61 = vmul.f32 %v5960_v35, %v2047_v26 }
 0x3f7   : > { %v2722_v25 = vadd.f32 %v2714_v28, %v2060_v15  ;;  %v2708_v38 = vadd.f32 %v5967_v46, %v2673_v55  ;;  %v2668_v11 = vadd.f32 %v2667_v8, %v2562_v36  ;;  %v2731_v49 = vmax.f32 %v2723_v45, 0.0  ;;  %v3808_v3 = vpop.f32.mrf.mxu0 }
 0x3f8   : > { %v3258_v15 = vsel %vm727_vm13, 1.0, %v4294_v4  ;;  %v2026_v45 = vadd.f32 %v5954_v10, %v5947_v43  ;;  %vm729_vm15 = vcmp.lt.s32.totalorder %v719_v63, %v5958_v62  ;;  %v1394_v36 = vmul.f32 %v5951_v30, %v1385_v6 }
 0x3f9   : > { %v2730_v58 = vmax.f32 %v2722_v25, 0.0  ;;  %v2707_v12 = vadd.f32 %v5967_v46, %v2668_v11  ;;  %v2717_v57 = vmul.f32 %v5969_v60, %v2708_v38  ;;  %v2572_v19 = vpop.f32.mrf.mxu0  ;;  %v6026_v39 = vmul.f32 %v3257_v5, %v2731_v49 }
 0x3fa   : > { %v720_v5 = vadd.s32 %v5940_v21, %v711_v23  ;;  %v1365_v43 = vadd.f32 %v5921_v40, %v5919_v29  ;;  %v712_v10 = vadd.s32 48, %v6336_v17  ;;  %v2064_v25 = vadd.f32 %v2056_v61, %v1394_v36 }
 0x3fb   : > { %v6011_v47 = vmul.f32 %v3256_v32, %v2730_v58  ;;  %v2716_v54 = vmul.f32 %v5969_v60, %v2707_v12  ;;  %v1386_v32 = vadd.f32 %v5936_v48, %v1360_v33  ;;  %v2725_v7 = vadd.f32 %v2717_v57, %v2063_v2 }
 0x3fc   : > { %v3852_v27 = vpop.f32.mrf.mxu1  ;;  %v2049_v37 = vadd.f32 %v5945_v41, %v2026_v45  ;;  %v3260_v34 = vsel %vm729_vm15, 1.0, %v4294_v4  ;;  %vm730_vm0 = vcmp.lt.s32.totalorder %v720_v5, %v5958_v62  ;;  %v1388_v41 = vadd.f32 %v5936_v48, %v1370_v56 }
 0x3fd   : > { %v2724_v14 = vadd.f32 %v2716_v54, %v2062_v51  ;;  %3390 = vmatmul.mubr.msk.f32.vlgmr.msra.gmra.mxu0 %vm2754_vm12, %v6011_v47  ;;  %v2683_v53 = vadd.f32 %v3852_v27, %v3808_v3  ;;  %v1395_v24 = vmul.f32 %v5951_v30, %v1386_v32  ;;  %v2733_v38 = vmax.f32 %v2725_v7, 0.0 }
 0x3fe   : > { %v2677_v31 = vpop.f32.mrf.mxu1  ;;  %2849 = vmatprep.mubr.f32.mxu0 %v4294_v4  ;;  %v1387_v58 = vadd.f32 %v5936_v48, %v1365_v43  ;;  %v721_v3 = vadd.s32 %v5940_v21, %v712_v10  ;;  %v2059_v57 = vmul.f32 %v5960_v35, %v2050_v44  ;;  %v2058_v54 = vmul.f32 %v5960_v35, %v2049_v37 }
 0x3ff   : > { %v2732_v28 = vmax.f32 %v2724_v14, 0.0  ;;  %v2710_v55 = vadd.f32 %v5967_v46, %v2683_v53  ;;  %v2678_v13 = vadd.f32 %v2677_v31, %v2572_v19  ;;  %v2065_v20 = vadd.f32 %v2057_v18, %v1395_v24 }
 0x400   : > { %v2741_v51 = vmul.f32 %v3259_v50, %v2733_v38  ;;  %v1397_v63 = vmul.f32 %v5951_v30, %v1388_v41  ;;  %v1396_v17 = vmul.f32 %v5951_v30, %v1387_v58  ;;  %v3261_v35 = vsel %vm730_vm0, 1.0, %v4294_v4 }
 0x401   : > { %v2709_v8 = vadd.f32 %v5967_v46, %v2678_v13  ;;  %3391 = vmatmul.mubr.msk.f32.gmra.mxu0 %vm2754_vm12, %v6026_v39  ;;  %v6043_v16 = vmul.f32 %v3258_v15, %v2732_v28  ;;  %v2719_v11 = vmul.f32 %v5969_v60, %v2710_v55  ;;  %v722_v14 = vadd.s32 %v5940_v21, %v713_v59  ;;  %v2948_v13 = vld [vmem:[%s6239_s9] sm:$0xff] }
 0x402   : > { %2855 = vmatprep.mubr.f32.mxu0 %v4294_v4  ;;  %v2067_v53 = vadd.f32 %v2059_v57, %v1397_v63  ;;  %v2066_v32 = vadd.f32 %v2058_v54, %v1396_v17  ;;  %vm731_vm1 = vcmp.lt.s32.totalorder %v721_v3, %v5958_v62 }
 0x403   : > { %v2718_v22 = vmul.f32 %v5969_v60, %v2709_v8  ;;  %v2727_v33 = vadd.f32 %v2719_v11, %v2065_v20  ;;  %vm732_vm3 = vcmp.lt.s32.totalorder %v722_v14, %v5958_v62  ;;  %v2949_v62 = vld [vmem:[%s6239_s9 + $0x8] sm:$0xff] }
 0x404   : > { %v3855_v0 = vpop.f32.mrf.mxu1  ;;  %v3263_v28 = vsel %vm732_vm3, 1.0, %v4294_v4 }
 0x405   : > { %v2726_v29 = vadd.f32 %v2718_v22, %v2064_v25  ;;  %3392 = vmatmul.mubr.msk.f32.gmra.mxu0 %vm2754_vm12, %v6043_v16  ;;  %v3811_v40 = vpop.f32.mrf.mxu0  ;;  %v2735_v52 = vmax.f32 %v2727_v33, 0.0 }
 0x406   : > { %v2693_v12 = vadd.f32 %v3855_v0, %v3811_v40  ;;  %v2687_v9 = vpop.f32.mrf.mxu1  ;;  %2861 = vmatprep.mubr.f32.mxu0 %v4294_v4 }
 0x407   : > { %v2734_v26 = vmax.f32 %v2726_v29, 0.0  ;;  %v2582_v49 = vpop.f32.mrf.mxu0  ;;  %v2743_v31 = vmul.f32 %v3261_v35, %v2735_v52 }
 0x408   : > { %v2712_v6 = vadd.f32 %v5967_v46, %v2693_v12  ;;  %v2688_v27 = vadd.f32 %v2687_v9, %v2582_v49 }
 0x409   : > { %3393 = vmatmul.mubr.msk.f32.gmra.mxu0 %vm2754_vm12, %v2741_v51  ;;  %v2742_v48 = vmul.f32 %v3260_v34, %v2734_v26 }
 0x40a   : > { %v2721_v23 = vmul.f32 %v5969_v60, %v2712_v6  ;;  %v2711_v2 = vadd.f32 %v5967_v46, %v2688_v27  ;;  %2867 = vmatprep.mubr.f32.mxu0 %v4294_v4  ;;  %v3262_v46 = vsel %vm731_vm1, 1.0, %v4294_v4 }
 0x40c   : > { %v2720_v61 = vmul.f32 %v5969_v60, %v2711_v2  ;;  %v2729_v30 = vadd.f32 %v2721_v23, %v2067_v53  ;;  %v2950_v60 = vld [vmem:[%s6239_s9 + $0x10] sm:$0xff] }
 0x40d   : > { %3394 = vmatmul.mubr.msk.f32.gmra.mxu0 %vm2754_vm12, %v2742_v48 }
 0x40e   : > { %v2728_v19 = vadd.f32 %v2720_v61, %v2066_v32  ;;  %2873 = vmatprep.mubr.f32.mxu0 %v4294_v4  ;;  %v2737_v21 = vmax.f32 %v2729_v30, 0.0 }
 0x410   : > { %v2736_v15 = vmax.f32 %v2728_v19, 0.0  ;;  %v2745_v55 = vmul.f32 %v3263_v28, %v2737_v21 }
 0x411   : > { %3395 = vmatmul.mubr.msk.f32.gmra.mxu0 %vm2754_vm12, %v2743_v31 }
 0x412   : > { %v2744_v7 = vmul.f32 %v3262_v46, %v2736_v15 }
 0x414   : > { %3396 = vmatmul.mubr.msk.f32.vlgmr.msra.gmra.mxu1 %vm2754_vm12, %v2744_v7 }
 0x415   : > { %3857 = vmatpush3.msra.mxu1 %v5900_v1  ;;  %2885 = vmatprep.mubr.f32.mxu1 %v4294_v4 }
 0x416   : > { %3858 = vmatprep.subr.mxu1 %v2950_v60 }
 0x417   : > { %3859 = vmatpush3.msra.mxu1 %v2950_v60 }
 0x418   : > { %3860 = vmatprep.subr.mxu1 %v2949_v62  ;;  %3397 = vmatmul.mubr.msk.f32.gmra.mxu1 %vm2754_vm12, %v2745_v55 }
 0x419   : > { %3861 = vmatpush3.msra.mxu1 %v2949_v62  ;;  %3864 = vmatprep.mubr.msk.f32.mxu1 %vm2754_vm12, %v6011_v47 }
 0x41a   : > { %3862 = vmatprep.subr.mxu1 %v2948_v13 }
 0x41b   : > { %3863 = vmatpush3.msra.mxu1 %v2948_v13 }
 0x41c   : > { %3865 = vmatmul.mubr.msk.f32.vlgmr.msra.gmra.mxu1 %vm2754_vm12, %v6026_v39 }
 0x41d   : > { %3867 = vmatprep.mubr.msk.f32.mxu1 %vm2754_vm12, %v6043_v16 }
 0x420   : > { %3868 = vmatmul.mubr.msk.f32.gmra.mxu1 %vm2754_vm12, %v2741_v51 }
 0x421   : > { %3870 = vmatprep.mubr.msk.f32.mxu1 %vm2754_vm12, %v2742_v48 }
 0x424   : > { %3871 = vmatmul.mubr.msk.f32.gmra.mxu1 %vm2754_vm12, %v2743_v31 }
 0x425   : > { %3873 = vmatprep.mubr.msk.f32.mxu1 %vm2754_vm12, %v2744_v7 }
 0x428   : > { %3874 = vmatmul.mubr.msk.f32.gmra.mxu1 %vm2754_vm12, %v2745_v55 }
 0x4bd   : > { %v2845_v4 = vpop.f32.mrf.mxu0 }
 0x4bf   : > { %v2847_v1 = vpop.f32.mrf.mxu0 }
 0x4c0   : > { %v3425_v47 = vpack.c.bf16 %v2847_v1, %v2845_v4 }
 0x4c1   : > { %v2851_v42 = vpop.f32.mrf.mxu0 }
 0x4c2   : > { %2940 = vst [vmem:[%s6119_s14] sm:$0xff] %v3425_v47 }
 0x4c3   : > { %v2853_v39 = vpop.f32.mrf.mxu0 }
 0x4c4   : > { %v3426_v45 = vpack.c.bf16 %v2853_v39, %v2851_v42 }
 0x4c5   : > { %v2857_v5 = vpop.f32.mrf.mxu0 }
 0x4c6   : > { %2941 = vst [vmem:[%s6119_s14 + $0x8] sm:$0xff] %v3426_v45 }
 0x4c7   : > { %v2859_v36 = vpop.f32.mrf.mxu0 }
 0x4c8   : > { %v3427_v18 = vpack.c.bf16 %v2859_v36, %v2857_v5 }
 0x4c9   : > { %v2863_v8 = vpop.f32.mrf.mxu0 }
 0x4ca   : > { %2942 = vst [vmem:[%s6119_s14 + $0x10] sm:$0xff] %v3427_v18 }
 0x4cb   : > { %v2865_v16 = vpop.f32.mrf.mxu0 }
 0x4cc   : > { %v3428_v24 = vpack.c.bf16 %v2865_v16, %v2863_v8 }
 0x4cd   : > { %v2869_v56 = vpop.f32.mrf.mxu0 }
 0x4ce   : > { %2943 = vst [vmem:[%s6119_s14 + $0x18] sm:$0xff] %v3428_v24 }
 0x4cf   : > { %v2871_v43 = vpop.f32.mrf.mxu0 }
 0x4d0   : > { %v3429_v10 = vpack.c.bf16 %v2871_v43, %v2869_v56 }
 0x4d1   : > { %v2875_v25 = vpop.f32.mrf.mxu0 }
 0x4d2   : > { %2944 = vst [vmem:[%s6119_s14 + $0x20] sm:$0xff] %v3429_v10 }
 0x4d3   : > { %v2877_v38 = vpop.f32.mrf.mxu0 }
 0x4d4   : > { %v3430_v11 = vpack.c.bf16 %v2877_v38, %v2875_v25  ;;  %v2881_v22 = vpop.f32.mrf.mxu1 }
 0x4d6   : > { %2945 = vst [vmem:[%s6119_s14 + $0x28] sm:$0xff] %v3430_v11  ;;  %v2883_v44 = vpop.f32.mrf.mxu1 }
 0x4d7   : > { %v3431_v37 = vpack.c.bf16 %v2883_v44, %v2881_v22 }
 0x4d8   : > { %v2887_v0 = vpop.f32.mrf.mxu1 }
 0x4d9   : > { %2946 = vst [vmem:[%s6119_s14 + $0x30] sm:$0xff] %v3431_v37 }
 0x4da   : > { %v2889_v50 = vpop.f32.mrf.mxu1 }
 0x4db   : > { %v3432_v20 = vpack.c.bf16 %v2889_v50, %v2887_v0 }
 0x4dc   : > { %v3866_v29 = vpop.f32.mrf.mxu1 }
 0x4dd   : > { %2947 = vst [vmem:[%s6119_s14 + $0x38] sm:$0xff] %v3432_v20  ;;  %3058 = vst [vmem:[%s6142_s28 + $0x8] sm:$0xff] %v3866_v29 }
 0x4de   : > { %v3018_v40 = vpop.f32.mrf.mxu1 }
 0x4df   : > { %4202 = shalt.err (!%p4199_p5)
}
 0x4e0   : > { %s4203_s23 = scalar_lea.hbm %s6135_s25, 1024  ;;  %s4207_s16 = scalar_lea.hbm %s6240_s10, 2048 }
 0x4e1   : > { %p4204_p6 = scmp.ne.s32.totalorder %s6135_s25, %s4203_s23  ;;  %p4208_p0 = scmp.lt.s32.totalorder %s6135_s25, %s6240_s10 }
 0x4e2   : > { %p4209_p2 = scmp.lt.s32.totalorder %s4207_s16, %s4203_s23 }
 0x4e3   : > { %p4205_p11 = pnand %p4204_p6, %p6337_p8 }
 0x4e4   : > { %p4210_p7 = por %p4209_p2, %p4208_p0 }
 0x4e5   : > { %p4206_p12 = pneg %p4205_p11 }
 0x4e7   : > { %p4211_p9 = pnand %p4210_p7, %p4206_p12 }
 0x4e9   : > { %4214 = shalt.err (!%p4211_p9)
}
 0x4ea   : > { %s6270_s15 = smov 128   ;;  %s4297_s13 = smov 8   ;;  %3057 = vst [vmem:[%s6142_s28] sm:$0xff] %v3018_v40  ;;  %v3869_v34 = vpop.f32.mrf.mxu1 }
 0x4eb   : > { %s6338_s1 = scalar_lea.sflag [#allocation4], %s4572_s26  ;;  %3060 = vst [vmem:[%s6142_s28 + $0x18] sm:$0xff] %v3869_v34  ;;  %s3101_s2 = sshll.u32 %s6142_s28, 4  ;;  %s6177_s2 = int_to_ptr.vmem [resolvable:$true] %s3101_s2 }
 0x4ec   : > { %3895 = dma.vmem_to_hbm [thread:$0]  (%p6337_p8), %s6137_s18, 1024, %s6135_s25, %s6338_s1, %s6270_s15, %s6270_s15, %s4297_s13   ;;  %v3028_v41 = vpop.f32.mrf.mxu1 }
 0x4ed   : > { %3059 = vst [vmem:[%s6142_s28 + $0x10] sm:$0xff] %v3028_v41  ;;  %s6339_s18 = sshll.u32 %s4383_s0, 10  ;;  %s3071_s23 = scalar_lea.sflag [#allocation12], %s4572_s26 }
 0x4ee   : > { %v3872_v58 = vpop.f32.mrf.mxu1  ;;  %s6185_s17 = scalar_lea.hbm %s6241_s11, %s6339_s18  ;;  %s4215_s14 = scalar_lea.vmem %s6177_s2, 1024 }
 0x4ef   : > { %3062 = vst [vmem:[%s6142_s28 + $0x28] sm:$0xff] %v3872_v58  ;;  %p4216_p13 = scmp.ne.s32.totalorder %s6177_s2, %s4215_s14  ;;  %s4298_s16 = smov [#allocation11]  }
 0x4f0   : > { %v3038_v12 = vpop.f32.mrf.mxu1  ;;  %s4219_s1 = sshll.u32 %s4298_s16, 4  ;;  %s4220_s1 = int_to_ptr.vmem [resolvable:$false] %s4219_s1 }
 0x4f1   : > { %3061 = vst [vmem:[%s6142_s28 + $0x20] sm:$0xff] %v3038_v12  ;;  %p4217_p1 = pnand %p4216_p13, %p6337_p8  ;;  %s4221_s15 = scalar_lea.vmem %s4220_s1, 2048 }
 0x4f2   : > { %v3875_v9 = vpop.f32.mrf.mxu1  ;;  %p4222_p4 = scmp.lt.s32.totalorder %s6177_s2, %s4220_s1  ;;  %p4223_p5 = scmp.lt.s32.totalorder %s4221_s15, %s4215_s14 }
 0x4f3   : > { %3064 = vst [vmem:[%s6142_s28 + $0x38] sm:$0xff] %v3875_v9  ;;  %p4218_p3 = pneg %p4217_p1 }
 0x4f4   : > { %v3048_v59 = vpop.f32.mrf.mxu1  ;;  %p4224_p6 = por %p4223_p5, %p4222_p4 }
 0x4f5   : > { %3063 = vst [vmem:[%s6142_s28 + $0x30] sm:$0xff] %v3048_v59 }
 0x4f6   : > { %p4225_p11 = pnand %p4224_p6, %p4218_p3 }
 0x4f8   : > { %4228 = shalt.err (!%p4225_p11)
}
 0x4f9   : > { %s4229_s0 = scalar_lea.hbm %s6185_s17, 1024  ;;  %s4233_s18 = scalar_lea.hbm %s6241_s11, 2048 }
 0x4fa   : > { %p4230_p12 = scmp.ne.s32.totalorder %s6185_s17, %s4229_s0  ;;  %p4234_p7 = scmp.lt.s32.totalorder %s6185_s17, %s6241_s11 }
 0x4fb   : > { %p4235_p9 = scmp.lt.s32.totalorder %s4233_s18, %s4229_s0 }
 0x4fc   : > { %p4231_p0 = pnand %p4230_p12, %p6337_p8 }
 0x4fd   : > { %p4236_p13 = por %p4235_p9, %p4234_p7 }
 0x4fe   : > { %p4232_p2 = pneg %p4231_p0 }
 0x500   : > { %p4237_p1 = pnand %p4236_p13, %p4232_p2 }
 0x502   : > { %4240 = shalt.err (!%p4237_p1)
}
 0x503   : > { %s6340_s15 = smov 128  }
 0x504   : > { %3896 = dma.vmem_to_hbm [thread:$0]  (%p6337_p8), %s6177_s2, 1024, %s6185_s17, %s3071_s23, %s6340_s15, %s6340_s15, %s4297_s13  }
 0x505 PF: > { %s3116_s14 = sand.u32 1, %s4275_s19   ;;  %p6341_p3 = scmp.ne.s32.totalorder %s6275_s30, 0 }
 0x506   : > { %s3117_s16 = scalar_lea.sflag [#allocation4], %s3116_s14 }
 0x507   : > { %p3907_p4 = pnand %p3245_p10, %p6341_p3 }
 0x509   : > { %p3908_p5 = pneg %p3907_p4 }
 0x50b   : > { %4266 = dma.done.wait (%p3908_p5), %s3117_s16, 1024  }
 0x50c   : > { %4268 = vsyncadd (%p3908_p5), %s3117_s16, 4294966272  ;;  %s3126_s1 = scalar_lea.sflag [#allocation12], %s3116_s14 }
 0x50d   : > { %4270 = dma.done.wait (%p3908_p5), %s3126_s1, 1024  }
 0x50e   : > { %4272 = vsyncadd (%p3908_p5), %s3126_s1, 4294966272  ;;  %p28_p8 = scmp.ge.s32.totalorder %s4387_s24, 4   ;;  %s6342_s19 = smov %s4279_s20 }
 0x50f   : > { %s6343_s20 = smov %s4283_s21  ;;  %s6344_s21 = smov %s4399_s27 }
 0x510   : > { %s6345_s22 = smov %s4387_s24  ;;  %30 = sbr.rel (!%p28_p8) target bundleno = 11 (0xb), region = 223 }
 0x515   :  { %3131 = vsyncpa [#allocation4], 1 }
 0x516   :  { %3133 = vsyncpa [#allocation4 + $0x1], 1 }
 0x517   :  { %3134 = vsyncpa [#allocation12], 1 }
 0x518   :  { %3136 = vsyncpa [#allocation12 + $0x1], 1 }
 0x519   :  { %3137 = vsyncpa [#allocation5], 1 }
 0x51a   :  { %3139 = vsyncpa [#allocation5 + $0x1], 1 }
 0x51b   :  { %3140 = vsyncpa [#allocation7], 1 }

</bundles_post_ra>
